<compile_context>
chip_gen: v5e
topology: v5e:2x2
jax: 0.10.0
libtpu: 0.0.40
codegen_flags: <defaults>
</compile_context>

<pallas_src>
import functools
import math

import jax
import jax.numpy as jnp
from jax.experimental import pallas as pl
from jax.experimental.pallas import tpu as pltpu


# ----------------------------------------------------------------------------
# Pallas kernel: fused 3x3 conv + BN (scale/shift) [+ residual] + ReLU
# ----------------------------------------------------------------------------
def _conv3x3_bn_relu_kernel(*refs, stride, out_h, out_w, add_residual):
    """One grid step == one image of the batch.

    refs = (*phase_refs, w_ref, scale_ref, shift_ref, [res_ref], o_ref)
      phase_refs[p] : (1, Hs, Ws, Cin)        bf16, p = (kh % s) * s + (kw % s)
      w_ref         : (3, 3, Cin, Cout)       bf16 (HWIO)
      scale_ref     : (1, 1, Cout)            f32  (gamma / sqrt(var + eps))
      shift_ref     : (1, 1, Cout)            f32  (beta - mean * scale)
      res_ref       : (1, out_h, out_w, Cout) f32  (identity / shortcut path)
      o_ref         : (1, out_h, out_w, Cout) f32
    """
    s = stride
    n_phase = s * s
    phase_refs = refs[:n_phase]
    w_ref, scale_ref, shift_ref = refs[n_phase:n_phase + 3]
    res_ref = refs[n_phase + 3] if add_residual else None
    o_ref = refs[-1]

    cin = w_ref.shape[2]
    cout = w_ref.shape[3]

    # Load each phase of the padded input once (bf16, tiny -> stays resident).
    x_phase = [phase_refs[p][0] for p in range(n_phase)]

    acc = jnp.zeros((out_h, out_w, cout), jnp.float32)
    for kh in range(3):
        for kw in range(3):
            xp = x_phase[(kh % s) * s + (kw % s)]
            oh, ow = kh // s, kw // s
            # Contiguous static slice -- no strided/element-offset access.
            tap = xp[oh:oh + out_h, ow:ow + out_w, :]           # (Ho, Wo, Cin)
            w_tap = jnp.broadcast_to(w_ref[kh, kw], (out_h, cin, cout))
            acc = acc + jnp.einsum(
                "hwc,hcd->hwd", tap, w_tap,
                preferred_element_type=jnp.float32)             # bf16 in, f32 acc

    y = acc * scale_ref[...] + shift_ref[...]                   # folded BN (eval)
    if add_residual:
        y = y + res_ref[0]                                      # shortcut add
    y = jnp.maximum(y, 0.0)                                     # ReLU
    o_ref[0] = y.astype(o_ref.dtype)


# ----------------------------------------------------------------------------
# Wrapper: pad + phase-split + fold BN, then one fused pallas_call
# ----------------------------------------------------------------------------
def conv3x3_bn_relu(x_nhwc, w_oihw, bn, *, stride, residual=None, eps=1e-5):
    """x: NHWC f32, w: PyTorch OIHW f32, bn = (gamma, beta, mean, var)."""
    N, H, W, Cin = x_nhwc.shape
    Cout = w_oihw.shape[0]
    Ho = (H + 2 - 3) // stride + 1
    Wo = (W + 2 - 3) // stride + 1

    gamma, beta, mean, var = bn
    inv_std = gamma / jnp.sqrt(var + eps)
    scale = inv_std.astype(jnp.float32).reshape(1, 1, Cout)
    shift = (beta - mean * inv_std).astype(jnp.float32).reshape(1, 1, Cout)

    # PyTorch OIHW -> HWIO, cast to bf16 (f32 accumulation happens in-kernel).
    w_hwio = jnp.transpose(w_oihw, (2, 3, 1, 0)).astype(jnp.bfloat16)

    # Spatial pad by 1, then up to a multiple of the stride so all phases have
    # identical shapes.  Phase-splitting keeps total HBM volume == input size.
    s = stride
    Hp = -(-(H + 2) // s) * s
    Wp = -(-(W + 2) // s) * s
    xp = jnp.pad(x_nhwc.astype(jnp.bfloat16),
                 ((0, 0), (1, Hp - H - 1), (1, Wp - W - 1), (0, 0)))
    phases = [xp[:, ph::s, pw::s, :] for ph in range(s) for pw in range(s)]
    Hs, Ws = Hp // s, Wp // s

    inputs = [*phases, w_hwio, scale, shift]
    in_specs = [pl.BlockSpec((1, Hs, Ws, Cin), lambda n: (n, 0, 0, 0))
                for _ in phases]
    in_specs += [
        pl.BlockSpec((3, 3, Cin, Cout), lambda n: (0, 0, 0, 0)),
        pl.BlockSpec((1, 1, Cout), lambda n: (0, 0, 0)),
        pl.BlockSpec((1, 1, Cout), lambda n: (0, 0, 0)),
    ]
    if residual is not None:
        inputs.append(residual.astype(jnp.float32))
        in_specs.append(pl.BlockSpec((1, Ho, Wo, Cout), lambda n: (n, 0, 0, 0)))

    kernel = functools.partial(
        _conv3x3_bn_relu_kernel, stride=s, out_h=Ho, out_w=Wo,
        add_residual=residual is not None)

    return pl.pallas_call(
        kernel,
        out_shape=jax.ShapeDtypeStruct((N, Ho, Wo, Cout), jnp.float32),
        grid=(N,),
        in_specs=in_specs,
        out_specs=pl.BlockSpec((1, Ho, Wo, Cout), lambda n: (n, 0, 0, 0)),
        compiler_params=pltpu.CompilerParams(
            dimension_semantics=("parallel",)),
    )(*inputs)


# ----------------------------------------------------------------------------
# BasicBlock forward (PyTorch NCHW at the boundary)
# ----------------------------------------------------------------------------
@functools.partial(jax.jit, static_argnames=("stride", "downsample"))
def basic_block_forward(params, x_nchw, *, stride, downsample):
    (w1, bn1), (w2, bn2) = params
    x = jnp.transpose(x_nchw, (0, 2, 3, 1))                     # NCHW -> NHWC

    # Identity / shortcut path (pure data movement, tiny; the add itself is
    # fused into the second conv kernel's epilogue).
    if downsample:
        cpad = x.shape[-1] // 2
        ident = jnp.pad(x[:, ::2, ::2, :],
                        ((0, 0), (0, 0), (0, 0), (cpad, cpad)))
    else:
        ident = x

    h = conv3x3_bn_relu(x, w1, bn1, stride=stride)              # conv1+bn1+relu
    y = conv3x3_bn_relu(h, w2, bn2, stride=1, residual=ident)   # conv2+bn2+add+relu
    return jnp.transpose(y, (0, 3, 1, 2))                       # NHWC -> NCHW


# ----------------------------------------------------------------------------
# Pure-JAX reference (same bf16 rounding points, f32 accumulation)
# ----------------------------------------------------------------------------
def basic_block_reference(params, x_nchw, *, stride, downsample, eps=1e-5):
    (w1, bn1), (w2, bn2) = params
    x = jnp.transpose(x_nchw, (0, 2, 3, 1))

    def conv_bn(inp, w_oihw, bn, s):
        w = jnp.transpose(w_oihw, (2, 3, 1, 0)).astype(jnp.bfloat16)
        y = jax.lax.conv_general_dilated(
            inp.astype(jnp.bfloat16), w, (s, s), ((1, 1), (1, 1)),
            dimension_numbers=("NHWC", "HWIO", "NHWC"),
            preferred_element_type=jnp.float32)
        g, b, m, v = bn
        sc = g / jnp.sqrt(v + eps)
        return y * sc + (b - m * sc)

    h = jnp.maximum(conv_bn(x, w1, bn1, stride), 0.0)
    y = conv_bn(h, w2, bn2, 1)
    if downsample:
        cpad = x.shape[-1] // 2
        ident = jnp.pad(x[:, ::2, ::2, :],
                        ((0, 0), (0, 0), (0, 0), (cpad, cpad)))
    else:
        ident = x
    y = jnp.maximum(y + ident, 0.0)
    return jnp.transpose(y, (0, 3, 1, 2))


# ----------------------------------------------------------------------------
def init_block_params(key, in_ch, out_ch):
    ks = jax.random.split(key, 10)
    w1 = jax.random.normal(ks[0], (out_ch, in_ch, 3, 3), jnp.float32) \
        / math.sqrt(in_ch * 9)
    w2 = jax.random.normal(ks[1], (out_ch, out_ch, 3, 3), jnp.float32) \
        / math.sqrt(out_ch * 9)

    def bn(kg, kb, km, kv):
        gamma = 1.0 + 0.2 * jax.random.normal(kg, (out_ch,), jnp.float32)
        beta = 0.1 * jax.random.normal(kb, (out_ch,), jnp.float32)
        mean = 0.1 * jax.random.normal(km, (out_ch,), jnp.float32)
        var = 0.5 + jax.random.uniform(kv, (out_ch,), jnp.float32)
        return (gamma, beta, mean, var)

    return ((w1, bn(ks[2], ks[3], ks[4], ks[5])),
            (w2, bn(ks[6], ks[7], ks[8], ks[9])))


if __name__ == "__main__":
    key = jax.random.PRNGKey(0)
    kx, kpa, kpb = jax.random.split(key, 3)

    x = jax.random.normal(kx, (2, 4, 16, 16), dtype=jnp.float32)   # NCHW

    # Block A: stride=1, identity shortcut, 4 -> 4 channels.
    params_a = init_block_params(kpa, 4, 4)
    out_a = basic_block_forward(params_a, x, stride=1, downsample=False)
    ref_a = basic_block_reference(params_a, x, stride=1, downsample=False)

    # Block B: stride=2 with the ::2 + channel-pad downsample shortcut, 4 -> 8.
    params_b = init_block_params(kpb, 4, 8)
    out_b = basic_block_forward(params_b, x, stride=2, downsample=True)
    ref_b = basic_block_reference(params_b, x, stride=2, downsample=True)

    jax.block_until_ready((out_a, out_b, ref_a, ref_b))

    assert out_a.shape == (2, 4, 16, 16), out_a.shape
    assert out_b.shape == (2, 8, 8, 8), out_b.shape
    assert bool(jnp.all(jnp.isfinite(out_a))) and bool(jnp.all(jnp.isfinite(out_b)))
    assert bool(jnp.allclose(out_a, ref_a, atol=2e-2, rtol=2e-2)), \
        float(jnp.max(jnp.abs(out_a - ref_a)))
    assert bool(jnp.allclose(out_b, ref_b, atol=2e-2, rtol=2e-2)), \
        float(jnp.max(jnp.abs(out_b - ref_b)))
    print("KERNEL_OK")
</pallas_src>

<mosaic_0001>
module attributes {stable_mosaic.version = 11 : i64} {
  func.func @_conv3x3_bn_relu_kernel(%arg0: i32, %arg1: memref<1x18x18x4xbf16, #tpu.memory_space<vmem>>, %arg2: memref<3x3x4x4xbf16, #tpu.memory_space<vmem>>, %arg3: memref<1x1x4xf32, #tpu.memory_space<vmem>>, %arg4: memref<1x1x4xf32, #tpu.memory_space<vmem>>, %arg5: memref<1x16x16x4xf32, #tpu.memory_space<vmem>>, %arg6: memref<1x16x16x4xf32, #tpu.memory_space<vmem>>) attributes {dimension_semantics = [#tpu.dimension_semantics<parallel>], iteration_bounds = array<i64: 2>, scalar_prefetch = 0 : i64, scratch_operands = 0 : i64, tpu.core_type = #tpu.core_type<tc>, window_params = [{transform_indices = @transform_0, window_bounds = array<i64: 1, 18, 18, 4>}, {pipeline_mode = #tpu.pipeline_mode<synchronous>, transform_indices = @transform_1, window_bounds = array<i64: 3, 3, 4, 4>}, {pipeline_mode = #tpu.pipeline_mode<synchronous>, transform_indices = @transform_2, window_bounds = array<i64: 1, 1, 4>}, {pipeline_mode = #tpu.pipeline_mode<synchronous>, transform_indices = @transform_3, window_bounds = array<i64: 1, 1, 4>}, {transform_indices = @transform_4, window_bounds = array<i64: 1, 16, 16, 4>}, {transform_indices = @transform_5, window_bounds = array<i64: 1, 16, 16, 4>}]} {
    %c0 = arith.constant 0 : index
    %c0_0 = arith.constant 0 : index
    %c0_1 = arith.constant 0 : index
    %c0_2 = arith.constant 0 : index
    %0 = vector.load %arg1[%c0, %c0_0, %c0_1, %c0_2] : memref<1x18x18x4xbf16, #tpu.memory_space<vmem>>, vector<1x18x18x4xbf16>
    %1 = vector.shape_cast %0 : vector<1x18x18x4xbf16> to vector<18x18x4xbf16>
    %cst = arith.constant 0.000000e+00 : f32
    %2 = vector.broadcast %cst : f32 to vector<16x16x4xf32>
    %3 = vector.extract_strided_slice %1 {offsets = [0, 0, 0], sizes = [16, 16, 4], strides = [1, 1, 1]} : vector<18x18x4xbf16> to vector<16x16x4xbf16>
    %c0_3 = arith.constant 0 : index
    %c0_4 = arith.constant 0 : index
    %c0_5 = arith.constant 0 : index
    %c0_6 = arith.constant 0 : index
    %4 = vector.load %arg2[%c0_3, %c0_4, %c0_5, %c0_6] : memref<3x3x4x4xbf16, #tpu.memory_space<vmem>>, vector<1x1x4x4xbf16>
    %5 = vector.shape_cast %4 : vector<1x1x4x4xbf16> to vector<4x4xbf16>
    %6 = vector.shape_cast %5 : vector<4x4xbf16> to vector<1x4x4xbf16>
    %7 = vector.broadcast %6 : vector<1x4x4xbf16> to vector<16x4x4xbf16>
    "tpu.trace_start"() <{level = 10 : i32, message = "hwc,hcd->hwd"}> : () -> ()
    %cst_7 = arith.constant dense<0.000000e+00> : vector<16x16x4xf32>
    %8 = tpu.matmul %3, %7, %cst_7 {dimension_numbers = #tpu.dot_dimension_numbers<[2], [1], [1], [2], [0, 0, 0, 1, 1, 2], [0], [0]>} : vector<16x16x4xbf16>, vector<16x4x4xbf16>, vector<16x16x4xf32> -> vector<16x16x4xf32>
    "tpu.trace_stop"() : () -> ()
    %9 = arith.addf %2, %8 : vector<16x16x4xf32>
    %10 = vector.extract_strided_slice %1 {offsets = [0, 1, 0], sizes = [16, 16, 4], strides = [1, 1, 1]} : vector<18x18x4xbf16> to vector<16x16x4xbf16>
    %c0_8 = arith.constant 0 : index
    %c1 = arith.constant 1 : index
    %c0_9 = arith.constant 0 : index
    %c0_10 = arith.constant 0 : index
    %11 = vector.load %arg2[%c0_8, %c1, %c0_9, %c0_10] : memref<3x3x4x4xbf16, #tpu.memory_space<vmem>>, vector<1x1x4x4xbf16>
    %12 = vector.shape_cast %11 : vector<1x1x4x4xbf16> to vector<4x4xbf16>
    %13 = vector.shape_cast %12 : vector<4x4xbf16> to vector<1x4x4xbf16>
    %14 = vector.broadcast %13 : vector<1x4x4xbf16> to vector<16x4x4xbf16>
    "tpu.trace_start"() <{level = 10 : i32, message = "hwc,hcd->hwd"}> : () -> ()
    %cst_11 = arith.constant dense<0.000000e+00> : vector<16x16x4xf32>
    %15 = tpu.matmul %10, %14, %cst_11 {dimension_numbers = #tpu.dot_dimension_numbers<[2], [1], [1], [2], [0, 0, 0, 1, 1, 2], [0], [0]>} : vector<16x16x4xbf16>, vector<16x4x4xbf16>, vector<16x16x4xf32> -> vector<16x16x4xf32>
    "tpu.trace_stop"() : () -> ()
    %16 = arith.addf %9, %15 : vector<16x16x4xf32>
    %17 = vector.extract_strided_slice %1 {offsets = [0, 2, 0], sizes = [16, 16, 4], strides = [1, 1, 1]} : vector<18x18x4xbf16> to vector<16x16x4xbf16>
    %c0_12 = arith.constant 0 : index
    %c2 = arith.constant 2 : index
    %c0_13 = arith.constant 0 : index
    %c0_14 = arith.constant 0 : index
    %18 = vector.load %arg2[%c0_12, %c2, %c0_13, %c0_14] : memref<3x3x4x4xbf16, #tpu.memory_space<vmem>>, vector<1x1x4x4xbf16>
    %19 = vector.shape_cast %18 : vector<1x1x4x4xbf16> to vector<4x4xbf16>
    %20 = vector.shape_cast %19 : vector<4x4xbf16> to vector<1x4x4xbf16>
    %21 = vector.broadcast %20 : vector<1x4x4xbf16> to vector<16x4x4xbf16>
    "tpu.trace_start"() <{level = 10 : i32, message = "hwc,hcd->hwd"}> : () -> ()
    %cst_15 = arith.constant dense<0.000000e+00> : vector<16x16x4xf32>
    %22 = tpu.matmul %17, %21, %cst_15 {dimension_numbers = #tpu.dot_dimension_numbers<[2], [1], [1], [2], [0, 0, 0, 1, 1, 2], [0], [0]>} : vector<16x16x4xbf16>, vector<16x4x4xbf16>, vector<16x16x4xf32> -> vector<16x16x4xf32>
    "tpu.trace_stop"() : () -> ()
    %23 = arith.addf %16, %22 : vector<16x16x4xf32>
    %24 = vector.extract_strided_slice %1 {offsets = [1, 0, 0], sizes = [16, 16, 4], strides = [1, 1, 1]} : vector<18x18x4xbf16> to vector<16x16x4xbf16>
    %c1_16 = arith.constant 1 : index
    %c0_17 = arith.constant 0 : index
    %c0_18 = arith.constant 0 : index
    %c0_19 = arith.constant 0 : index
    %25 = vector.load %arg2[%c1_16, %c0_17, %c0_18, %c0_19] : memref<3x3x4x4xbf16, #tpu.memory_space<vmem>>, vector<1x1x4x4xbf16>
    %26 = vector.shape_cast %25 : vector<1x1x4x4xbf16> to vector<4x4xbf16>
    %27 = vector.shape_cast %26 : vector<4x4xbf16> to vector<1x4x4xbf16>
    %28 = vector.broadcast %27 : vector<1x4x4xbf16> to vector<16x4x4xbf16>
    "tpu.trace_start"() <{level = 10 : i32, message = "hwc,hcd->hwd"}> : () -> ()
    %cst_20 = arith.constant dense<0.000000e+00> : vector<16x16x4xf32>
    %29 = tpu.matmul %24, %28, %cst_20 {dimension_numbers = #tpu.dot_dimension_numbers<[2], [1], [1], [2], [0, 0, 0, 1, 1, 2], [0], [0]>} : vector<16x16x4xbf16>, vector<16x4x4xbf16>, vector<16x16x4xf32> -> vector<16x16x4xf32>
    "tpu.trace_stop"() : () -> ()
    %30 = arith.addf %23, %29 : vector<16x16x4xf32>
    %31 = vector.extract_strided_slice %1 {offsets = [1, 1, 0], sizes = [16, 16, 4], strides = [1, 1, 1]} : vector<18x18x4xbf16> to vector<16x16x4xbf16>
    %c1_21 = arith.constant 1 : index
    %c1_22 = arith.constant 1 : index
    %c0_23 = arith.constant 0 : index
    %c0_24 = arith.constant 0 : index
    %32 = vector.load %arg2[%c1_21, %c1_22, %c0_23, %c0_24] : memref<3x3x4x4xbf16, #tpu.memory_space<vmem>>, vector<1x1x4x4xbf16>
    %33 = vector.shape_cast %32 : vector<1x1x4x4xbf16> to vector<4x4xbf16>
    %34 = vector.shape_cast %33 : vector<4x4xbf16> to vector<1x4x4xbf16>
    %35 = vector.broadcast %34 : vector<1x4x4xbf16> to vector<16x4x4xbf16>
    "tpu.trace_start"() <{level = 10 : i32, message = "hwc,hcd->hwd"}> : () -> ()
    %cst_25 = arith.constant dense<0.000000e+00> : vector<16x16x4xf32>
    %36 = tpu.matmul %31, %35, %cst_25 {dimension_numbers = #tpu.dot_dimension_numbers<[2], [1], [1], [2], [0, 0, 0, 1, 1, 2], [0], [0]>} : vector<16x16x4xbf16>, vector<16x4x4xbf16>, vector<16x16x4xf32> -> vector<16x16x4xf32>
    "tpu.trace_stop"() : () -> ()
    %37 = arith.addf %30, %36 : vector<16x16x4xf32>
    %38 = vector.extract_strided_slice %1 {offsets = [1, 2, 0], sizes = [16, 16, 4], strides = [1, 1, 1]} : vector<18x18x4xbf16> to vector<16x16x4xbf16>
    %c1_26 = arith.constant 1 : index
    %c2_27 = arith.constant 2 : index
    %c0_28 = arith.constant 0 : index
    %c0_29 = arith.constant 0 : index
    %39 = vector.load %arg2[%c1_26, %c2_27, %c0_28, %c0_29] : memref<3x3x4x4xbf16, #tpu.memory_space<vmem>>, vector<1x1x4x4xbf16>
    %40 = vector.shape_cast %39 : vector<1x1x4x4xbf16> to vector<4x4xbf16>
    %41 = vector.shape_cast %40 : vector<4x4xbf16> to vector<1x4x4xbf16>
    %42 = vector.broadcast %41 : vector<1x4x4xbf16> to vector<16x4x4xbf16>
    "tpu.trace_start"() <{level = 10 : i32, message = "hwc,hcd->hwd"}> : () -> ()
    %cst_30 = arith.constant dense<0.000000e+00> : vector<16x16x4xf32>
    %43 = tpu.matmul %38, %42, %cst_30 {dimension_numbers = #tpu.dot_dimension_numbers<[2], [1], [1], [2], [0, 0, 0, 1, 1, 2], [0], [0]>} : vector<16x16x4xbf16>, vector<16x4x4xbf16>, vector<16x16x4xf32> -> vector<16x16x4xf32>
    "tpu.trace_stop"() : () -> ()
    %44 = arith.addf %37, %43 : vector<16x16x4xf32>
    %45 = vector.extract_strided_slice %1 {offsets = [2, 0, 0], sizes = [16, 16, 4], strides = [1, 1, 1]} : vector<18x18x4xbf16> to vector<16x16x4xbf16>
    %c2_31 = arith.constant 2 : index
    %c0_32 = arith.constant 0 : index
    %c0_33 = arith.constant 0 : index
    %c0_34 = arith.constant 0 : index
    %46 = vector.load %arg2[%c2_31, %c0_32, %c0_33, %c0_34] : memref<3x3x4x4xbf16, #tpu.memory_space<vmem>>, vector<1x1x4x4xbf16>
    %47 = vector.shape_cast %46 : vector<1x1x4x4xbf16> to vector<4x4xbf16>
    %48 = vector.shape_cast %47 : vector<4x4xbf16> to vector<1x4x4xbf16>
    %49 = vector.broadcast %48 : vector<1x4x4xbf16> to vector<16x4x4xbf16>
    "tpu.trace_start"() <{level = 10 : i32, message = "hwc,hcd->hwd"}> : () -> ()
    %cst_35 = arith.constant dense<0.000000e+00> : vector<16x16x4xf32>
    %50 = tpu.matmul %45, %49, %cst_35 {dimension_numbers = #tpu.dot_dimension_numbers<[2], [1], [1], [2], [0, 0, 0, 1, 1, 2], [0], [0]>} : vector<16x16x4xbf16>, vector<16x4x4xbf16>, vector<16x16x4xf32> -> vector<16x16x4xf32>
    "tpu.trace_stop"() : () -> ()
    %51 = arith.addf %44, %50 : vector<16x16x4xf32>
    %52 = vector.extract_strided_slice %1 {offsets = [2, 1, 0], sizes = [16, 16, 4], strides = [1, 1, 1]} : vector<18x18x4xbf16> to vector<16x16x4xbf16>
    %c2_36 = arith.constant 2 : index
    %c1_37 = arith.constant 1 : index
    %c0_38 = arith.constant 0 : index
    %c0_39 = arith.constant 0 : index
    %53 = vector.load %arg2[%c2_36, %c1_37, %c0_38, %c0_39] : memref<3x3x4x4xbf16, #tpu.memory_space<vmem>>, vector<1x1x4x4xbf16>
    %54 = vector.shape_cast %53 : vector<1x1x4x4xbf16> to vector<4x4xbf16>
    %55 = vector.shape_cast %54 : vector<4x4xbf16> to vector<1x4x4xbf16>
    %56 = vector.broadcast %55 : vector<1x4x4xbf16> to vector<16x4x4xbf16>
    "tpu.trace_start"() <{level = 10 : i32, message = "hwc,hcd->hwd"}> : () -> ()
    %cst_40 = arith.constant dense<0.000000e+00> : vector<16x16x4xf32>
    %57 = tpu.matmul %52, %56, %cst_40 {dimension_numbers = #tpu.dot_dimension_numbers<[2], [1], [1], [2], [0, 0, 0, 1, 1, 2], [0], [0]>} : vector<16x16x4xbf16>, vector<16x4x4xbf16>, vector<16x16x4xf32> -> vector<16x16x4xf32>
    "tpu.trace_stop"() : () -> ()
    %58 = arith.addf %51, %57 : vector<16x16x4xf32>
    %59 = vector.extract_strided_slice %1 {offsets = [2, 2, 0], sizes = [16, 16, 4], strides = [1, 1, 1]} : vector<18x18x4xbf16> to vector<16x16x4xbf16>
    %c2_41 = arith.constant 2 : index
    %c2_42 = arith.constant 2 : index
    %c0_43 = arith.constant 0 : index
    %c0_44 = arith.constant 0 : index
    %60 = vector.load %arg2[%c2_41, %c2_42, %c0_43, %c0_44] : memref<3x3x4x4xbf16, #tpu.memory_space<vmem>>, vector<1x1x4x4xbf16>
    %61 = vector.shape_cast %60 : vector<1x1x4x4xbf16> to vector<4x4xbf16>
    %62 = vector.shape_cast %61 : vector<4x4xbf16> to vector<1x4x4xbf16>
    %63 = vector.broadcast %62 : vector<1x4x4xbf16> to vector<16x4x4xbf16>
    "tpu.trace_start"() <{level = 10 : i32, message = "hwc,hcd->hwd"}> : () -> ()
    %cst_45 = arith.constant dense<0.000000e+00> : vector<16x16x4xf32>
    %64 = tpu.matmul %59, %63, %cst_45 {dimension_numbers = #tpu.dot_dimension_numbers<[2], [1], [1], [2], [0, 0, 0, 1, 1, 2], [0], [0]>} : vector<16x16x4xbf16>, vector<16x4x4xbf16>, vector<16x16x4xf32> -> vector<16x16x4xf32>
    "tpu.trace_stop"() : () -> ()
    %65 = arith.addf %58, %64 : vector<16x16x4xf32>
    %c0_46 = arith.constant 0 : index
    %c0_47 = arith.constant 0 : index
    %c0_48 = arith.constant 0 : index
    %66 = vector.load %arg3[%c0_46, %c0_47, %c0_48] : memref<1x1x4xf32, #tpu.memory_space<vmem>>, vector<1x1x4xf32>
    %67 = vector.broadcast %66 : vector<1x1x4xf32> to vector<16x16x4xf32>
    %68 = arith.mulf %65, %67 : vector<16x16x4xf32>
    %c0_49 = arith.constant 0 : index
    %c0_50 = arith.constant 0 : index
    %c0_51 = arith.constant 0 : index
    %69 = vector.load %arg4[%c0_49, %c0_50, %c0_51] : memref<1x1x4xf32, #tpu.memory_space<vmem>>, vector<1x1x4xf32>
    %70 = vector.broadcast %69 : vector<1x1x4xf32> to vector<16x16x4xf32>
    %71 = arith.addf %68, %70 : vector<16x16x4xf32>
    %c0_52 = arith.constant 0 : index
    %c0_53 = arith.constant 0 : index
    %c0_54 = arith.constant 0 : index
    %c0_55 = arith.constant 0 : index
    %72 = vector.load %arg5[%c0_52, %c0_53, %c0_54, %c0_55] : memref<1x16x16x4xf32, #tpu.memory_space<vmem>>, vector<1x16x16x4xf32>
    %73 = vector.shape_cast %72 : vector<1x16x16x4xf32> to vector<16x16x4xf32>
    %74 = arith.addf %71, %73 : vector<16x16x4xf32>
    %cst_56 = arith.constant 0.000000e+00 : f32
    %75 = vector.broadcast %cst_56 : f32 to vector<16x16x4xf32>
    %76 = arith.maximumf %74, %75 : vector<16x16x4xf32>
    %c0_57 = arith.constant 0 : index
    %c0_58 = arith.constant 0 : index
    %c0_59 = arith.constant 0 : index
    %c0_60 = arith.constant 0 : index
    %77 = vector.load %arg6[%c0_57, %c0_58, %c0_59, %c0_60] : memref<1x16x16x4xf32, #tpu.memory_space<vmem>>, vector<1x16x16x4xf32>
    %78 = vector.shape_cast %77 : vector<1x16x16x4xf32> to vector<16x16x4xf32>
    %79 = vector.shape_cast %76 : vector<16x16x4xf32> to vector<1x16x16x4xf32>
    tpu.vector_store %arg6[%c0_57, %c0_58, %c0_59, %c0_60], %79 {strides = array<i32>} : memref<1x16x16x4xf32, #tpu.memory_space<vmem>>, vector<1x16x16x4xf32>,
    return
  }
  func.func @transform_0(%arg0: i32) -> (i32, i32, i32, i32) {
    %c0_i32 = arith.constant 0 : i32
    %c0_i32_0 = arith.constant 0 : i32
    %c0_i32_1 = arith.constant 0 : i32
    %c0_i32_2 = arith.constant 0 : i32
    return %arg0, %c0_i32, %c0_i32_0, %c0_i32_1 : i32, i32, i32, i32
  }
  func.func @transform_1(%arg0: i32) -> (i32, i32, i32, i32) {
    %c0_i32 = arith.constant 0 : i32
    %c0_i32_0 = arith.constant 0 : i32
    %c0_i32_1 = arith.constant 0 : i32
    %c0_i32_2 = arith.constant 0 : i32
    %c0_i32_3 = arith.constant 0 : i32
    return %c0_i32, %c0_i32_0, %c0_i32_1, %c0_i32_2 : i32, i32, i32, i32
  }
  func.func @transform_2(%arg0: i32) -> (i32, i32, i32) {
    %c0_i32 = arith.constant 0 : i32
    %c0_i32_0 = arith.constant 0 : i32
    %c0_i32_1 = arith.constant 0 : i32
    %c0_i32_2 = arith.constant 0 : i32
    return %c0_i32, %c0_i32_0, %c0_i32_1 : i32, i32, i32
  }
  func.func @transform_3(%arg0: i32) -> (i32, i32, i32) {
    %c0_i32 = arith.constant 0 : i32
    %c0_i32_0 = arith.constant 0 : i32
    %c0_i32_1 = arith.constant 0 : i32
    %c0_i32_2 = arith.constant 0 : i32
    return %c0_i32, %c0_i32_0, %c0_i32_1 : i32, i32, i32
  }
  func.func @transform_4(%arg0: i32) -> (i32, i32, i32, i32) {
    %c0_i32 = arith.constant 0 : i32
    %c0_i32_0 = arith.constant 0 : i32
    %c0_i32_1 = arith.constant 0 : i32
    %c0_i32_2 = arith.constant 0 : i32
    return %arg0, %c0_i32, %c0_i32_0, %c0_i32_1 : i32, i32, i32, i32
  }
  func.func @transform_5(%arg0: i32) -> (i32, i32, i32, i32) {
    %c0_i32 = arith.constant 0 : i32
    %c0_i32_0 = arith.constant 0 : i32
    %c0_i32_1 = arith.constant 0 : i32
    %c0_i32_2 = arith.constant 0 : i32
    return %arg0, %c0_i32, %c0_i32_0, %c0_i32_1 : i32, i32, i32, i32
  }
}

module attributes {stable_mosaic.version = 11 : i64} {
  func.func @_conv3x3_bn_relu_kernel(%arg0: i32, %arg1: memref<1x18x18x4xbf16, #tpu.memory_space<vmem>>, %arg2: memref<3x3x4x4xbf16, #tpu.memory_space<vmem>>, %arg3: memref<1x1x4xf32, #tpu.memory_space<vmem>>, %arg4: memref<1x1x4xf32, #tpu.memory_space<vmem>>, %arg5: memref<1x16x16x4xf32, #tpu.memory_space<vmem>>) attributes {dimension_semantics = [#tpu.dimension_semantics<parallel>], iteration_bounds = array<i64: 2>, scalar_prefetch = 0 : i64, scratch_operands = 0 : i64, tpu.core_type = #tpu.core_type<tc>, window_params = [{transform_indices = @transform_0, window_bounds = array<i64: 1, 18, 18, 4>}, {pipeline_mode = #tpu.pipeline_mode<synchronous>, transform_indices = @transform_1, window_bounds = array<i64: 3, 3, 4, 4>}, {pipeline_mode = #tpu.pipeline_mode<synchronous>, transform_indices = @transform_2, window_bounds = array<i64: 1, 1, 4>}, {pipeline_mode = #tpu.pipeline_mode<synchronous>, transform_indices = @transform_3, window_bounds = array<i64: 1, 1, 4>}, {transform_indices = @transform_4, window_bounds = array<i64: 1, 16, 16, 4>}]} {
    %c0 = arith.constant 0 : index
    %c0_0 = arith.constant 0 : index
    %c0_1 = arith.constant 0 : index
    %c0_2 = arith.constant 0 : index
    %0 = vector.load %arg1[%c0, %c0_0, %c0_1, %c0_2] : memref<1x18x18x4xbf16, #tpu.memory_space<vmem>>, vector<1x18x18x4xbf16>
    %1 = vector.shape_cast %0 : vector<1x18x18x4xbf16> to vector<18x18x4xbf16>
    %cst = arith.constant 0.000000e+00 : f32
    %2 = vector.broadcast %cst : f32 to vector<16x16x4xf32>
    %3 = vector.extract_strided_slice %1 {offsets = [0, 0, 0], sizes = [16, 16, 4], strides = [1, 1, 1]} : vector<18x18x4xbf16> to vector<16x16x4xbf16>
    %c0_3 = arith.constant 0 : index
    %c0_4 = arith.constant 0 : index
    %c0_5 = arith.constant 0 : index
    %c0_6 = arith.constant 0 : index
    %4 = vector.load %arg2[%c0_3, %c0_4, %c0_5, %c0_6] : memref<3x3x4x4xbf16, #tpu.memory_space<vmem>>, vector<1x1x4x4xbf16>
    %5 = vector.shape_cast %4 : vector<1x1x4x4xbf16> to vector<4x4xbf16>
    %6 = vector.shape_cast %5 : vector<4x4xbf16> to vector<1x4x4xbf16>
    %7 = vector.broadcast %6 : vector<1x4x4xbf16> to vector<16x4x4xbf16>
    "tpu.trace_start"() <{level = 10 : i32, message = "hwc,hcd->hwd"}> : () -> ()
    %cst_7 = arith.constant dense<0.000000e+00> : vector<16x16x4xf32>
    %8 = tpu.matmul %3, %7, %cst_7 {dimension_numbers = #tpu.dot_dimension_numbers<[2], [1], [1], [2], [0, 0, 0, 1, 1, 2], [0], [0]>} : vector<16x16x4xbf16>, vector<16x4x4xbf16>, vector<16x16x4xf32> -> vector<16x16x4xf32>
    "tpu.trace_stop"() : () -> ()
    %9 = arith.addf %2, %8 : vector<16x16x4xf32>
    %10 = vector.extract_strided_slice %1 {offsets = [0, 1, 0], sizes = [16, 16, 4], strides = [1, 1, 1]} : vector<18x18x4xbf16> to vector<16x16x4xbf16>
    %c0_8 = arith.constant 0 : index
    %c1 = arith.constant 1 : index
    %c0_9 = arith.constant 0 : index
    %c0_10 = arith.constant 0 : index
    %11 = vector.load %arg2[%c0_8, %c1, %c0_9, %c0_10] : memref<3x3x4x4xbf16, #tpu.memory_space<vmem>>, vector<1x1x4x4xbf16>
    %12 = vector.shape_cast %11 : vector<1x1x4x4xbf16> to vector<4x4xbf16>
    %13 = vector.shape_cast %12 : vector<4x4xbf16> to vector<1x4x4xbf16>
    %14 = vector.broadcast %13 : vector<1x4x4xbf16> to vector<16x4x4xbf16>
    "tpu.trace_start"() <{level = 10 : i32, message = "hwc,hcd->hwd"}> : () -> ()
    %cst_11 = arith.constant dense<0.000000e+00> : vector<16x16x4xf32>
    %15 = tpu.matmul %10, %14, %cst_11 {dimension_numbers = #tpu.dot_dimension_numbers<[2], [1], [1], [2], [0, 0, 0, 1, 1, 2], [0], [0]>} : vector<16x16x4xbf16>, vector<16x4x4xbf16>, vector<16x16x4xf32> -> vector<16x16x4xf32>
    "tpu.trace_stop"() : () -> ()
    %16 = arith.addf %9, %15 : vector<16x16x4xf32>
    %17 = vector.extract_strided_slice %1 {offsets = [0, 2, 0], sizes = [16, 16, 4], strides = [1, 1, 1]} : vector<18x18x4xbf16> to vector<16x16x4xbf16>
    %c0_12 = arith.constant 0 : index
    %c2 = arith.constant 2 : index
    %c0_13 = arith.constant 0 : index
    %c0_14 = arith.constant 0 : index
    %18 = vector.load %arg2[%c0_12, %c2, %c0_13, %c0_14] : memref<3x3x4x4xbf16, #tpu.memory_space<vmem>>, vector<1x1x4x4xbf16>
    %19 = vector.shape_cast %18 : vector<1x1x4x4xbf16> to vector<4x4xbf16>
    %20 = vector.shape_cast %19 : vector<4x4xbf16> to vector<1x4x4xbf16>
    %21 = vector.broadcast %20 : vector<1x4x4xbf16> to vector<16x4x4xbf16>
    "tpu.trace_start"() <{level = 10 : i32, message = "hwc,hcd->hwd"}> : () -> ()
    %cst_15 = arith.constant dense<0.000000e+00> : vector<16x16x4xf32>
    %22 = tpu.matmul %17, %21, %cst_15 {dimension_numbers = #tpu.dot_dimension_numbers<[2], [1], [1], [2], [0, 0, 0, 1, 1, 2], [0], [0]>} : vector<16x16x4xbf16>, vector<16x4x4xbf16>, vector<16x16x4xf32> -> vector<16x16x4xf32>
    "tpu.trace_stop"() : () -> ()
    %23 = arith.addf %16, %22 : vector<16x16x4xf32>
    %24 = vector.extract_strided_slice %1 {offsets = [1, 0, 0], sizes = [16, 16, 4], strides = [1, 1, 1]} : vector<18x18x4xbf16> to vector<16x16x4xbf16>
    %c1_16 = arith.constant 1 : index
    %c0_17 = arith.constant 0 : index
    %c0_18 = arith.constant 0 : index
    %c0_19 = arith.constant 0 : index
    %25 = vector.load %arg2[%c1_16, %c0_17, %c0_18, %c0_19] : memref<3x3x4x4xbf16, #tpu.memory_space<vmem>>, vector<1x1x4x4xbf16>
    %26 = vector.shape_cast %25 : vector<1x1x4x4xbf16> to vector<4x4xbf16>
    %27 = vector.shape_cast %26 : vector<4x4xbf16> to vector<1x4x4xbf16>
    %28 = vector.broadcast %27 : vector<1x4x4xbf16> to vector<16x4x4xbf16>
    "tpu.trace_start"() <{level = 10 : i32, message = "hwc,hcd->hwd"}> : () -> ()
    %cst_20 = arith.constant dense<0.000000e+00> : vector<16x16x4xf32>
    %29 = tpu.matmul %24, %28, %cst_20 {dimension_numbers = #tpu.dot_dimension_numbers<[2], [1], [1], [2], [0, 0, 0, 1, 1, 2], [0], [0]>} : vector<16x16x4xbf16>, vector<16x4x4xbf16>, vector<16x16x4xf32> -> vector<16x16x4xf32>
    "tpu.trace_stop"() : () -> ()
    %30 = arith.addf %23, %29 : vector<16x16x4xf32>
    %31 = vector.extract_strided_slice %1 {offsets = [1, 1, 0], sizes = [16, 16, 4], strides = [1, 1, 1]} : vector<18x18x4xbf16> to vector<16x16x4xbf16>
    %c1_21 = arith.constant 1 : index
    %c1_22 = arith.constant 1 : index
    %c0_23 = arith.constant 0 : index
    %c0_24 = arith.constant 0 : index
    %32 = vector.load %arg2[%c1_21, %c1_22, %c0_23, %c0_24] : memref<3x3x4x4xbf16, #tpu.memory_space<vmem>>, vector<1x1x4x4xbf16>
    %33 = vector.shape_cast %32 : vector<1x1x4x4xbf16> to vector<4x4xbf16>
    %34 = vector.shape_cast %33 : vector<4x4xbf16> to vector<1x4x4xbf16>
    %35 = vector.broadcast %34 : vector<1x4x4xbf16> to vector<16x4x4xbf16>
    "tpu.trace_start"() <{level = 10 : i32, message = "hwc,hcd->hwd"}> : () -> ()
    %cst_25 = arith.constant dense<0.000000e+00> : vector<16x16x4xf32>
    %36 = tpu.matmul %31, %35, %cst_25 {dimension_numbers = #tpu.dot_dimension_numbers<[2], [1], [1], [2], [0, 0, 0, 1, 1, 2], [0], [0]>} : vector<16x16x4xbf16>, vector<16x4x4xbf16>, vector<16x16x4xf32> -> vector<16x16x4xf32>
    "tpu.trace_stop"() : () -> ()
    %37 = arith.addf %30, %36 : vector<16x16x4xf32>
    %38 = vector.extract_strided_slice %1 {offsets = [1, 2, 0], sizes = [16, 16, 4], strides = [1, 1, 1]} : vector<18x18x4xbf16> to vector<16x16x4xbf16>
    %c1_26 = arith.constant 1 : index
    %c2_27 = arith.constant 2 : index
    %c0_28 = arith.constant 0 : index
    %c0_29 = arith.constant 0 : index
    %39 = vector.load %arg2[%c1_26, %c2_27, %c0_28, %c0_29] : memref<3x3x4x4xbf16, #tpu.memory_space<vmem>>, vector<1x1x4x4xbf16>
    %40 = vector.shape_cast %39 : vector<1x1x4x4xbf16> to vector<4x4xbf16>
    %41 = vector.shape_cast %40 : vector<4x4xbf16> to vector<1x4x4xbf16>
    %42 = vector.broadcast %41 : vector<1x4x4xbf16> to vector<16x4x4xbf16>
    "tpu.trace_start"() <{level = 10 : i32, message = "hwc,hcd->hwd"}> : () -> ()
    %cst_30 = arith.constant dense<0.000000e+00> : vector<16x16x4xf32>
    %43 = tpu.matmul %38, %42, %cst_30 {dimension_numbers = #tpu.dot_dimension_numbers<[2], [1], [1], [2], [0, 0, 0, 1, 1, 2], [0], [0]>} : vector<16x16x4xbf16>, vector<16x4x4xbf16>, vector<16x16x4xf32> -> vector<16x16x4xf32>
    "tpu.trace_stop"() : () -> ()
    %44 = arith.addf %37, %43 : vector<16x16x4xf32>
    %45 = vector.extract_strided_slice %1 {offsets = [2, 0, 0], sizes = [16, 16, 4], strides = [1, 1, 1]} : vector<18x18x4xbf16> to vector<16x16x4xbf16>
    %c2_31 = arith.constant 2 : index
    %c0_32 = arith.constant 0 : index
    %c0_33 = arith.constant 0 : index
    %c0_34 = arith.constant 0 : index
    %46 = vector.load %arg2[%c2_31, %c0_32, %c0_33, %c0_34] : memref<3x3x4x4xbf16, #tpu.memory_space<vmem>>, vector<1x1x4x4xbf16>
    %47 = vector.shape_cast %46 : vector<1x1x4x4xbf16> to vector<4x4xbf16>
    %48 = vector.shape_cast %47 : vector<4x4xbf16> to vector<1x4x4xbf16>
    %49 = vector.broadcast %48 : vector<1x4x4xbf16> to vector<16x4x4xbf16>
    "tpu.trace_start"() <{level = 10 : i32, message = "hwc,hcd->hwd"}> : () -> ()
    %cst_35 = arith.constant dense<0.000000e+00> : vector<16x16x4xf32>
    %50 = tpu.matmul %45, %49, %cst_35 {dimension_numbers = #tpu.dot_dimension_numbers<[2], [1], [1], [2], [0, 0, 0, 1, 1, 2], [0], [0]>} : vector<16x16x4xbf16>, vector<16x4x4xbf16>, vector<16x16x4xf32> -> vector<16x16x4xf32>
    "tpu.trace_stop"() : () -> ()
    %51 = arith.addf %44, %50 : vector<16x16x4xf32>
    %52 = vector.extract_strided_slice %1 {offsets = [2, 1, 0], sizes = [16, 16, 4], strides = [1, 1, 1]} : vector<18x18x4xbf16> to vector<16x16x4xbf16>
    %c2_36 = arith.constant 2 : index
    %c1_37 = arith.constant 1 : index
    %c0_38 = arith.constant 0 : index
    %c0_39 = arith.constant 0 : index
    %53 = vector.load %arg2[%c2_36, %c1_37, %c0_38, %c0_39] : memref<3x3x4x4xbf16, #tpu.memory_space<vmem>>, vector<1x1x4x4xbf16>
    %54 = vector.shape_cast %53 : vector<1x1x4x4xbf16> to vector<4x4xbf16>
    %55 = vector.shape_cast %54 : vector<4x4xbf16> to vector<1x4x4xbf16>
    %56 = vector.broadcast %55 : vector<1x4x4xbf16> to vector<16x4x4xbf16>
    "tpu.trace_start"() <{level = 10 : i32, message = "hwc,hcd->hwd"}> : () -> ()
    %cst_40 = arith.constant dense<0.000000e+00> : vector<16x16x4xf32>
    %57 = tpu.matmul %52, %56, %cst_40 {dimension_numbers = #tpu.dot_dimension_numbers<[2], [1], [1], [2], [0, 0, 0, 1, 1, 2], [0], [0]>} : vector<16x16x4xbf16>, vector<16x4x4xbf16>, vector<16x16x4xf32> -> vector<16x16x4xf32>
    "tpu.trace_stop"() : () -> ()
    %58 = arith.addf %51, %57 : vector<16x16x4xf32>
    %59 = vector.extract_strided_slice %1 {offsets = [2, 2, 0], sizes = [16, 16, 4], strides = [1, 1, 1]} : vector<18x18x4xbf16> to vector<16x16x4xbf16>
    %c2_41 = arith.constant 2 : index
    %c2_42 = arith.constant 2 : index
    %c0_43 = arith.constant 0 : index
    %c0_44 = arith.constant 0 : index
    %60 = vector.load %arg2[%c2_41, %c2_42, %c0_43, %c0_44] : memref<3x3x4x4xbf16, #tpu.memory_space<vmem>>, vector<1x1x4x4xbf16>
    %61 = vector.shape_cast %60 : vector<1x1x4x4xbf16> to vector<4x4xbf16>
    %62 = vector.shape_cast %61 : vector<4x4xbf16> to vector<1x4x4xbf16>
    %63 = vector.broadcast %62 : vector<1x4x4xbf16> to vector<16x4x4xbf16>
    "tpu.trace_start"() <{level = 10 : i32, message = "hwc,hcd->hwd"}> : () -> ()
    %cst_45 = arith.constant dense<0.000000e+00> : vector<16x16x4xf32>
    %64 = tpu.matmul %59, %63, %cst_45 {dimension_numbers = #tpu.dot_dimension_numbers<[2], [1], [1], [2], [0, 0, 0, 1, 1, 2], [0], [0]>} : vector<16x16x4xbf16>, vector<16x4x4xbf16>, vector<16x16x4xf32> -> vector<16x16x4xf32>
    "tpu.trace_stop"() : () -> ()
    %65 = arith.addf %58, %64 : vector<16x16x4xf32>
    %c0_46 = arith.constant 0 : index
    %c0_47 = arith.constant 0 : index
    %c0_48 = arith.constant 0 : index
    %66 = vector.load %arg3[%c0_46, %c0_47, %c0_48] : memref<1x1x4xf32, #tpu.memory_space<vmem>>, vector<1x1x4xf32>
    %67 = vector.broadcast %66 : vector<1x1x4xf32> to vector<16x16x4xf32>
    %68 = arith.mulf %65, %67 : vector<16x16x4xf32>
    %c0_49 = arith.constant 0 : index
    %c0_50 = arith.constant 0 : index
    %c0_51 = arith.constant 0 : index
    %69 = vector.load %arg4[%c0_49, %c0_50, %c0_51] : memref<1x1x4xf32, #tpu.memory_space<vmem>>, vector<1x1x4xf32>
    %70 = vector.broadcast %69 : vector<1x1x4xf32> to vector<16x16x4xf32>
    %71 = arith.addf %68, %70 : vector<16x16x4xf32>
    %cst_52 = arith.constant 0.000000e+00 : f32
    %72 = vector.broadcast %cst_52 : f32 to vector<16x16x4xf32>
    %73 = arith.maximumf %71, %72 : vector<16x16x4xf32>
    %c0_53 = arith.constant 0 : index
    %c0_54 = arith.constant 0 : index
    %c0_55 = arith.constant 0 : index
    %c0_56 = arith.constant 0 : index
    %74 = vector.load %arg5[%c0_53, %c0_54, %c0_55, %c0_56] : memref<1x16x16x4xf32, #tpu.memory_space<vmem>>, vector<1x16x16x4xf32>
    %75 = vector.shape_cast %74 : vector<1x16x16x4xf32> to vector<16x16x4xf32>
    %76 = vector.shape_cast %73 : vector<16x16x4xf32> to vector<1x16x16x4xf32>
    tpu.vector_store %arg5[%c0_53, %c0_54, %c0_55, %c0_56], %76 {strides = array<i32>} : memref<1x16x16x4xf32, #tpu.memory_space<vmem>>, vector<1x16x16x4xf32>,
    return
  }
  func.func @transform_0(%arg0: i32) -> (i32, i32, i32, i32) {
    %c0_i32 = arith.constant 0 : i32
    %c0_i32_0 = arith.constant 0 : i32
    %c0_i32_1 = arith.constant 0 : i32
    %c0_i32_2 = arith.constant 0 : i32
    return %arg0, %c0_i32, %c0_i32_0, %c0_i32_1 : i32, i32, i32, i32
  }
  func.func @transform_1(%arg0: i32) -> (i32, i32, i32, i32) {
    %c0_i32 = arith.constant 0 : i32
    %c0_i32_0 = arith.constant 0 : i32
    %c0_i32_1 = arith.constant 0 : i32
    %c0_i32_2 = arith.constant 0 : i32
    %c0_i32_3 = arith.constant 0 : i32
    return %c0_i32, %c0_i32_0, %c0_i32_1, %c0_i32_2 : i32, i32, i32, i32
  }
  func.func @transform_2(%arg0: i32) -> (i32, i32, i32) {
    %c0_i32 = arith.constant 0 : i32
    %c0_i32_0 = arith.constant 0 : i32
    %c0_i32_1 = arith.constant 0 : i32
    %c0_i32_2 = arith.constant 0 : i32
    return %c0_i32, %c0_i32_0, %c0_i32_1 : i32, i32, i32
  }
  func.func @transform_3(%arg0: i32) -> (i32, i32, i32) {
    %c0_i32 = arith.constant 0 : i32
    %c0_i32_0 = arith.constant 0 : i32
    %c0_i32_1 = arith.constant 0 : i32
    %c0_i32_2 = arith.constant 0 : i32
    return %c0_i32, %c0_i32_0, %c0_i32_1 : i32, i32, i32
  }
  func.func @transform_4(%arg0: i32) -> (i32, i32, i32, i32) {
    %c0_i32 = arith.constant 0 : i32
    %c0_i32_0 = arith.constant 0 : i32
    %c0_i32_1 = arith.constant 0 : i32
    %c0_i32_2 = arith.constant 0 : i32
    return %arg0, %c0_i32, %c0_i32_0, %c0_i32_1 : i32, i32, i32, i32
  }
}

</mosaic_0001>

<bundles_post_ra>
// kernel: basic_block_forward.2
= control target key start
LH: loop header
LB: loop body
LE: loop exit
PB: predicated region body
PF: predicated region fallthrough
CT: control target
= control target key end

     0   :  { %s3601_s15 = smov 0   ;;  %s5282_s0 = inlined_call_operand.vmem [shape: bf16[2,18,18,4], index: 0, kind: input, shape index: {}]   ;;  %s5283_s1 = inlined_call_operand.vmem [shape: bf16[3,3,4,4], index: 1, kind: input, shape index: {}]   ;;  %s5284_s2 = inlined_call_operand.vmem [shape: f32[1,1,4], index: 2, kind: input, shape index: {}]   ;;  %s5285_s3 = inlined_call_operand.vmem [shape: f32[1,1,4], index: 3, kind: input, shape index: {}]   ;;  %s5286_s4 = inlined_call_operand.vmem [shape: f32[2,16,16,4], index: 4, kind: output, shape index: {}]  }
   0x1 LB: > { %s3290_s16 = sadd.s32 4294967295, %s3574_s15   ;;  %p3294_p0 = scmp.ge.s32.totalorder %s3574_s15, 1  ;;  %s3574_s15 = sphi %s3601_s15, %s14_s15  }
   0x2   : > { %p162_p1 = scmp.lt.s32.totalorder %s3574_s15, 3 }
   0x4   : > { %p163_p2 = pnand %p3294_p0, %p162_p1 }
   0x6   : > { %166 = sbr.rel (%p163_p2) target bundleno = 740 (0x2e4), region = 36 }
   0xb   : > { %v3298_v0 = vld [vmem:[%s5283_s1 + $0x2] sm:$0x3]  ;;  %vm281_vm0 = vcmask 1041408   ;;  %p188_p3 = scmp.lt.s32.totalorder %s3290_s16, 1  ;;  %vm264_vm1 = vsmask.f32 7424 }
   0xc   : > { %v3613_v1 = vsel %vm281_vm0, %v3298_v0, 0  ;;  %vm277_vm2 = vcmask 31744   ;;  %vm1115_vm3 = vcmask 1046528  }
   0xd   : > { %292 = vmatpush.bf16.msra.mxu0 %v3613_v1  ;;  %329 = vmatpush.bf16.msra.mxu1 %v3613_v1  ;;  %s5401_s16 = smov (!%p188_p3, %s3290_s16), 1 }
   0xe   : > { %366 = vmatpush.bf16.msra.mxu2 %v3613_v1  ;;  %403 = vmatpush.bf16.msra.mxu3 %v3613_v1  ;;  %s3543_s19 = smul.u32 216, %s5401_s16 }
  0x10   : > { %s3629_s22 = scalar_lea.vmem %s5282_s0, %s3543_s19  ;;  %s3524_s19 = sshll.u32 %s5401_s16, 8 }
  0x11   : > { %440 = vmatpush.bf16.msrb.mxu0 %v3613_v1  ;;  %477 = vmatpush.bf16.msrb.mxu1 %v3613_v1  ;;  %v3632_v2 = vld [vmem:[%s3629_s22] sm:$0xff]  ;;  %v201_v3 = vld [vmem:[%s3629_s22 + $0x8] sm:$0x1]  ;;  %v3636_v4 = vld [vmem:[%s3629_s22 + $0xc] sm:$0xff] }
  0x12   : > { %514 = vmatpush.bf16.msrb.mxu2 %v3613_v1  ;;  %551 = vmatpush.bf16.msrb.mxu3 %v3613_v1  ;;  %v261_v5 = vunpack.c.l.b16 %v201_v3  ;;  %v204_v6 = vld [vmem:[%s3629_s22 + $0x14] sm:$0x1]  ;;  %v3640_v7 = vld [vmem:[%s3629_s22 + $0x18] sm:$0xff]  ;;  %v207_v8 = vld [vmem:[%s3629_s22 + $0x20] sm:$0x1]  ;;  %v266_v9 = vshrl.u32 %v3632_v2, 16 }
  0x13   : > { %v268_v10 = vshll.u32 %v3632_v2, 16  ;;  %v304_v11 = vunpack.c.l.b16 %v204_v6  ;;  %v308_v12 = vshrl.u32 %v3636_v4, 16  ;;  %v210_v13 = vld [vmem:[%s3629_s22 + $0x2c] sm:$0x1]  ;;  %v310_v15 = vshll.u32 %v3636_v4, 16  ;;  %v3652_v18 = vld [vmem:[%s3629_s22 + $0x24] sm:$0xff] }
  0x14   : > { %v3647_v14 = vpack.c.b16 %v261_v5, %v261_v5  ;;  %v341_v16 = vunpack.c.l.b16 %v207_v8  ;;  %v345_v17 = vshrl.u32 %v3640_v7, 16  ;;  %v347_v21 = vshll.u32 %v3640_v7, 16  ;;  %v213_v27 = vld [vmem:[%s3629_s22 + $0x38] sm:$0x1]  ;;  %v3666_v32 = vld [vmem:[%s3629_s22 + $0x30] sm:$0xff]  ;;  %v3672_v41 = vld [vmem:[%s3629_s22 + $0x3c] sm:$0xff] }
  0x15   : > { %v270_v19 = vrot.slane %v268_v10, 1  ;;  %v3654_v20 = vpack.c.b16 %v304_v11, %v304_v11  ;;  %v378_v22 = vunpack.c.l.b16 %v210_v13  ;;  %v312_v24 = vrot.slane %v310_v15, 1  ;;  %v216_v42 = vld [vmem:[%s3629_s22 + $0x44] sm:$0x1]  ;;  %v3677_v46 = vld [vmem:[%s3629_s22 + $0x48] sm:$0xff]  ;;  %v3697_v57 = vld [vmem:[%s3629_s22 + $0x54] sm:$0xff] }
  0x16   : > { %v273_v23 = vshll.u32 %v3647_v14, 16  ;;  %v3658_v25 = vpack.c.b16 %v341_v16, %v341_v16  ;;  %v382_v26 = vshrl.u32 %v3652_v18, 16  ;;  %v349_v30 = vrot.slane %v347_v21, 1  ;;  %v219_v47 = vld [vmem:[%s3629_s22 + $0x50] sm:$0x1] }
  0x17   : > { %v271_v28 = vor.u32 %v270_v19, %v266_v9  ;;  %v315_v29 = vshll.u32 %v3654_v20, 16  ;;  %v3663_v31 = vpack.c.b16 %v378_v22, %v378_v22  ;;  %v313_v34 = vor.u32 %v312_v24, %v308_v12  ;;  %v222_v58 = vld [vmem:[%s3629_s22 + $0x5c] sm:$0x1] }
  0x18   : > { %v275_v33 = vrot.slane %v273_v23, 1  ;;  %v352_v35 = vshll.u32 %v3658_v25, 16  ;;  %v384_v36 = vshll.u32 %v3652_v18, 16  ;;  %v350_v38 = vor.u32 %v349_v30, %v345_v17  ;;  %v3727_v30 = vld [vmem:[%s3629_s22 + $0x60] sm:$0xff] }
  0x19   : > { %v317_v37 = vrot.slane %v315_v29, 1  ;;  %v389_v39 = vshll.u32 %v3663_v31, 16  ;;  %v415_v40 = vunpack.c.l.b16 %v213_v27  ;;  %v421_v50 = vshll.u32 %v3666_v32, 16  ;;  %v228_v29 = vld [vmem:[%s3629_s22 + $0x74] sm:$0x1] }
  0x1a   : > { %v276_v43 = vsel %vm264_vm1, %v271_v28, %v275_v33  ;;  %v354_v44 = vrot.slane %v352_v35, 1  ;;  %v386_v45 = vrot.slane %v384_v36, 1  ;;  %v452_v54 = vunpack.c.l.b16 %v216_v42  ;;  %v231_v33 = vld [vmem:[%s3629_s22 + $0x80] sm:$0x1]  ;;  %v234_v42 = vld [vmem:[%s3629_s22 + $0x8c] sm:$0x1] }
  0x1b   : > { %3303 = vmatmul.msk.bf16.vlgmr.msra.gmra.mxu0 %vm277_vm2, %v276_v43  ;;  %v3682_v48 = vsel %vm264_vm1, %v313_v34, %v317_v37  ;;  %v391_v49 = vrot.slane %v389_v39, 1  ;;  %v3690_v53 = vpack.c.b16 %v415_v40, %v415_v40  ;;  %v458_v55 = vshll.u32 %v3672_v41, 16  ;;  %v3737_v39 = vld [vmem:[%s3629_s22 + $0x6c] sm:$0xff] }
  0x1c   : > { %3308 = vmatmul.msk.bf16.vlgmr.msra.gmra.mxu1 %vm277_vm2, %v3682_v48  ;;  %v3688_v51 = vsel %vm264_vm1, %v350_v38, %v354_v44  ;;  %v387_v52 = vor.u32 %v386_v45, %v382_v26  ;;  %588 = vmatpush.bf16.msra.mxu0 %v3613_v1  ;;  %v489_v56 = vunpack.c.l.b16 %v219_v47  ;;  %v3704_v60 = vpack.c.b16 %v452_v54, %v452_v54  ;;  %v225_v26 = vld [vmem:[%s3629_s22 + $0x68] sm:$0x1]  ;;  %v3744_v44 = vld [vmem:[%s3629_s22 + $0x78] sm:$0xff] }
  0x1d   : > { %3313 = vmatmul.msk.bf16.vlgmr.msra.gmra.mxu2 %vm277_vm2, %v3688_v51  ;;  %625 = vmatpush.bf16.msra.mxu1 %v3613_v1  ;;  %v495_v61 = vshll.u32 %v3677_v46, 16  ;;  %v419_v62 = vshrl.u32 %v3666_v32, 16  ;;  %v423_v63 = vrot.slane %v421_v50, 1  ;;  %v426_v3 = vshll.u32 %v3690_v53, 16 }
  0x1e   : > { %v3702_v59 = vsel %vm264_vm1, %v387_v52, %v391_v49  ;;  %662 = vmatpush.bf16.msra.mxu2 %v3613_v1  ;;  %v3711_v0 = vpack.c.b16 %v489_v56, %v489_v56  ;;  %v526_v5 = vunpack.c.l.b16 %v222_v58  ;;  %v456_v6 = vshrl.u32 %v3672_v41, 16  ;;  %v3757_v52 = vld [vmem:[%s3629_s22 + $0x84] sm:$0xff] }
  0x1f   : > { %3318 = vmatmul.msk.bf16.vlgmr.msra.gmra.mxu3 %vm277_vm2, %v3702_v59  ;;  %v460_v8 = vrot.slane %v458_v55, 1  ;;  %v463_v9 = vshll.u32 %v3704_v60, 16  ;;  %v532_v10 = vshll.u32 %v3697_v57, 16  ;;  %v493_v11 = vshrl.u32 %v3677_v46, 16 }
  0x20   : > { %699 = vmatpush.bf16.msra.mxu3 %v3613_v1  ;;  %v497_v12 = vrot.slane %v495_v61, 1  ;;  %v500_v13 = vshll.u32 %v3711_v0, 16  ;;  %v3720_v15 = vpack.c.b16 %v526_v5, %v526_v5  ;;  %v424_v16 = vor.u32 %v423_v63, %v419_v62 }
  0x21   : > { %v428_v17 = vrot.slane %v426_v3, 1  ;;  %v530_v19 = vshrl.u32 %v3697_v57, 16  ;;  %v534_v21 = vrot.slane %v532_v10, 1  ;;  %v461_v23 = vor.u32 %v460_v8, %v456_v6 }
  0x22   : > { %v537_v22 = vshll.u32 %v3720_v15, 16  ;;  %v465_v24 = vrot.slane %v463_v9, 1  ;;  %v498_v27 = vor.u32 %v497_v12, %v493_v11  ;;  %v502_v28 = vrot.slane %v500_v13, 1 }
  0x23   : > { %v3731_v34 = vsel %vm264_vm1, %v424_v16, %v428_v17  ;;  %v535_v35 = vor.u32 %v534_v21, %v530_v19  ;;  %v563_v37 = vunpack.c.l.b16 %v225_v26  ;;  %v600_v40 = vunpack.c.l.b16 %v228_v29  ;;  %v253_v29 = vld [vmem:[%s5283_s1] sm:$0x3] }
  0x24   : > { %v539_v36 = vrot.slane %v537_v22, 1  ;;  %v3734_v38 = vsel %vm264_vm1, %v461_v23, %v465_v24  ;;  %v3741_v43 = vsel %vm264_vm1, %v498_v27, %v502_v28  ;;  %v637_v45 = vunpack.c.l.b16 %v231_v33  ;;  %v237_v24 = vld [vmem:[%s3629_s22 + $0x98] sm:$0x1]  ;;  %v240_v28 = vld [vmem:[%s3629_s22 + $0xa4] sm:$0x1]  ;;  %v3790_v33 = vld [vmem:[%s3629_s22 + $0x90] sm:$0xff] }
  0x25   : > { %v569_v47 = vshll.u32 %v3727_v30, 16  ;;  %v3754_v50 = vpack.c.b16 %v563_v37, %v563_v37  ;;  %v674_v54 = vunpack.c.l.b16 %v234_v42  ;;  %v3762_v55 = vpack.c.b16 %v600_v40, %v600_v40 }
  0x26   : > { %v3752_v49 = vsel %vm264_vm1, %v535_v35, %v539_v36  ;;  %v606_v56 = vshll.u32 %v3737_v39, 16  ;;  %v3766_v58 = vpack.c.b16 %v637_v45, %v637_v45  ;;  %v643_v61 = vshll.u32 %v3744_v44, 16  ;;  %v243_v35 = vld [vmem:[%s3629_s22 + $0xb0] sm:$0x1] }
  0x27   : > { %v567_v62 = vshrl.u32 %v3727_v30, 16  ;;  %v571_v63 = vrot.slane %v569_v47, 1  ;;  %v574_v3 = vshll.u32 %v3754_v50, 16  ;;  %v3774_v5 = vpack.c.b16 %v674_v54, %v674_v54  ;;  %v3800_v47 = vld [vmem:[%s3629_s22 + $0x9c] sm:$0xff] }
  0x28   : > { %v680_v6 = vshll.u32 %v3757_v52, 16  ;;  %v604_v8 = vshrl.u32 %v3737_v39, 16  ;;  %v608_v9 = vrot.slane %v606_v56, 1  ;;  %v611_v10 = vshll.u32 %v3762_v55, 16  ;;  %v246_v56 = vld [vmem:[%s3629_s22 + $0xbc] sm:$0x1] }
  0x29   : > { %v641_v11 = vshrl.u32 %v3744_v44, 16  ;;  %v645_v12 = vrot.slane %v643_v61, 1  ;;  %v648_v13 = vshll.u32 %v3766_v58, 16  ;;  %v572_v16 = vor.u32 %v571_v63, %v567_v62  ;;  %v3810_v63 = vld [vmem:[%s3629_s22 + $0xa8] sm:$0xff] }
  0x2a   : > { %v576_v17 = vrot.slane %v574_v3, 1  ;;  %v678_v19 = vshrl.u32 %v3757_v52, 16  ;;  %v682_v21 = vrot.slane %v680_v6, 1  ;;  %v609_v22 = vor.u32 %v608_v9, %v604_v8 }
  0x2b   : > { %3323 = vmatmul.msk.bf16.vlgmr.msrb.gmra.mxu0 %vm277_vm2, %v3731_v34  ;;  %v613_v23 = vrot.slane %v611_v10, 1  ;;  %v646_v26 = vor.u32 %v645_v12, %v641_v11  ;;  %v650_v27 = vrot.slane %v648_v13, 1  ;;  %v711_v42 = vunpack.c.l.b16 %v237_v24  ;;  %v3823_v10 = vld [vmem:[%s3629_s22 + $0xb4] sm:$0xff] }
  0x2c   : > { %3328 = vmatmul.msk.bf16.vlgmr.msrb.gmra.mxu1 %vm277_vm2, %v3734_v38  ;;  %736 = vmatpush.bf16.msrb.mxu0 %v3613_v1  ;;  %v3794_v36 = vsel %vm264_vm1, %v572_v16, %v576_v17  ;;  %v683_v37 = vor.u32 %v682_v21, %v678_v19  ;;  %v748_v54 = vunpack.c.l.b16 %v240_v28  ;;  %v3804_v61 = vsel %vm281_vm0, %v253_v29, 0 }
  0x2d   : > { %3333 = vmatmul.msk.bf16.vlgmr.msrb.gmra.mxu2 %vm277_vm2, %v3741_v43  ;;  %773 = vmatpush.bf16.msrb.mxu1 %v3613_v1  ;;  %v3797_v45 = vsel %vm264_vm1, %v609_v22, %v613_v23  ;;  %v3807_v62 = vsel %vm264_vm1, %v646_v26, %v650_v27  ;;  %v785_v3 = vunpack.c.l.b16 %v243_v35  ;;  %v717_v6 = vshll.u32 %v3790_v33, 16 }
  0x2e   : > { %810 = vmatpush.bf16.msrb.mxu2 %v3613_v1  ;;  %5331 = vst [vmem:[#allocation2_spill] sm:$0xff] %v3797_v45  ;;  %v3820_v9 = vpack.c.b16 %v711_v42, %v711_v42  ;;  %v822_v11 = vunpack.c.l.b16 %v246_v56  ;;  %v3828_v12 = vpack.c.b16 %v748_v54, %v748_v54  ;;  %v754_v13 = vshll.u32 %v3800_v47, 16 }
  0x2f   : > { %3338 = vmatmul.msk.bf16.vlgmr.msrb.gmra.mxu3 %vm277_vm2, %v3752_v49  ;;  %5332 = vst [vmem:[#allocation3_spill] sm:$0xff] %v3807_v62  ;;  %v3832_v16 = vpack.c.b16 %v785_v3, %v785_v3  ;;  %v791_v17 = vshll.u32 %v3810_v63, 16  ;;  %v715_v19 = vshrl.u32 %v3790_v33, 16  ;;  %v719_v21 = vrot.slane %v717_v6, 1 }
  0x30   : > { %847 = vmatpush.bf16.msrb.mxu3 %v3613_v1  ;;  %v685_v1 = vshll.u32 %v3774_v5, 16  ;;  %v3840_v22 = vpack.c.b16 %v822_v11, %v822_v11  ;;  %v828_v23 = vshll.u32 %v3823_v10, 16  ;;  %v752_v24 = vshrl.u32 %v3800_v47, 16 }
  0x31   : > { %v756_v26 = vrot.slane %v754_v13, 1  ;;  %v759_v27 = vshll.u32 %v3828_v12, 16  ;;  %v789_v28 = vshrl.u32 %v3810_v63, 16  ;;  %v793_v29 = vrot.slane %v791_v17, 1 }
  0x32   : > { %v687_v40 = vrot.slane %v685_v1, 1  ;;  %v722_v1 = vshll.u32 %v3820_v9, 16  ;;  %v796_v35 = vshll.u32 %v3832_v16, 16  ;;  %v826_v42 = vshrl.u32 %v3823_v10, 16 }
  0x33   : > { %v830_v54 = vrot.slane %v828_v23, 1  ;;  %v833_v56 = vshll.u32 %v3840_v22, 16  ;;  %v757_v3 = vor.u32 %v756_v26, %v752_v24  ;;  %v761_v6 = vrot.slane %v759_v27, 1 }
  0x34   : > { %v3818_v8 = vsel %vm264_vm1, %v683_v37, %v687_v40  ;;  %v720_v37 = vor.u32 %v719_v21, %v715_v19  ;;  %v724_v40 = vrot.slane %v722_v1, 1  ;;  %v794_v11 = vor.u32 %v793_v29, %v789_v28 }
  0x35   : > { %5333 = vst [vmem:[#allocation4_spill] sm:$0xff] %v3818_v8  ;;  %v3854_v17 = vsel %vm264_vm1, %v757_v3, %v761_v6  ;;  %v1139_v1 = vrot.slane %v3636_v4, 1  ;;  %v1140_v23 = vrot.slane %v3654_v20, 1  ;;  %v1159_v24 = vrot.slane %v3640_v7, 1 }
  0x36   : > { %v3851_v13 = vsel %vm264_vm1, %v720_v37, %v724_v40  ;;  %5335 = vst [vmem:[#allocation6_spill] sm:$0xff] %v3854_v17  ;;  %v1160_v26 = vrot.slane %v3658_v25, 1  ;;  %v1179_v29 = vrot.slane %v3652_v18, 1  ;;  %v1219_v3 = vrot.slane %v3672_v41, 1 }
  0x37   : > { %5334 = vst [vmem:[#allocation5_spill] sm:$0xff] %v3851_v13  ;;  %v1220_v6 = vrot.slane %v3704_v60, 1 }
  0x38   : > { %v3945_v37 = vsel %vm1115_vm3, %v1159_v24, %v1160_v26  ;;  %v1260_v24 = vrot.slane %v3720_v15, 1 }
  0x39   : > { %5339 = vst [vmem:[#allocation10_spill] sm:$0xff] %v3945_v37  ;;  %v3987_v26 = vsel %vm1115_vm3, %v1219_v3, %v1220_v6  ;;  %v1280_v3 = vrot.slane %v3754_v50, 1  ;;  %v1299_v6 = vrot.slane %v3737_v39, 1  ;;  %v1339_v50 = vrot.slane %v3757_v52, 1 }
  0x3a   : > { %5342 = vst [vmem:[#allocation13_spill] sm:$0xff] %v3987_v26 }
  0x3b   : > { %3343 = vmatmul.msk.bf16.vlgmr.msra.gmra.mxu0 %vm277_vm2, %v3794_v36 }
  0x3c   : > { %3348 = vmatmul.msk.bf16.vlgmr.msra.gmra.mxu1 %vm277_vm2, %v3797_v45  ;;  %866 = vmatpush.bf16.msra.mxu0 %v3804_v61  ;;  %v835_v45 = vrot.slane %v833_v56, 1  ;;  %v1200_v56 = vrot.slane %v3690_v53, 1 }
  0x3d   : > { %3353 = vmatmul.msk.bf16.vlgmr.msra.gmra.mxu2 %vm277_vm2, %v3807_v62  ;;  %882 = vmatpush.bf16.msra.mxu1 %v3804_v61  ;;  %v831_v62 = vor.u32 %v830_v54, %v826_v42  ;;  %v1199_v54 = vrot.slane %v3666_v32, 1 }
  0x3e   : > { %898 = vmatpush.bf16.msra.mxu2 %v3804_v61 }
  0x3f   : > { %3358 = vmatmul.msk.bf16.vlgmr.msra.gmra.mxu3 %vm277_vm2, %v3818_v8  ;;  %v798_v8 = vrot.slane %v796_v35, 1  ;;  %v3864_v21 = vsel %vm264_vm1, %v831_v62, %v835_v45  ;;  %v3395_v45 = vld [vmem:[%s5283_s1 + $0x4] sm:$0x3]  ;;  %v1180_v35 = vrot.slane %v3663_v31, 1 }
  0x40   : > { %914 = vmatpush.bf16.msra.mxu3 %v3804_v61  ;;  %5337 = vst [vmem:[#allocation8_spill] sm:$0xff] %v3864_v21  ;;  %v3902_v62 = vsel %vm281_vm0, %v3395_v45, 0  ;;  %v1240_v45 = vrot.slane %v3711_v0, 1 }
  0x41   : > { %v3857_v19 = vsel %vm264_vm1, %v794_v11, %v798_v8  ;;  %v1117_v8 = vrot.slane %v3647_v14, 1  ;;  %v3942_v14 = vsel %vm1115_vm3, %v1139_v1, %v1140_v23  ;;  %v3951_v20 = vsel %vm1115_vm3, %v1179_v29, %v1180_v35 }
  0x42   : > { %5336 = vst [vmem:[#allocation7_spill] sm:$0xff] %v3857_v19  ;;  %v1239_v11 = vrot.slane %v3677_v46, 1  ;;  %v3980_v1 = vsel %vm1115_vm3, %v1199_v54, %v1200_v56  ;;  %v1259_v23 = vrot.slane %v3697_v57, 1  ;;  %v1279_v56 = vrot.slane %v3727_v30, 1 }
  0x43   : > { %5338 = vst [vmem:[#allocation9_spill] sm:$0xff] %v3942_v14 }
  0x44   : > { %5340 = vst [vmem:[#allocation11_spill] sm:$0xff] %v3951_v20  ;;  %v3992_v0 = vsel %vm1115_vm3, %v1239_v11, %v1240_v45  ;;  %v1300_v11 = vrot.slane %v3762_v55, 1  ;;  %v1319_v45 = vrot.slane %v3744_v44, 1 }
  0x45   : > { %5341 = vst [vmem:[#allocation12_spill] sm:$0xff] %v3980_v1 }
  0x46   : > { %5343 = vst [vmem:[#allocation14_spill] sm:$0xff] %v3992_v0 }
  0x4b   : > { %3363 = vmatmul.msk.bf16.vlgmr.msrb.gmra.mxu0 %vm277_vm2, %v3851_v13 }
  0x4c   : > { %3368 = vmatmul.msk.bf16.vlgmr.msrb.gmra.mxu1 %vm277_vm2, %v3854_v17  ;;  %930 = vmatpush.bf16.msrb.mxu0 %v3804_v61 }
  0x4d   : > { %3373 = vmatmul.msk.bf16.vlgmr.msrb.gmra.mxu2 %vm277_vm2, %v3857_v19  ;;  %946 = vmatpush.bf16.msrb.mxu1 %v3804_v61 }
  0x4e   : > { %962 = vmatpush.bf16.msrb.mxu2 %v3804_v61 }
  0x4f   : > { %3378 = vmatmul.msk.bf16.vlgmr.msrb.gmra.mxu3 %vm277_vm2, %v3864_v21  ;;  %v1420_v21 = vrot.slane %v3840_v22, 1 }
  0x50   : > { %978 = vmatpush.bf16.msrb.mxu3 %v3804_v61 }
  0x5b   : > { %3379 = vmatmul.msk.bf16.vlgmr.msra.gmra.mxu0 %vm277_vm2, %v3632_v2 }
  0x5c   : > { %3380 = vmatmul.msk.bf16.vlgmr.msra.gmra.mxu1 %vm277_vm2, %v3636_v4  ;;  %994 = vmatpush.bf16.msra.mxu0 %v3804_v61 }
  0x5d   : > { %3381 = vmatmul.msk.bf16.vlgmr.msra.gmra.mxu2 %vm277_vm2, %v3640_v7  ;;  %1010 = vmatpush.bf16.msra.mxu1 %v3804_v61 }
  0x5e   : > { %1026 = vmatpush.bf16.msra.mxu2 %v3804_v61 }
  0x5f   : > { %3382 = vmatmul.msk.bf16.vlgmr.msra.gmra.mxu3 %vm277_vm2, %v3652_v18 }
  0x60   : > { %1042 = vmatpush.bf16.msra.mxu3 %v3804_v61 }
  0x6b   : > { %3383 = vmatmul.msk.bf16.vlgmr.msrb.gmra.mxu0 %vm277_vm2, %v3666_v32 }
  0x6c   : > { %3384 = vmatmul.msk.bf16.vlgmr.msrb.gmra.mxu1 %vm277_vm2, %v3672_v41  ;;  %1058 = vmatpush.bf16.msrb.mxu0 %v3804_v61 }
  0x6d   : > { %3385 = vmatmul.msk.bf16.vlgmr.msrb.gmra.mxu2 %vm277_vm2, %v3677_v46  ;;  %1074 = vmatpush.bf16.msrb.mxu1 %v3804_v61 }
  0x6e   : > { %1090 = vmatpush.bf16.msrb.mxu2 %v3804_v61 }
  0x6f   : > { %3386 = vmatmul.msk.bf16.vlgmr.msrb.gmra.mxu3 %vm277_vm2, %v3697_v57 }
  0x70   : > { %1106 = vmatpush.bf16.msrb.mxu3 %v3804_v61  ;;  %v1116_v61 = vrot.slane %v3632_v2, 1 }
  0x72   : > { %v1118_v28 = vsel %vm1115_vm3, %v1116_v61, %v1117_v8 }
  0x7b   : > { %3387 = vmatmul.msk.bf16.vlgmr.msra.gmra.mxu0 %vm277_vm2, %v3727_v30 }
  0x7c   : > { %3388 = vmatmul.msk.bf16.vlgmr.msra.gmra.mxu1 %vm277_vm2, %v3737_v39  ;;  %1132 = vmatpush.bf16.msra.mxu0 %v3902_v62 }
  0x7d   : > { %3389 = vmatmul.msk.bf16.vlgmr.msra.gmra.mxu2 %vm277_vm2, %v3744_v44  ;;  %1152 = vmatpush.bf16.msra.mxu1 %v3902_v62 }
  0x7e   : > { %1172 = vmatpush.bf16.msra.mxu2 %v3902_v62 }
  0x7f   : > { %3390 = vmatmul.msk.bf16.vlgmr.msra.gmra.mxu3 %vm277_vm2, %v3757_v52 }
  0x80   : > { %1192 = vmatpush.bf16.msra.mxu3 %v3902_v62 }
  0x8b   : > { %3391 = vmatmul.msk.bf16.vlgmr.msrb.gmra.mxu0 %vm277_vm2, %v3790_v33 }
  0x8c   : > { %3392 = vmatmul.msk.bf16.vlgmr.msrb.gmra.mxu1 %vm277_vm2, %v3800_v47  ;;  %1212 = vmatpush.bf16.msrb.mxu0 %v3902_v62 }
  0x8d   : > { %3393 = vmatmul.msk.bf16.vlgmr.msrb.gmra.mxu2 %vm277_vm2, %v3810_v63  ;;  %1232 = vmatpush.bf16.msrb.mxu1 %v3902_v62 }
  0x8e   : > { %1252 = vmatpush.bf16.msrb.mxu2 %v3902_v62 }
  0x8f   : > { %3394 = vmatmul.msk.bf16.vlgmr.msrb.gmra.mxu3 %vm277_vm2, %v3823_v10 }
  0x90   : > { %1272 = vmatpush.bf16.msrb.mxu3 %v3902_v62 }
  0x98   : > { %v3934_v27 = vpop.f32.mrf.mxu0 }
  0x99   : > { %v3939_v2 = vpop.f32.mrf.mxu1 }
  0x9b   : > { %3396 = vmatmul.msk.bf16.vlgmr.msra.gmra.mxu0 %vm277_vm2, %v1118_v28  ;;  %v3999_v28 = vsel %vm1115_vm3, %v1259_v23, %v1260_v24  ;;  %v1320_v23 = vrot.slane %v3766_v58, 1 }
  0x9c   : > { %3397 = vmatmul.msk.bf16.vlgmr.msra.gmra.mxu1 %vm277_vm2, %v3942_v14  ;;  %1292 = vmatpush.bf16.msra.mxu0 %v3902_v62  ;;  %5344 = vst [vmem:[#allocation15_spill] sm:$0xff] %v3999_v28  ;;  %v1419_v14 = vrot.slane %v3823_v10, 1 }
  0x9d   : > { %3398 = vmatmul.msk.bf16.vlgmr.msra.gmra.mxu2 %vm277_vm2, %v3945_v37  ;;  %1312 = vmatpush.bf16.msra.mxu1 %v3902_v62  ;;  %v4046_v37 = vsel %vm1115_vm3, %v1319_v45, %v1320_v23  ;;  %v1360_v45 = vrot.slane %v3820_v9, 1  ;;  %v1379_v23 = vrot.slane %v3800_v47, 1 }
  0x9e   : > { %1332 = vmatpush.bf16.msra.mxu2 %v3902_v62  ;;  %5347 = vst [vmem:[#allocation18_spill] sm:$0xff] %v4046_v37 }
  0x9f   : > { %3399 = vmatmul.msk.bf16.vlgmr.msra.gmra.mxu3 %vm277_vm2, %v3951_v20 }
  0xa0   : > { %v3960_v25 = vpop.f32.mrf.mxu2  ;;  %v3962_v31 = vpop.f32.mrf.mxu0  ;;  %1352 = vmatpush.bf16.msra.mxu3 %v3902_v62 }
  0xa1   : > { %v3965_v40 = vpop.f32.mrf.mxu1 }
  0xa2   : > { %v3967_v42 = vpop.f32.mrf.mxu3 }
  0xa8   : > { %v3975_v61 = vpop.f32.mrf.mxu2  ;;  %v3977_v8 = vpop.f32.mrf.mxu0 }
  0xa9   : > { %v3984_v53 = vpop.f32.mrf.mxu1 }
  0xaa   : > { %v3989_v60 = vpop.f32.mrf.mxu3 }
  0xab   : > { %3400 = vmatmul.msk.bf16.vlgmr.msrb.gmra.mxu0 %vm277_vm2, %v3980_v1  ;;  %v4038_v1 = vsel %vm1115_vm3, %v1299_v6, %v1300_v11  ;;  %v1359_v11 = vrot.slane %v3790_v33, 1 }
  0xac   : > { %3401 = vmatmul.msk.bf16.vlgmr.msrb.gmra.mxu1 %vm277_vm2, %v3987_v26  ;;  %1372 = vmatpush.bf16.msrb.mxu0 %v3902_v62  ;;  %v1340_v26 = vrot.slane %v3774_v5, 1  ;;  %5346 = vst [vmem:[#allocation17_spill] sm:$0xff] %v4038_v1 }
  0xad   : > { %3402 = vmatmul.msk.bf16.vlgmr.msrb.gmra.mxu2 %vm277_vm2, %v3992_v0  ;;  %1392 = vmatpush.bf16.msrb.mxu1 %v3902_v62  ;;  %v4031_v0 = vsel %vm1115_vm3, %v1279_v56, %v1280_v3 }
  0xae   : > { %1412 = vmatpush.bf16.msrb.mxu2 %v3902_v62  ;;  %5345 = vst [vmem:[#allocation16_spill] sm:$0xff] %v4031_v0  ;;  %v4053_v5 = vsel %vm1115_vm3, %v1339_v50, %v1340_v26  ;;  %v1399_v50 = vrot.slane %v3810_v63, 1 }
  0xaf   : > { %3403 = vmatmul.msk.bf16.vlgmr.msrb.gmra.mxu3 %vm277_vm2, %v3999_v28  ;;  %5348 = vst [vmem:[#allocation19_spill] sm:$0xff] %v4053_v5 }
  0xb0   : > { %v4008_v15 = vpop.f32.mrf.mxu2  ;;  %v4010_v29 = vpop.f32.mrf.mxu0  ;;  %1432 = vmatpush.bf16.msrb.mxu3 %v3902_v62  ;;  %v3412_v62 = vld [vmem:[%s5283_s1 + $0x6] sm:$0x3] }
  0xb1   : > { %v4013_v35 = vpop.f32.mrf.mxu1  ;;  %v4041_v58 = vsel %vm281_vm0, %v3412_v62, 0  ;;  %v1380_v62 = vrot.slane %v3828_v12, 1 }
  0xb2   : > { %v4015_v54 = vpop.f32.mrf.mxu3 }
  0xb3   : > { %v4089_v19 = vsel %vm1115_vm3, %v1379_v23, %v1380_v62 }
  0xb4   : > { %5350 = vst [vmem:[#allocation21_spill] sm:$0xff] %v4089_v19 }
  0xb8   : > { %v4026_v24 = vpop.f32.mrf.mxu2  ;;  %v4028_v28 = vpop.f32.mrf.mxu0 }
  0xb9   : > { %v4035_v55 = vpop.f32.mrf.mxu1 }
  0xba   : > { %v4043_v20 = vpop.f32.mrf.mxu3 }
  0xbb   : > { %3404 = vmatmul.msk.bf16.vlgmr.msra.gmra.mxu0 %vm277_vm2, %v4031_v0  ;;  %v4082_v0 = vsel %vm1115_vm3, %v1359_v11, %v1360_v45  ;;  %v4101_v11 = vsel %vm1115_vm3, %v1419_v14, %v1420_v21 }
  0xbc   : > { %3405 = vmatmul.msk.bf16.vlgmr.msra.gmra.mxu1 %vm277_vm2, %v4038_v1  ;;  %1483 = vmatpush.bf16.msra.mxu0 %v4041_v58  ;;  %5349 = vst [vmem:[#allocation20_spill] sm:$0xff] %v4082_v0 }
  0xbd   : > { %3406 = vmatmul.msk.bf16.vlgmr.msra.gmra.mxu2 %vm277_vm2, %v4046_v37  ;;  %1497 = vmatpush.bf16.msra.mxu1 %v4041_v58  ;;  %5352 = vst [vmem:[#allocation23_spill] sm:$0xff] %v4101_v11 }
  0xbe   : > { %1511 = vmatpush.bf16.msra.mxu2 %v4041_v58 }
  0xbf   : > { %3407 = vmatmul.msk.bf16.vlgmr.msra.gmra.mxu3 %vm277_vm2, %v4053_v5  ;;  %v1400_v5 = vrot.slane %v3832_v16, 1 }
  0xc0   : > { %v4062_v56 = vpop.f32.mrf.mxu2  ;;  %v4064_v3 = vpop.f32.mrf.mxu0  ;;  %1525 = vmatpush.bf16.msra.mxu3 %v4041_v58 }
  0xc1   : > { %v4067_v26 = vpop.f32.mrf.mxu1  ;;  %v4094_v16 = vsel %vm1115_vm3, %v1399_v50, %v1400_v5 }
  0xc2   : > { %v4069_v6 = vpop.f32.mrf.mxu3  ;;  %5351 = vst [vmem:[#allocation22_spill] sm:$0xff] %v4094_v16 }
  0xc8   : > { %v4077_v37 = vpop.f32.mrf.mxu2  ;;  %v4079_v1 = vpop.f32.mrf.mxu0 }
  0xc9   : > { %v4086_v9 = vpop.f32.mrf.mxu1 }
  0xca   : > { %v4091_v12 = vpop.f32.mrf.mxu3 }
  0xcb   : > { %3408 = vmatmul.msk.bf16.vlgmr.msrb.gmra.mxu0 %vm277_vm2, %v4082_v0 }
  0xcc   : > { %3409 = vmatmul.msk.bf16.vlgmr.msrb.gmra.mxu1 %vm277_vm2, %v4089_v19  ;;  %1539 = vmatpush.bf16.msrb.mxu0 %v4041_v58 }
  0xcd   : > { %3410 = vmatmul.msk.bf16.vlgmr.msrb.gmra.mxu2 %vm277_vm2, %v4094_v16  ;;  %1553 = vmatpush.bf16.msrb.mxu1 %v4041_v58 }
  0xce   : > { %1567 = vmatpush.bf16.msrb.mxu2 %v4041_v58 }
  0xcf   : > { %3411 = vmatmul.msk.bf16.vlgmr.msrb.gmra.mxu3 %vm277_vm2, %v4101_v11 }
  0xd0   : > { %v4110_v22 = vpop.f32.mrf.mxu2  ;;  %v4112_v5 = vpop.f32.mrf.mxu0  ;;  %1581 = vmatpush.bf16.msrb.mxu3 %v4041_v58 }
  0xd1   : > { %v4115_v21 = vpop.f32.mrf.mxu1 }
  0xd2   : > { %v4117_v14 = vpop.f32.mrf.mxu3 }
  0xd8   : > { %v4119_v45 = vpop.f32.mrf.mxu2  ;;  %v868_v23 = vpop.f32.mrf.mxu0 }
  0xd9   : > { %v4122_v62 = vadd.f32 %v868_v23, %v3934_v27  ;;  %v884_v50 = vpop.f32.mrf.mxu1 }
  0xda   : > { %v4124_v16 = vpop.f32.mrf.mxu3  ;;  %v4127_v11 = vadd.f32 %v884_v50, %v3939_v2 }
  0xdb   : > { %3413 = vmatmul.msk.bf16.vlgmr.msra.gmra.mxu0 %vm277_vm2, %v3636_v4 }
  0xdc   : > { %3414 = vmatmul.msk.bf16.vlgmr.msra.gmra.mxu1 %vm277_vm2, %v3640_v7  ;;  %1595 = vmatpush.bf16.msra.mxu0 %v4041_v58 }
  0xdd   : > { %3415 = vmatmul.msk.bf16.vlgmr.msra.gmra.mxu2 %vm277_vm2, %v3652_v18  ;;  %1609 = vmatpush.bf16.msra.mxu1 %v4041_v58 }
  0xde   : > { %1623 = vmatpush.bf16.msra.mxu2 %v4041_v58 }
  0xdf   : > { %3416 = vmatmul.msk.bf16.vlgmr.msra.gmra.mxu3 %vm277_vm2, %v3666_v32 }
  0xe0   : > { %v900_v27 = vpop.f32.mrf.mxu2  ;;  %v870_v2 = vpop.f32.mrf.mxu0  ;;  %1637 = vmatpush.bf16.msra.mxu3 %v4041_v58 }
  0xe1   : > { %v4142_v4 = vadd.f32 %v900_v27, %v3960_v25  ;;  %v4145_v7 = vadd.f32 %v870_v2, %v3962_v31  ;;  %v886_v23 = vpop.f32.mrf.mxu1 }
  0xe2   : > { %v916_v50 = vpop.f32.mrf.mxu3  ;;  %v4148_v18 = vadd.f32 %v886_v23, %v3965_v40 }
  0xe3   : > { %v4151_v19 = vadd.f32 %v916_v50, %v3967_v42 }
  0xe8   : > { %v902_v0 = vpop.f32.mrf.mxu2  ;;  %v932_v32 = vpop.f32.mrf.mxu0 }
  0xe9   : > { %v4154_v17 = vadd.f32 %v902_v0, %v3975_v61  ;;  %v4157_v13 = vadd.f32 %v932_v32, %v3977_v8  ;;  %v948_v25 = vpop.f32.mrf.mxu1 }
  0xea   : > { %v918_v27 = vpop.f32.mrf.mxu3  ;;  %v4160_v31 = vadd.f32 %v948_v25, %v3984_v53 }
  0xeb   : > { %v4163_v2 = vadd.f32 %v918_v27, %v3989_v60  ;;  %3417 = vmatmul.msk.bf16.vlgmr.msrb.gmra.mxu0 %vm277_vm2, %v3672_v41 }
  0xec   : > { %3418 = vmatmul.msk.bf16.vlgmr.msrb.gmra.mxu1 %vm277_vm2, %v3677_v46  ;;  %1651 = vmatpush.bf16.msrb.mxu0 %v4041_v58 }
  0xed   : > { %3419 = vmatmul.msk.bf16.vlgmr.msrb.gmra.mxu2 %vm277_vm2, %v3697_v57  ;;  %1665 = vmatpush.bf16.msrb.mxu1 %v4041_v58 }
  0xee   : > { %1679 = vmatpush.bf16.msrb.mxu2 %v4041_v58 }
  0xef   : > { %3420 = vmatmul.msk.bf16.vlgmr.msrb.gmra.mxu3 %vm277_vm2, %v3727_v30  ;;  %v3433_v30 = vld [vmem:[%s5283_s1 + $0x8] sm:$0x3] }
  0xf0   : > { %v964_v40 = vpop.f32.mrf.mxu2  ;;  %v934_v42 = vpop.f32.mrf.mxu0  ;;  %1701 = vmatpush.bf16.msrb.mxu3 %v4041_v58  ;;  %v4199_v23 = vsel %vm281_vm0, %v3433_v30, 0 }
  0xf1   : > { %v4178_v41 = vadd.f32 %v964_v40, %v4008_v15  ;;  %v4181_v46 = vadd.f32 %v934_v42, %v4010_v29  ;;  %v950_v61 = vpop.f32.mrf.mxu1 }
  0xf2   : > { %v980_v8 = vpop.f32.mrf.mxu3  ;;  %v4184_v57 = vadd.f32 %v950_v61, %v4013_v35 }
  0xf3   : > { %v4187_v53 = vadd.f32 %v980_v8, %v4015_v54 }
  0xf8   : > { %v966_v60 = vpop.f32.mrf.mxu2  ;;  %v996_v0 = vpop.f32.mrf.mxu0 }
  0xf9   : > { %v4193_v15 = vadd.f32 %v966_v60, %v4026_v24  ;;  %v4196_v29 = vadd.f32 %v996_v0, %v4028_v28  ;;  %v1012_v58 = vpop.f32.mrf.mxu1 }
  0xfa   : > { %v982_v35 = vpop.f32.mrf.mxu3  ;;  %v4202_v54 = vadd.f32 %v1012_v58, %v4035_v55 }
  0xfb   : > { %v4205_v50 = vadd.f32 %v982_v35, %v4043_v20  ;;  %3421 = vmatmul.msk.bf16.vlgmr.msra.gmra.mxu0 %vm277_vm2, %v3737_v39 }
  0xfc   : > { %3422 = vmatmul.msk.bf16.vlgmr.msra.gmra.mxu1 %vm277_vm2, %v3744_v44  ;;  %1752 = vmatpush.bf16.msra.mxu0 %v4199_v23 }
  0xfd   : > { %3423 = vmatmul.msk.bf16.vlgmr.msra.gmra.mxu2 %vm277_vm2, %v3757_v52  ;;  %1766 = vmatpush.bf16.msra.mxu1 %v4199_v23 }
  0xfe   : > { %1780 = vmatpush.bf16.msra.mxu2 %v4199_v23 }
  0xff   : > { %3424 = vmatmul.msk.bf16.vlgmr.msra.gmra.mxu3 %vm277_vm2, %v3790_v33 }
 0x100   : > { %v1028_v20 = vpop.f32.mrf.mxu2  ;;  %v998_v28 = vpop.f32.mrf.mxu0  ;;  %1794 = vmatpush.bf16.msra.mxu3 %v4199_v23 }
 0x101   : > { %v4220_v39 = vadd.f32 %v1028_v20, %v4062_v56  ;;  %v4223_v44 = vadd.f32 %v998_v28, %v4064_v3  ;;  %v1014_v24 = vpop.f32.mrf.mxu1 }
 0x102   : > { %v1044_v52 = vpop.f32.mrf.mxu3  ;;  %v4226_v55 = vadd.f32 %v1014_v24, %v4067_v26  ;;  %v4246_v26 = vld [vmem:[%s3629_s22 + $0xc0] sm:$0xff] }
 0x103   : > { %v4229_v32 = vadd.f32 %v1044_v52, %v4069_v6 }
 0x108   : > { %v1030_v33 = vpop.f32.mrf.mxu2  ;;  %v1060_v25 = vpop.f32.mrf.mxu0 }
 0x109   : > { %v4232_v27 = vadd.f32 %v1030_v33, %v4077_v37  ;;  %v4235_v40 = vadd.f32 %v1060_v25, %v4079_v1  ;;  %v1076_v56 = vpop.f32.mrf.mxu1 }
 0x10a   : > { %v1046_v42 = vpop.f32.mrf.mxu3  ;;  %v4238_v3 = vadd.f32 %v1076_v56, %v4086_v9 }
 0x10b   : > { %v4241_v61 = vadd.f32 %v1046_v42, %v4091_v12  ;;  %3425 = vmatmul.msk.bf16.vlgmr.msrb.gmra.mxu0 %vm277_vm2, %v3800_v47 }
 0x10c   : > { %3426 = vmatmul.msk.bf16.vlgmr.msrb.gmra.mxu1 %vm277_vm2, %v3810_v63  ;;  %1808 = vmatpush.bf16.msrb.mxu0 %v4199_v23 }
 0x10d   : > { %3427 = vmatmul.msk.bf16.vlgmr.msrb.gmra.mxu2 %vm277_vm2, %v3823_v10  ;;  %1822 = vmatpush.bf16.msrb.mxu1 %v4199_v23 }
 0x10e   : > { %1836 = vmatpush.bf16.msrb.mxu2 %v4199_v23 }
 0x10f   : > { %3432 = vmatmul.msk.bf16.vlgmr.msrb.gmra.mxu3 %vm277_vm2, %v4246_v26 }
 0x110   : > { %v1092_v37 = vpop.f32.mrf.mxu2  ;;  %v1062_v1 = vpop.f32.mrf.mxu0  ;;  %1850 = vmatpush.bf16.msrb.mxu3 %v4199_v23 }
 0x111   : > { %v4259_v47 = vadd.f32 %v1092_v37, %v4110_v22  ;;  %v4262_v63 = vadd.f32 %v1062_v1, %v4112_v5  ;;  %v1078_v6 = vpop.f32.mrf.mxu1  ;;  %v3450_v1 = vld [vmem:[%s5283_s1 + $0xa] sm:$0x3] }
 0x112   : > { %v1108_v9 = vpop.f32.mrf.mxu3  ;;  %v4265_v10 = vadd.f32 %v1078_v6, %v4115_v21 }
 0x113   : > { %v4268_v12 = vadd.f32 %v1108_v9, %v4117_v14 }
 0x118   : > { %v1094_v8 = vpop.f32.mrf.mxu2  ;;  %v1134_v30 = vpop.f32.mrf.mxu0 }
 0x119   : > { %v4271_v60 = vadd.f32 %v1094_v8, %v4119_v45  ;;  %v4274_v0 = vadd.f32 %v1134_v30, %v4122_v62  ;;  %v1154_v22 = vpop.f32.mrf.mxu1  ;;  %v249_v8 = vld [vmem:[%s3629_s22 + $0xc8] sm:$0x1] }
 0x11a   : > { %v1110_v58 = vpop.f32.mrf.mxu3  ;;  %v4277_v5 = vadd.f32 %v1154_v22, %v4127_v11 }
 0x11b   : > { %v4280_v35 = vadd.f32 %v1110_v58, %v4124_v16  ;;  %3434 = vmatmul.msk.bf16.vlgmr.msra.gmra.mxu0 %vm277_vm2, %v3682_v48  ;;  %v5353_v58 = vld [vmem:[#allocation2_spill] sm:$0xff] }
 0x11c   : > { %3435 = vmatmul.msk.bf16.vlgmr.msra.gmra.mxu1 %vm277_vm2, %v3688_v51  ;;  %1864 = vmatpush.bf16.msra.mxu0 %v4199_v23 }
 0x11d   : > { %3436 = vmatmul.msk.bf16.vlgmr.msra.gmra.mxu2 %vm277_vm2, %v3702_v59  ;;  %1878 = vmatpush.bf16.msra.mxu1 %v4199_v23 }
 0x11e   : > { %1892 = vmatpush.bf16.msra.mxu2 %v4199_v23 }
 0x11f   : > { %3437 = vmatmul.msk.bf16.vlgmr.msra.gmra.mxu3 %vm277_vm2, %v3731_v34 }
 0x120   : > { %v1174_v16 = vpop.f32.mrf.mxu2  ;;  %v1136_v11 = vpop.f32.mrf.mxu0  ;;  %1906 = vmatpush.bf16.msra.mxu3 %v4199_v23 }
 0x121   : > { %v4295_v48 = vadd.f32 %v1174_v16, %v4142_v4  ;;  %v4298_v21 = vadd.f32 %v1136_v11, %v4145_v7  ;;  %v1156_v14 = vpop.f32.mrf.mxu1  ;;  %v5355_v16 = vld [vmem:[#allocation4_spill] sm:$0xff] }
 0x122   : > { %v1194_v45 = vpop.f32.mrf.mxu3  ;;  %v4301_v62 = vadd.f32 %v1156_v14, %v4148_v18 }
 0x123   : > { %v4304_v20 = vadd.f32 %v1194_v45, %v4151_v19  ;;  %v1960_v45 = vshll.u32 %v4246_v26, 16 }
 0x128   : > { %v1176_v28 = vpop.f32.mrf.mxu2  ;;  %v1214_v24 = vpop.f32.mrf.mxu0 }
 0x129   : > { %v4307_v52 = vadd.f32 %v1176_v28, %v4154_v17  ;;  %v4310_v33 = vadd.f32 %v1214_v24, %v4157_v13  ;;  %v1234_v4 = vpop.f32.mrf.mxu1 }
 0x12a   : > { %v1196_v25 = vpop.f32.mrf.mxu3  ;;  %v4313_v7 = vadd.f32 %v1234_v4, %v4160_v31 }
 0x12b   : > { %v4316_v56 = vadd.f32 %v1196_v25, %v4163_v2  ;;  %3438 = vmatmul.msk.bf16.vlgmr.msrb.gmra.mxu0 %vm277_vm2, %v3734_v38 }
 0x12c   : > { %3439 = vmatmul.msk.bf16.vlgmr.msrb.gmra.mxu1 %vm277_vm2, %v3741_v43  ;;  %1920 = vmatpush.bf16.msrb.mxu0 %v4199_v23 }
 0x12d   : > { %3440 = vmatmul.msk.bf16.vlgmr.msrb.gmra.mxu2 %vm277_vm2, %v3752_v49  ;;  %1934 = vmatpush.bf16.msrb.mxu1 %v4199_v23 }
 0x12e   : > { %1948 = vmatpush.bf16.msrb.mxu2 %v4199_v23 }
 0x12f   : > { %3441 = vmatmul.msk.bf16.vlgmr.msrb.gmra.mxu3 %vm277_vm2, %v3794_v36 }
 0x130   : > { %v1254_v13 = vpop.f32.mrf.mxu2  ;;  %v1216_v17 = vpop.f32.mrf.mxu0  ;;  %1979 = vmatpush.bf16.msrb.mxu3 %v4199_v23 }
 0x131   : > { %v4331_v19 = vadd.f32 %v1254_v13, %v4178_v41  ;;  %v4334_v18 = vadd.f32 %v1216_v17, %v4181_v46  ;;  %v1236_v31 = vpop.f32.mrf.mxu1 }
 0x132   : > { %v1274_v2 = vpop.f32.mrf.mxu3  ;;  %v4337_v42 = vadd.f32 %v1236_v31, %v4184_v57  ;;  %v4353_v57 = vsel %vm281_vm0, %v3450_v1, 0  ;;  %v1958_v31 = vshrl.u32 %v4246_v26, 16 }
 0x133   : > { %v4340_v37 = vadd.f32 %v1274_v2, %v4187_v53  ;;  %v1962_v2 = vrot.slane %v1960_v45, 1 }
 0x138   : > { %v1256_v6 = vpop.f32.mrf.mxu2  ;;  %v1294_v23 = vpop.f32.mrf.mxu0 }
 0x139   : > { %v4346_v41 = vadd.f32 %v1256_v6, %v4193_v15  ;;  %v4349_v46 = vadd.f32 %v1294_v23, %v4196_v29  ;;  %v1314_v9 = vpop.f32.mrf.mxu1  ;;  %v5354_v15 = vld [vmem:[#allocation3_spill] sm:$0xff]  ;;  %v1956_v29 = vunpack.c.l.b16 %v249_v8 }
 0x13a   : > { %v1276_v30 = vpop.f32.mrf.mxu3  ;;  %v4356_v53 = vadd.f32 %v1314_v9, %v4202_v54  ;;  %v5356_v54 = vld [vmem:[#allocation5_spill] sm:$0xff] }
 0x13b   : > { %v4359_v22 = vadd.f32 %v1276_v30, %v4205_v50  ;;  %3442 = vmatmul.msk.bf16.vlgmr.msra.gmra.mxu0 %vm277_vm2, %v5353_v58  ;;  %v4372_v14 = vpack.c.b16 %v1956_v29, %v1956_v29 }
 0x13c   : > { %3443 = vmatmul.msk.bf16.vlgmr.msra.gmra.mxu1 %vm277_vm2, %v5354_v15  ;;  %2030 = vmatpush.bf16.msra.mxu0 %v4353_v57 }
 0x13d   : > { %3444 = vmatmul.msk.bf16.vlgmr.msra.gmra.mxu2 %vm277_vm2, %v5355_v16  ;;  %2044 = vmatpush.bf16.msra.mxu1 %v4353_v57  ;;  %v1965_v1 = vshll.u32 %v4372_v14, 16 }
 0x13e   : > { %2058 = vmatpush.bf16.msra.mxu2 %v4353_v57 }
 0x13f   : > { %3445 = vmatmul.msk.bf16.vlgmr.msra.gmra.mxu3 %vm277_vm2, %v5356_v54  ;;  %v1967_v9 = vrot.slane %v1965_v1, 1 }
 0x140   : > { %v1334_v50 = vpop.f32.mrf.mxu2  ;;  %v1296_v11 = vpop.f32.mrf.mxu0  ;;  %2072 = vmatpush.bf16.msra.mxu3 %v4353_v57 }
 0x141   : > { %v4377_v28 = vadd.f32 %v1334_v50, %v4220_v39  ;;  %v4380_v24 = vadd.f32 %v1296_v11, %v4223_v44  ;;  %v1316_v4 = vpop.f32.mrf.mxu1  ;;  %v1963_v39 = vor.u32 %v1962_v2, %v1958_v31  ;;  %v5357_v50 = vld [vmem:[#allocation6_spill] sm:$0xff]  ;;  %v5358_v11 = vld [vmem:[#allocation7_spill] sm:$0xff] }
 0x142   : > { %v1354_v25 = vpop.f32.mrf.mxu3  ;;  %v4383_v13 = vadd.f32 %v1316_v4, %v4226_v55 }
 0x143   : > { %v4386_v17 = vadd.f32 %v1354_v25, %v4229_v32 }
 0x148   : > { %v1336_v6 = vpop.f32.mrf.mxu2  ;;  %v1374_v23 = vpop.f32.mrf.mxu0 }
 0x149   : > { %v4391_v44 = vadd.f32 %v1336_v6, %v4232_v27  ;;  %v4394_v8 = vadd.f32 %v1374_v23, %v4235_v40  ;;  %v1394_v55 = vpop.f32.mrf.mxu1  ;;  %v4407_v27 = vsel %vm264_vm1, %v1963_v39, %v1967_v9  ;;  %v5359_v40 = vld [vmem:[#allocation8_spill] sm:$0xff] }
 0x14a   : > { %v1356_v30 = vpop.f32.mrf.mxu3  ;;  %v4397_v32 = vadd.f32 %v1394_v55, %v4238_v3 }
 0x14b   : > { %v4400_v29 = vadd.f32 %v1356_v30, %v4241_v61  ;;  %3446 = vmatmul.msk.bf16.vlgmr.msrb.gmra.mxu0 %vm277_vm2, %v5357_v50 }
 0x14c   : > { %3447 = vmatmul.msk.bf16.vlgmr.msrb.gmra.mxu1 %vm277_vm2, %v5358_v11  ;;  %2086 = vmatpush.bf16.msrb.mxu0 %v4353_v57 }
 0x14d   : > { %3448 = vmatmul.msk.bf16.vlgmr.msrb.gmra.mxu2 %vm277_vm2, %v5359_v40  ;;  %2100 = vmatpush.bf16.msrb.mxu1 %v4353_v57 }
 0x14e   : > { %2114 = vmatpush.bf16.msrb.mxu2 %v4353_v57 }
 0x14f   : > { %3449 = vmatmul.msk.bf16.vlgmr.msrb.gmra.mxu3 %vm277_vm2, %v4407_v27 }
 0x150   : > { %v1414_v3 = vpop.f32.mrf.mxu2  ;;  %v1376_v61 = vpop.f32.mrf.mxu0  ;;  %2128 = vmatpush.bf16.msrb.mxu3 %v4353_v57 }
 0x151   : > { %v4418_v45 = vadd.f32 %v1414_v3, %v4259_v47  ;;  %v4421_v4 = vadd.f32 %v1376_v61, %v4262_v63  ;;  %v1396_v25 = vpop.f32.mrf.mxu1 }
 0x152   : > { %v1434_v31 = vpop.f32.mrf.mxu3  ;;  %v4424_v2 = vadd.f32 %v1396_v25, %v4265_v10  ;;  %v5360_v10 = vld [vmem:[#allocation9_spill] sm:$0xff] }
 0x153   : > { %v4427_v1 = vadd.f32 %v1434_v31, %v4268_v12  ;;  %v5361_v12 = vld [vmem:[#allocation10_spill] sm:$0xff] }
 0x158   : > { %v1416_v6 = vpop.f32.mrf.mxu2  ;;  %v1485_v23 = vpop.f32.mrf.mxu0 }
 0x159   : > { %v4430_v39 = vadd.f32 %v1416_v6, %v4271_v60  ;;  %v4433_v9 = vadd.f32 %v1485_v23, %v4274_v0  ;;  %v1499_v47 = vpop.f32.mrf.mxu1  ;;  %v5362_v60 = vld [vmem:[#allocation11_spill] sm:$0xff]  ;;  %v5363_v0 = vld [vmem:[#allocation12_spill] sm:$0xff] }
 0x15a   : > { %v1436_v55 = vpop.f32.mrf.mxu3  ;;  %v4436_v63 = vadd.f32 %v1499_v47, %v4277_v5 }
 0x15b   : > { %v4439_v30 = vadd.f32 %v1436_v55, %v4280_v35  ;;  %3451 = vmatmul.msk.bf16.vlgmr.msra.gmra.mxu0 %vm277_vm2, %v5360_v10 }
 0x15c   : > { %3452 = vmatmul.msk.bf16.vlgmr.msra.gmra.mxu1 %vm277_vm2, %v5361_v12  ;;  %2142 = vmatpush.bf16.msra.mxu0 %v4353_v57 }
 0x15d   : > { %3453 = vmatmul.msk.bf16.vlgmr.msra.gmra.mxu2 %vm277_vm2, %v5362_v60  ;;  %2156 = vmatpush.bf16.msra.mxu1 %v4353_v57 }
 0x15e   : > { %2170 = vmatpush.bf16.msra.mxu2 %v4353_v57 }
 0x15f   : > { %3454 = vmatmul.msk.bf16.vlgmr.msra.gmra.mxu3 %vm277_vm2, %v5363_v0 }
 0x160   : > { %v1513_v5 = vpop.f32.mrf.mxu2  ;;  %v1487_v35 = vpop.f32.mrf.mxu0  ;;  %2184 = vmatpush.bf16.msra.mxu3 %v4353_v57 }
 0x161   : > { %v4454_v3 = vadd.f32 %v1513_v5, %v4295_v48  ;;  %v4457_v61 = vadd.f32 %v1487_v35, %v4298_v21  ;;  %v1501_v25 = vpop.f32.mrf.mxu1 }
 0x162   : > { %v1527_v31 = vpop.f32.mrf.mxu3  ;;  %v4460_v6 = vadd.f32 %v1501_v25, %v4301_v62  ;;  %v5364_v62 = vld [vmem:[#allocation13_spill] sm:$0xff] }
 0x163   : > { %v4463_v23 = vadd.f32 %v1527_v31, %v4304_v20  ;;  %v5365_v20 = vld [vmem:[#allocation14_spill] sm:$0xff] }
 0x168   : > { %v1515_v47 = vpop.f32.mrf.mxu2  ;;  %v1541_v55 = vpop.f32.mrf.mxu0 }
 0x169   : > { %v4466_v10 = vadd.f32 %v1515_v47, %v4307_v52  ;;  %v4469_v0 = vadd.f32 %v1541_v55, %v4310_v33  ;;  %v1555_v48 = vpop.f32.mrf.mxu1  ;;  %v5366_v52 = vld [vmem:[#allocation15_spill] sm:$0xff]  ;;  %v5367_v33 = vld [vmem:[#allocation16_spill] sm:$0xff] }
 0x16a   : > { %v1529_v5 = vpop.f32.mrf.mxu3  ;;  %v4472_v21 = vadd.f32 %v1555_v48, %v4313_v7 }
 0x16b   : > { %v4475_v35 = vadd.f32 %v1529_v5, %v4316_v56  ;;  %3455 = vmatmul.msk.bf16.vlgmr.msrb.gmra.mxu0 %vm277_vm2, %v5364_v62  ;;  %v2234_v62 = vrot.slane %v4372_v14, 1 }
 0x16c   : > { %3456 = vmatmul.msk.bf16.vlgmr.msrb.gmra.mxu1 %vm277_vm2, %v5365_v20  ;;  %2198 = vmatpush.bf16.msrb.mxu0 %v4353_v57  ;;  %v5369_v20 = vld [vmem:[#allocation18_spill] sm:$0xff] }
 0x16d   : > { %3457 = vmatmul.msk.bf16.vlgmr.msrb.gmra.mxu2 %vm277_vm2, %v5366_v52  ;;  %2212 = vmatpush.bf16.msrb.mxu1 %v4353_v57 }
 0x16e   : > { %2226 = vmatpush.bf16.msrb.mxu2 %v4353_v57 }
 0x16f   : > { %3458 = vmatmul.msk.bf16.vlgmr.msrb.gmra.mxu3 %vm277_vm2, %v5367_v33  ;;  %v3467_v33 = vld [vmem:[%s5283_s1 + $0xc] sm:$0x3] }
 0x170   : > { %v1569_v7 = vpop.f32.mrf.mxu2  ;;  %v1543_v56 = vpop.f32.mrf.mxu0  ;;  %2246 = vmatpush.bf16.msrb.mxu3 %v4353_v57 }
 0x171   : > { %v4490_v25 = vadd.f32 %v1569_v7, %v4331_v19  ;;  %v4493_v31 = vadd.f32 %v1543_v56, %v4334_v18  ;;  %v1557_v47 = vpop.f32.mrf.mxu1  ;;  %v4511_v56 = vsel %vm281_vm0, %v3467_v33, 0 }
 0x172   : > { %v1583_v55 = vpop.f32.mrf.mxu3  ;;  %v4496_v48 = vadd.f32 %v1557_v47, %v4337_v42 }
 0x173   : > { %v4499_v5 = vadd.f32 %v1583_v55, %v4340_v37  ;;  %v5368_v55 = vld [vmem:[#allocation17_spill] sm:$0xff] }
 0x178   : > { %v1571_v52 = vpop.f32.mrf.mxu2  ;;  %v1597_v57 = vpop.f32.mrf.mxu0 }
 0x179   : > { %v4505_v19 = vadd.f32 %v1571_v52, %v4346_v41  ;;  %v4508_v18 = vadd.f32 %v1597_v57, %v4349_v46  ;;  %v1611_v7 = vpop.f32.mrf.mxu1  ;;  %v5370_v41 = vld [vmem:[#allocation19_spill] sm:$0xff]  ;;  %v5371_v46 = vld [vmem:[#allocation20_spill] sm:$0xff] }
 0x17a   : > { %v1585_v42 = vpop.f32.mrf.mxu3  ;;  %v4514_v37 = vadd.f32 %v1611_v7, %v4356_v53 }
 0x17b   : > { %v4517_v47 = vadd.f32 %v1585_v42, %v4359_v22  ;;  %3459 = vmatmul.msk.bf16.vlgmr.msra.gmra.mxu0 %vm277_vm2, %v5368_v55  ;;  %v2233_v55 = vrot.slane %v4246_v26, 1 }
 0x17c   : > { %3460 = vmatmul.msk.bf16.vlgmr.msra.gmra.mxu1 %vm277_vm2, %v5369_v20  ;;  %2297 = vmatpush.bf16.msra.mxu0 %v4511_v56 }
 0x17d   : > { %3461 = vmatmul.msk.bf16.vlgmr.msra.gmra.mxu2 %vm277_vm2, %v5370_v41  ;;  %2311 = vmatpush.bf16.msra.mxu1 %v4511_v56  ;;  %v4562_v14 = vsel %vm1115_vm3, %v2233_v55, %v2234_v62 }
 0x17e   : > { %2325 = vmatpush.bf16.msra.mxu2 %v4511_v56  ;;  %5374 = vst [vmem:[#allocation2_spill] sm:$0xff] %v4562_v14 }
 0x17f   : > { %3462 = vmatmul.msk.bf16.vlgmr.msra.gmra.mxu3 %vm277_vm2, %v5371_v46 }
 0x180   : > { %v1625_v53 = vpop.f32.mrf.mxu2  ;;  %v1599_v22 = vpop.f32.mrf.mxu0  ;;  %2339 = vmatpush.bf16.msra.mxu3 %v4511_v56 }
 0x181   : > { %v4532_v52 = vadd.f32 %v1625_v53, %v4377_v28  ;;  %v4535_v33 = vadd.f32 %v1599_v22, %v4380_v24  ;;  %v1613_v57 = vpop.f32.mrf.mxu1 }
 0x182   : > { %v1639_v7 = vpop.f32.mrf.mxu3  ;;  %v4538_v42 = vadd.f32 %v1613_v57, %v4383_v13  ;;  %v5372_v57 = vld [vmem:[#allocation21_spill] sm:$0xff] }
 0x183   : > { %v4541_v41 = vadd.f32 %v1639_v7, %v4386_v17  ;;  %v5373_v7 = vld [vmem:[#allocation22_spill] sm:$0xff] }
 0x188   : > { %v1627_v20 = vpop.f32.mrf.mxu2  ;;  %v1653_v46 = vpop.f32.mrf.mxu0 }
 0x189   : > { %v4546_v28 = vadd.f32 %v1627_v20, %v4391_v44  ;;  %v4549_v24 = vadd.f32 %v1653_v46, %v4394_v8  ;;  %v1667_v53 = vpop.f32.mrf.mxu1  ;;  %v5375_v44 = vld [vmem:[#allocation23_spill] sm:$0xff] }
 0x18a   : > { %v1641_v22 = vpop.f32.mrf.mxu3  ;;  %v4552_v13 = vadd.f32 %v1667_v53, %v4397_v32 }
 0x18b   : > { %v4555_v17 = vadd.f32 %v1641_v22, %v4400_v29  ;;  %3463 = vmatmul.msk.bf16.vlgmr.msrb.gmra.mxu0 %vm277_vm2, %v5372_v57 }
 0x18c   : > { %3464 = vmatmul.msk.bf16.vlgmr.msrb.gmra.mxu1 %vm277_vm2, %v5373_v7  ;;  %2353 = vmatpush.bf16.msrb.mxu0 %v4511_v56 }
 0x18d   : > { %3465 = vmatmul.msk.bf16.vlgmr.msrb.gmra.mxu2 %vm277_vm2, %v5375_v44  ;;  %2367 = vmatpush.bf16.msrb.mxu1 %v4511_v56 }
 0x18e   : > { %2381 = vmatpush.bf16.msrb.mxu2 %v4511_v56 }
 0x18f   : > { %3466 = vmatmul.msk.bf16.vlgmr.msrb.gmra.mxu3 %vm277_vm2, %v4562_v14 }
 0x190   : > { %v1681_v8 = vpop.f32.mrf.mxu2  ;;  %v1655_v32 = vpop.f32.mrf.mxu0  ;;  %2395 = vmatpush.bf16.msrb.mxu3 %v4511_v56 }
 0x191   : > { %v4573_v29 = vadd.f32 %v1681_v8, %v4418_v45  ;;  %v4576_v62 = vadd.f32 %v1655_v32, %v4421_v4  ;;  %v1669_v20 = vpop.f32.mrf.mxu1 }
 0x192   : > { %v1703_v55 = vpop.f32.mrf.mxu3  ;;  %v4579_v46 = vadd.f32 %v1669_v20, %v4424_v2  ;;  %v3554_v20 = vld [vmem:[%s3629_s22 + $0x18] sm:$0xff] }
 0x193   : > { %v4582_v53 = vadd.f32 %v1703_v55, %v4427_v1  ;;  %v3555_v1 = vld [vmem:[%s3629_s22 + $0x24] sm:$0xff] }
 0x198   : > { %v1683_v22 = vpop.f32.mrf.mxu2  ;;  %v1754_v14 = vpop.f32.mrf.mxu0 }
 0x199   : > { %v4585_v44 = vadd.f32 %v1683_v22, %v4430_v39  ;;  %v4588_v45 = vadd.f32 %v1754_v14, %v4433_v9  ;;  %v1768_v4 = vpop.f32.mrf.mxu1  ;;  %v3556_v39 = vld [vmem:[%s3629_s22 + $0x30] sm:$0xff]  ;;  %v3557_v9 = vld [vmem:[%s3629_s22 + $0x3c] sm:$0xff] }
 0x19a   : > { %v1705_v8 = vpop.f32.mrf.mxu3  ;;  %v4591_v32 = vadd.f32 %v1768_v4, %v4436_v63 }
 0x19b   : > { %v4594_v2 = vadd.f32 %v1705_v8, %v4439_v30  ;;  %3468 = vmatmul.msk.bf16.vlgmr.msra.gmra.mxu0 %vm277_vm2, %v3554_v20 }
 0x19c   : > { %3469 = vmatmul.msk.bf16.vlgmr.msra.gmra.mxu1 %vm277_vm2, %v3555_v1  ;;  %2409 = vmatpush.bf16.msra.mxu0 %v4511_v56 }
 0x19d   : > { %3470 = vmatmul.msk.bf16.vlgmr.msra.gmra.mxu2 %vm277_vm2, %v3556_v39  ;;  %2423 = vmatpush.bf16.msra.mxu1 %v4511_v56 }
 0x19e   : > { %2437 = vmatpush.bf16.msra.mxu2 %v4511_v56 }
 0x19f   : > { %3471 = vmatmul.msk.bf16.vlgmr.msra.gmra.mxu3 %vm277_vm2, %v3557_v9 }
 0x1a0   : > { %v1782_v63 = vpop.f32.mrf.mxu2  ;;  %v1756_v30 = vpop.f32.mrf.mxu0  ;;  %2451 = vmatpush.bf16.msra.mxu3 %v4511_v56 }
 0x1a1   : > { %v4609_v14 = vadd.f32 %v1782_v63, %v4454_v3  ;;  %v4612_v55 = vadd.f32 %v1756_v30, %v4457_v61  ;;  %v1770_v22 = vpop.f32.mrf.mxu1 }
 0x1a2   : > { %v1796_v4 = vpop.f32.mrf.mxu3  ;;  %v4615_v8 = vadd.f32 %v1770_v22, %v4460_v6  ;;  %v3558_v22 = vld [vmem:[%s3629_s22 + $0x48] sm:$0xff] }
 0x1a3   : > { %v4618_v20 = vadd.f32 %v1796_v4, %v4463_v23  ;;  %v3559_v23 = vld [vmem:[%s3629_s22 + $0x54] sm:$0xff] }
 0x1a8   : > { %v1784_v1 = vpop.f32.mrf.mxu2  ;;  %v1810_v39 = vpop.f32.mrf.mxu0 }
 0x1a9   : > { %v4621_v9 = vadd.f32 %v1784_v1, %v4466_v10  ;;  %v4624_v3 = vadd.f32 %v1810_v39, %v4469_v0  ;;  %v1824_v61 = vpop.f32.mrf.mxu1  ;;  %v3560_v10 = vld [vmem:[%s3629_s22 + $0x60] sm:$0xff]  ;;  %v3561_v0 = vld [vmem:[%s3629_s22 + $0x6c] sm:$0xff] }
 0x1aa   : > { %v1798_v63 = vpop.f32.mrf.mxu3  ;;  %v4627_v30 = vadd.f32 %v1824_v61, %v4472_v21 }
 0x1ab   : > { %v4630_v6 = vadd.f32 %v1798_v63, %v4475_v35  ;;  %3472 = vmatmul.msk.bf16.vlgmr.msrb.gmra.mxu0 %vm277_vm2, %v3558_v22 }
 0x1ac   : > { %3473 = vmatmul.msk.bf16.vlgmr.msrb.gmra.mxu1 %vm277_vm2, %v3559_v23  ;;  %2465 = vmatpush.bf16.msrb.mxu0 %v4511_v56 }
 0x1ad   : > { %3474 = vmatmul.msk.bf16.vlgmr.msrb.gmra.mxu2 %vm277_vm2, %v3560_v10  ;;  %2479 = vmatpush.bf16.msrb.mxu1 %v4511_v56 }
 0x1ae   : > { %2493 = vmatpush.bf16.msrb.mxu2 %v4511_v56 }
 0x1af   : > { %3475 = vmatmul.msk.bf16.vlgmr.msrb.gmra.mxu3 %vm277_vm2, %v3561_v0 }
 0x1b0   : > { %v1838_v21 = vpop.f32.mrf.mxu2  ;;  %v1812_v35 = vpop.f32.mrf.mxu0  ;;  %2515 = vmatpush.bf16.msrb.mxu3 %v4511_v56  ;;  %v3488_v56 = vld [vmem:[%s5283_s1 + $0xe] sm:$0x3] }
 0x1b1   : > { %v4645_v4 = vadd.f32 %v1838_v21, %v4490_v25  ;;  %v4648_v1 = vadd.f32 %v1812_v35, %v4493_v31  ;;  %v1826_v39 = vpop.f32.mrf.mxu1 }
 0x1b2   : > { %v1852_v61 = vpop.f32.mrf.mxu3  ;;  %v4651_v63 = vadd.f32 %v1826_v39, %v4496_v48  ;;  %v4666_v48 = vsel %vm281_vm0, %v3488_v56, 0  ;;  %v3562_v39 = vld [vmem:[%s3629_s22 + $0x78] sm:$0xff] }
 0x1b3   : > { %v4654_v22 = vadd.f32 %v1852_v61, %v4499_v5 }
 0x1b8   : > { %v1840_v25 = vpop.f32.mrf.mxu2  ;;  %v1866_v23 = vpop.f32.mrf.mxu0 }
 0x1b9   : > { %v4660_v10 = vadd.f32 %v1840_v25, %v4505_v19  ;;  %v4663_v31 = vadd.f32 %v1866_v23, %v4508_v18  ;;  %v1880_v0 = vpop.f32.mrf.mxu1  ;;  %v3563_v19 = vld [vmem:[%s3629_s22 + $0x84] sm:$0xff]  ;;  %v3564_v18 = vld [vmem:[%s3629_s22 + $0x90] sm:$0xff] }
 0x1ba   : > { %v1854_v5 = vpop.f32.mrf.mxu3  ;;  %v4669_v21 = vadd.f32 %v1880_v0, %v4514_v37  ;;  %v3565_v37 = vld [vmem:[%s3629_s22 + $0x9c] sm:$0xff] }
 0x1bb   : > { %v4672_v35 = vadd.f32 %v1854_v5, %v4517_v47  ;;  %3476 = vmatmul.msk.bf16.vlgmr.msra.gmra.mxu0 %vm277_vm2, %v3562_v39 }
 0x1bc   : > { %3477 = vmatmul.msk.bf16.vlgmr.msra.gmra.mxu1 %vm277_vm2, %v3563_v19  ;;  %2566 = vmatpush.bf16.msra.mxu0 %v4666_v48 }
 0x1bd   : > { %3478 = vmatmul.msk.bf16.vlgmr.msra.gmra.mxu2 %vm277_vm2, %v3564_v18  ;;  %2580 = vmatpush.bf16.msra.mxu1 %v4666_v48 }
 0x1be   : > { %2594 = vmatpush.bf16.msra.mxu2 %v4666_v48 }
 0x1bf   : > { %3479 = vmatmul.msk.bf16.vlgmr.msra.gmra.mxu3 %vm277_vm2, %v3565_v37 }
 0x1c0   : > { %v1894_v47 = vpop.f32.mrf.mxu2  ;;  %v1868_v61 = vpop.f32.mrf.mxu0  ;;  %2608 = vmatpush.bf16.msra.mxu3 %v4666_v48 }
 0x1c1   : > { %v4687_v56 = vadd.f32 %v1894_v47, %v4532_v52  ;;  %v4690_v25 = vadd.f32 %v1868_v61, %v4535_v33  ;;  %v1882_v23 = vpop.f32.mrf.mxu1 }
 0x1c2   : > { %v1908_v0 = vpop.f32.mrf.mxu3  ;;  %v4693_v5 = vadd.f32 %v1882_v23, %v4538_v42  ;;  %v3566_v42 = vld [vmem:[%s3629_s22 + $0xa8] sm:$0xff]  ;;  %v3567_v23 = vld [vmem:[%s3629_s22 + $0xb4] sm:$0xff] }
 0x1c3   : > { %v4696_v39 = vadd.f32 %v1908_v0, %v4541_v41  ;;  %v4713_v41 = vld [vmem:[%s3629_s22 + $0xcc] sm:$0xff] }
 0x1c8   : > { %v1896_v19 = vpop.f32.mrf.mxu2  ;;  %v1922_v18 = vpop.f32.mrf.mxu0 }
 0x1c9   : > { %v4699_v37 = vadd.f32 %v1896_v19, %v4546_v28  ;;  %v4702_v52 = vadd.f32 %v1922_v18, %v4549_v24  ;;  %v1936_v47 = vpop.f32.mrf.mxu1 }
 0x1ca   : > { %v1910_v33 = vpop.f32.mrf.mxu3  ;;  %v4705_v61 = vadd.f32 %v1936_v47, %v4552_v13 }
 0x1cb   : > { %v4708_v7 = vadd.f32 %v1910_v33, %v4555_v17  ;;  %3480 = vmatmul.msk.bf16.vlgmr.msrb.gmra.mxu0 %vm277_vm2, %v3566_v42 }
 0x1cc   : > { %3481 = vmatmul.msk.bf16.vlgmr.msrb.gmra.mxu1 %vm277_vm2, %v3567_v23  ;;  %2622 = vmatpush.bf16.msrb.mxu0 %v4666_v48 }
 0x1cd   : > { %3482 = vmatmul.msk.bf16.vlgmr.msrb.gmra.mxu2 %vm277_vm2, %v4246_v26  ;;  %2636 = vmatpush.bf16.msrb.mxu1 %v4666_v48 }
 0x1ce   : > { %2650 = vmatpush.bf16.msrb.mxu2 %v4666_v48 }
 0x1cf   : > { %3487 = vmatmul.msk.bf16.vlgmr.msrb.gmra.mxu3 %vm277_vm2, %v4713_v41 }
 0x1d0   : > { %v1950_v28 = vpop.f32.mrf.mxu2  ;;  %v1924_v24 = vpop.f32.mrf.mxu0  ;;  %2664 = vmatpush.bf16.msrb.mxu3 %v4666_v48 }
 0x1d1   : > { %v4726_v13 = vadd.f32 %v1950_v28, %v4573_v29  ;;  %v4729_v17 = vadd.f32 %v1924_v24, %v4576_v62  ;;  %v1938_v0 = vpop.f32.mrf.mxu1 }
 0x1d2   : > { %v1981_v19 = vpop.f32.mrf.mxu3  ;;  %v4732_v26 = vadd.f32 %v1938_v0, %v4579_v46 }
 0x1d3   : > { %v4735_v18 = vadd.f32 %v1981_v19, %v4582_v53 }
 0x1d8   : > { %v1952_v47 = vpop.f32.mrf.mxu2  ;;  %v2032_v33 = vpop.f32.mrf.mxu0 }
 0x1d9   : > { %v4738_v42 = vadd.f32 %v1952_v47, %v4585_v44  ;;  %v4741_v23 = vadd.f32 %v2032_v33, %v4588_v45  ;;  %v2046_v29 = vpop.f32.mrf.mxu1 }
 0x1da   : > { %v1983_v28 = vpop.f32.mrf.mxu3  ;;  %v4744_v62 = vadd.f32 %v2046_v29, %v4591_v32 }
 0x1db   : > { %v4747_v24 = vadd.f32 %v1983_v28, %v4594_v2  ;;  %3489 = vmatmul.msk.bf16.vlgmr.msra.gmra.mxu0 %vm277_vm2, %v3688_v51  ;;  %v252_v28 = vld [vmem:[%s3629_s22 + $0xd4] sm:$0x1]  ;;  %s5103_s22 = scalar_lea.vmem %s5286_s4, %s3524_s19 }
 0x1dc   : > { %3490 = vmatmul.msk.bf16.vlgmr.msra.gmra.mxu1 %vm277_vm2, %v3702_v59  ;;  %2678 = vmatpush.bf16.msra.mxu0 %v4666_v48 }
 0x1dd   : > { %3491 = vmatmul.msk.bf16.vlgmr.msra.gmra.mxu2 %vm277_vm2, %v3731_v34  ;;  %2692 = vmatpush.bf16.msra.mxu1 %v4666_v48 }
 0x1de   : > { %2706 = vmatpush.bf16.msra.mxu2 %v4666_v48 }
 0x1df   : > { %3492 = vmatmul.msk.bf16.vlgmr.msra.gmra.mxu3 %vm277_vm2, %v3734_v38 }
 0x1e0   : > { %v2060_v44 = vpop.f32.mrf.mxu2  ;;  %v2034_v46 = vpop.f32.mrf.mxu0  ;;  %2720 = vmatpush.bf16.msra.mxu3 %v4666_v48 }
 0x1e1   : > { %v4762_v51 = vadd.f32 %v2060_v44, %v4609_v14  ;;  %v4765_v59 = vadd.f32 %v2034_v46, %v4612_v55  ;;  %v2048_v53 = vpop.f32.mrf.mxu1 }
 0x1e2   : > { %v2074_v45 = vpop.f32.mrf.mxu3  ;;  %v4768_v34 = vadd.f32 %v2048_v53, %v4615_v8 }
 0x1e3   : > { %v4771_v32 = vadd.f32 %v2074_v45, %v4618_v20 }
 0x1e8   : > { %v2062_v2 = vpop.f32.mrf.mxu2  ;;  %v2088_v38 = vpop.f32.mrf.mxu0 }
 0x1e9   : > { %v4774_v0 = vadd.f32 %v2062_v2, %v4621_v9  ;;  %v4777_v19 = vadd.f32 %v2088_v38, %v4624_v3  ;;  %v2102_v14 = vpop.f32.mrf.mxu1  ;;  %v2772_v38 = vshrl.u32 %v4713_v41, 16 }
 0x1ea   : > { %v2076_v47 = vpop.f32.mrf.mxu3  ;;  %v4780_v55 = vadd.f32 %v2102_v14, %v4627_v30 }
 0x1eb   : > { %v4783_v33 = vadd.f32 %v2076_v47, %v4630_v6  ;;  %3493 = vmatmul.msk.bf16.vlgmr.msrb.gmra.mxu0 %vm277_vm2, %v3741_v43 }
 0x1ec   : > { %3494 = vmatmul.msk.bf16.vlgmr.msrb.gmra.mxu1 %vm277_vm2, %v3752_v49  ;;  %2734 = vmatpush.bf16.msrb.mxu0 %v4666_v48 }
 0x1ed   : > { %3495 = vmatmul.msk.bf16.vlgmr.msrb.gmra.mxu2 %vm277_vm2, %v3794_v36  ;;  %2748 = vmatpush.bf16.msrb.mxu1 %v4666_v48 }
 0x1ee   : > { %2762 = vmatpush.bf16.msrb.mxu2 %v4666_v48 }
 0x1ef   : > { %3496 = vmatmul.msk.bf16.vlgmr.msrb.gmra.mxu3 %vm277_vm2, %v5353_v58  ;;  %v3505_v58 = vld [vmem:[%s5283_s1 + $0x10] sm:$0x3] }
 0x1f0   : > { %v2116_v8 = vpop.f32.mrf.mxu2  ;;  %v2090_v20 = vpop.f32.mrf.mxu0  ;;  %2793 = vmatpush.bf16.msrb.mxu3 %v4666_v48 }
 0x1f1   : > { %v4798_v43 = vadd.f32 %v2116_v8, %v4645_v4  ;;  %v4801_v49 = vadd.f32 %v2090_v20, %v4648_v1  ;;  %v2104_v9 = vpop.f32.mrf.mxu1 }
 0x1f2   : > { %v2130_v36 = vpop.f32.mrf.mxu3  ;;  %v4804_v3 = vadd.f32 %v2104_v9, %v4651_v63  ;;  %v4820_v63 = vsel %vm281_vm0, %v3505_v58, 0 }
 0x1f3   : > { %v4807_v30 = vadd.f32 %v2130_v36, %v4654_v22 }
 0x1f8   : > { %v2118_v6 = vpop.f32.mrf.mxu2  ;;  %v2144_v48 = vpop.f32.mrf.mxu0 }
 0x1f9   : > { %v4813_v4 = vadd.f32 %v2118_v6, %v4660_v10  ;;  %v4816_v1 = vadd.f32 %v2144_v48, %v4663_v31  ;;  %v2158_v29 = vpop.f32.mrf.mxu1  ;;  %v2770_v10 = vunpack.c.l.b16 %v252_v28 }
 0x1fa   : > { %v2132_v44 = vpop.f32.mrf.mxu3  ;;  %v4823_v22 = vadd.f32 %v2158_v29, %v4669_v21 }
 0x1fb   : > { %v4826_v46 = vadd.f32 %v2132_v44, %v4672_v35  ;;  %3497 = vmatmul.msk.bf16.vlgmr.msra.gmra.mxu0 %vm277_vm2, %v5354_v15  ;;  %v4839_v35 = vpack.c.b16 %v2770_v10, %v2770_v10  ;;  %v2774_v15 = vshll.u32 %v4713_v41, 16 }
 0x1fc   : > { %3498 = vmatmul.msk.bf16.vlgmr.msra.gmra.mxu1 %vm277_vm2, %v5355_v16  ;;  %2844 = vmatpush.bf16.msra.mxu0 %v4820_v63 }
 0x1fd   : > { %3499 = vmatmul.msk.bf16.vlgmr.msra.gmra.mxu2 %vm277_vm2, %v5356_v54  ;;  %2858 = vmatpush.bf16.msra.mxu1 %v4820_v63  ;;  %v2776_v14 = vrot.slane %v2774_v15, 1  ;;  %v2779_v47 = vshll.u32 %v4839_v35, 16 }
 0x1fe   : > { %2872 = vmatpush.bf16.msra.mxu2 %v4820_v63 }
 0x1ff   : > { %3500 = vmatmul.msk.bf16.vlgmr.msra.gmra.mxu3 %vm277_vm2, %v5357_v50  ;;  %v2781_v9 = vrot.slane %v2779_v47, 1 }
 0x200   : > { %v2172_v31 = vpop.f32.mrf.mxu2  ;;  %v2146_v21 = vpop.f32.mrf.mxu0  ;;  %2886 = vmatpush.bf16.msra.mxu3 %v4820_v63 }
 0x201   : > { %v4844_v16 = vadd.f32 %v2172_v31, %v4687_v56  ;;  %v4847_v54 = vadd.f32 %v2146_v21, %v4690_v25  ;;  %v2160_v53 = vpop.f32.mrf.mxu1  ;;  %v2777_v56 = vor.u32 %v2776_v14, %v2772_v38 }
 0x202   : > { %v2186_v45 = vpop.f32.mrf.mxu3  ;;  %v4850_v2 = vadd.f32 %v2160_v53, %v4693_v5 }
 0x203   : > { %v4853_v50 = vadd.f32 %v2186_v45, %v4696_v39 }
 0x208   : > { %v2174_v8 = vpop.f32.mrf.mxu2  ;;  %v2200_v20 = vpop.f32.mrf.mxu0 }
 0x209   : > { %v4858_v25 = vadd.f32 %v2174_v8, %v4699_v37  ;;  %v4861_v36 = vadd.f32 %v2200_v20, %v4702_v52  ;;  %v2214_v5 = vpop.f32.mrf.mxu1  ;;  %v2782_v37 = vsel %vm264_vm1, %v2777_v56, %v2781_v9 }
 0x20a   : > { %v2188_v58 = vpop.f32.mrf.mxu3  ;;  %v4864_v39 = vadd.f32 %v2214_v5, %v4705_v61 }
 0x20b   : > { %v4867_v6 = vadd.f32 %v2188_v58, %v4708_v7  ;;  %3501 = vmatmul.msk.bf16.vlgmr.msrb.gmra.mxu0 %vm277_vm2, %v5358_v11 }
 0x20c   : > { %3502 = vmatmul.msk.bf16.vlgmr.msrb.gmra.mxu1 %vm277_vm2, %v5359_v40  ;;  %2900 = vmatpush.bf16.msrb.mxu0 %v4820_v63 }
 0x20d   : > { %3503 = vmatmul.msk.bf16.vlgmr.msrb.gmra.mxu2 %vm277_vm2, %v4407_v27  ;;  %2914 = vmatpush.bf16.msrb.mxu1 %v4820_v63 }
 0x20e   : > { %2928 = vmatpush.bf16.msrb.mxu2 %v4820_v63 }
 0x20f   : > { %3504 = vmatmul.msk.bf16.vlgmr.msrb.gmra.mxu3 %vm277_vm2, %v2782_v37 }
 0x210   : > { %v2228_v7 = vpop.f32.mrf.mxu2  ;;  %v2202_v52 = vpop.f32.mrf.mxu0  ;;  %2942 = vmatpush.bf16.msrb.mxu3 %v4820_v63 }
 0x211   : > { %v4882_v11 = vadd.f32 %v2228_v7, %v4726_v13  ;;  %v4885_v40 = vadd.f32 %v2202_v52, %v4729_v17  ;;  %v2216_v61 = vpop.f32.mrf.mxu1 }
 0x212   : > { %v2248_v48 = vpop.f32.mrf.mxu3  ;;  %v4888_v27 = vadd.f32 %v2216_v61, %v4732_v26  ;;  %v5376_v26 = vld [vmem:[#allocation12_spill] sm:$0xff] }
 0x213   : > { %v4891_v29 = vadd.f32 %v2248_v48, %v4735_v18  ;;  %v5377_v18 = vld [vmem:[#allocation13_spill] sm:$0xff] }
 0x218   : > { %v2230_v28 = vpop.f32.mrf.mxu2  ;;  %v2299_v44 = vpop.f32.mrf.mxu0 }
 0x219   : > { %v4894_v10 = vadd.f32 %v2230_v28, %v4738_v42  ;;  %v4897_v31 = vadd.f32 %v2299_v44, %v4741_v23  ;;  %v2313_v13 = vpop.f32.mrf.mxu1 }
 0x21a   : > { %v2250_v21 = vpop.f32.mrf.mxu3  ;;  %v4900_v17 = vadd.f32 %v2313_v13, %v4744_v62 }
 0x21b   : > { %v4903_v15 = vadd.f32 %v2250_v21, %v4747_v24  ;;  %3506 = vmatmul.msk.bf16.vlgmr.msra.gmra.mxu0 %vm277_vm2, %v5361_v12  ;;  %v5384_v21 = vld [vmem:[#allocation20_spill] sm:$0xff] }
 0x21c   : > { %3507 = vmatmul.msk.bf16.vlgmr.msra.gmra.mxu1 %vm277_vm2, %v5362_v60  ;;  %2956 = vmatpush.bf16.msra.mxu0 %v4820_v63 }
 0x21d   : > { %3508 = vmatmul.msk.bf16.vlgmr.msra.gmra.mxu2 %vm277_vm2, %v5376_v26  ;;  %2970 = vmatpush.bf16.msra.mxu1 %v4820_v63 }
 0x21e   : > { %2984 = vmatpush.bf16.msra.mxu2 %v4820_v63 }
 0x21f   : > { %3509 = vmatmul.msk.bf16.vlgmr.msra.gmra.mxu3 %vm277_vm2, %v5377_v18 }
 0x220   : > { %v2327_v42 = vpop.f32.mrf.mxu2  ;;  %v2301_v23 = vpop.f32.mrf.mxu0  ;;  %2998 = vmatpush.bf16.msra.mxu3 %v4820_v63 }
 0x221   : > { %v4918_v12 = vadd.f32 %v2327_v42, %v4762_v51  ;;  %v4921_v60 = vadd.f32 %v2301_v23, %v4765_v59  ;;  %v2315_v62 = vpop.f32.mrf.mxu1 }
 0x222   : > { %v2341_v24 = vpop.f32.mrf.mxu3  ;;  %v4924_v53 = vadd.f32 %v2315_v62, %v4768_v34  ;;  %v5378_v34 = vld [vmem:[#allocation14_spill] sm:$0xff] }
 0x223   : > { %v4927_v45 = vadd.f32 %v2341_v24, %v4771_v32  ;;  %v5379_v32 = vld [vmem:[#allocation15_spill] sm:$0xff] }
 0x228   : > { %v2329_v38 = vpop.f32.mrf.mxu2  ;;  %v2355_v14 = vpop.f32.mrf.mxu0 }
 0x229   : > { %v4930_v47 = vadd.f32 %v2329_v38, %v4774_v0  ;;  %v4933_v8 = vadd.f32 %v2355_v14, %v4777_v19  ;;  %v2369_v51 = vpop.f32.mrf.mxu1  ;;  %v5380_v0 = vld [vmem:[#allocation16_spill] sm:$0xff]  ;;  %v5381_v19 = vld [vmem:[#allocation17_spill] sm:$0xff]  ;;  %v3047_v38 = vrot.slane %v4713_v41, 1 }
 0x22a   : > { %v2343_v20 = vpop.f32.mrf.mxu3  ;;  %v4936_v59 = vadd.f32 %v2369_v51, %v4780_v55 }
 0x22b   : > { %v4939_v56 = vadd.f32 %v2343_v20, %v4783_v33  ;;  %3510 = vmatmul.msk.bf16.vlgmr.msrb.gmra.mxu0 %vm277_vm2, %v5378_v34  ;;  %v5386_v34 = vld [vmem:[#allocation23_spill] sm:$0xff] }
 0x22c   : > { %3511 = vmatmul.msk.bf16.vlgmr.msrb.gmra.mxu1 %vm277_vm2, %v5379_v32  ;;  %3012 = vmatpush.bf16.msrb.mxu0 %v4820_v63 }
 0x22d   : > { %3512 = vmatmul.msk.bf16.vlgmr.msrb.gmra.mxu2 %vm277_vm2, %v5380_v0  ;;  %3026 = vmatpush.bf16.msrb.mxu1 %v4820_v63 }
 0x22e   : > { %3040 = vmatpush.bf16.msrb.mxu2 %v4820_v63 }
 0x22f   : > { %3513 = vmatmul.msk.bf16.vlgmr.msrb.gmra.mxu3 %vm277_vm2, %v5381_v19 }
 0x230   : > { %v2383_v55 = vpop.f32.mrf.mxu2  ;;  %v2357_v33 = vpop.f32.mrf.mxu0  ;;  %3060 = vmatpush.bf16.msrb.mxu3 %v4820_v63 }
 0x231   : > { %v4954_v9 = vadd.f32 %v2383_v55, %v4798_v43  ;;  %v4957_v5 = vadd.f32 %v2357_v33, %v4801_v49  ;;  %v2371_v58 = vpop.f32.mrf.mxu1 }
 0x232   : > { %v2397_v37 = vpop.f32.mrf.mxu3  ;;  %v4960_v7 = vadd.f32 %v2371_v58, %v4804_v3  ;;  %v5382_v3 = vld [vmem:[#allocation18_spill] sm:$0xff] }
 0x233   : > { %v4963_v52 = vadd.f32 %v2397_v37, %v4807_v30  ;;  %v5383_v30 = vld [vmem:[#allocation19_spill] sm:$0xff] }
 0x238   : > { %v2385_v61 = vpop.f32.mrf.mxu2  ;;  %v2411_v48 = vpop.f32.mrf.mxu0 }
 0x239   : > { %v4966_v28 = vadd.f32 %v2385_v61, %v4813_v4  ;;  %v4969_v63 = vadd.f32 %v2411_v48, %v4816_v1  ;;  %v2425_v43 = vpop.f32.mrf.mxu1 }
 0x23a   : > { %v2399_v44 = vpop.f32.mrf.mxu3  ;;  %v2540_v49 = vadd.f32 %v2425_v43, %v4823_v22 }
 0x23b   : > { %v4973_v13 = vadd.f32 %v2399_v44, %v4826_v46  ;;  %3514 = vmatmul.msk.bf16.vlgmr.msra.gmra.mxu0 %vm277_vm2, %v5382_v3 }
 0x23c   : > { %3515 = vmatmul.msk.bf16.vlgmr.msra.gmra.mxu1 %vm277_vm2, %v5383_v30 }
 0x23d   : > { %3516 = vmatmul.msk.bf16.vlgmr.msra.gmra.mxu2 %vm277_vm2, %v5384_v21 }
 0x23f   : > { %3517 = vmatmul.msk.bf16.vlgmr.msra.gmra.mxu3 %vm277_vm2, %v5372_v57  ;;  %v3048_v57 = vrot.slane %v4839_v35, 1  ;;  %v5387_v35 = vld [vmem:[#allocation2_spill] sm:$0xff] }
 0x240   : > { %v2439_v4 = vpop.f32.mrf.mxu2  ;;  %v2413_v1 = vpop.f32.mrf.mxu0 }
 0x241   : > { %v4984_v26 = vadd.f32 %v2439_v4, %v4844_v16  ;;  %v4987_v22 = vadd.f32 %v2413_v1, %v4847_v54  ;;  %v2427_v46 = vpop.f32.mrf.mxu1  ;;  %v3049_v41 = vsel %vm1115_vm3, %v3047_v38, %v3048_v57 }
 0x242   : > { %v2453_v18 = vpop.f32.mrf.mxu3  ;;  %v2541_v42 = vadd.f32 %v2427_v46, %v4850_v2 }
 0x243   : > { %v4991_v23 = vadd.f32 %v2453_v18, %v4853_v50  ;;  %v5385_v50 = vld [vmem:[#allocation22_spill] sm:$0xff] }
 0x248   : > { %v2441_v62 = vpop.f32.mrf.mxu2  ;;  %v2467_v24 = vpop.f32.mrf.mxu0 }
 0x249   : > { %v4996_v14 = vadd.f32 %v2441_v62, %v4858_v25  ;;  %v4999_v16 = vadd.f32 %v2467_v24, %v4861_v36  ;;  %v2481_v54 = vpop.f32.mrf.mxu1 }
 0x24a   : > { %v2455_v51 = vpop.f32.mrf.mxu3  ;;  %v2548_v20 = vadd.f32 %v2481_v54, %v4864_v39 }
 0x24b   : > { %v5003_v2 = vadd.f32 %v2455_v51, %v4867_v6  ;;  %3518 = vmatmul.msk.bf16.vlgmr.msrb.gmra.mxu0 %vm277_vm2, %v5385_v50 }
 0x24c   : > { %3519 = vmatmul.msk.bf16.vlgmr.msrb.gmra.mxu1 %vm277_vm2, %v5386_v34 }
 0x24d   : > { %3520 = vmatmul.msk.bf16.vlgmr.msrb.gmra.mxu2 %vm277_vm2, %v5387_v35 }
 0x24f   : > { %3521 = vmatmul.msk.bf16.vlgmr.msrb.gmra.mxu3 %vm277_vm2, %v3049_v41 }
 0x250   : > { %v2495_v25 = vpop.f32.mrf.mxu2  ;;  %v2469_v36 = vpop.f32.mrf.mxu0 }
 0x251   : > { %v5014_v39 = vadd.f32 %v2495_v25, %v4882_v11  ;;  %v5017_v6 = vadd.f32 %v2469_v36, %v4885_v40  ;;  %v2483_v32 = vpop.f32.mrf.mxu1 }
 0x252   : > { %v2517_v0 = vpop.f32.mrf.mxu3  ;;  %v2549_v19 = vadd.f32 %v2483_v32, %v4888_v27 }
 0x253   : > { %v5021_v55 = vadd.f32 %v2517_v0, %v4891_v29 }
 0x258   : > { %v2497_v33 = vpop.f32.mrf.mxu2  ;;  %v2568_v58 = vpop.f32.mrf.mxu0 }
 0x259   : > { %v5024_v37 = vadd.f32 %v2497_v33, %v4894_v10  ;;  %v2582_v61 = vpop.f32.mrf.mxu1 }
 0x25a   : > { %v2519_v48 = vpop.f32.mrf.mxu3 }
 0x25b   : > { %5388 = vst [vmem:[#allocation3_spill] sm:$0xff] %v5024_v37  ;;  %v5027_v11 = vadd.f32 %v2519_v48, %v4903_v15 }
 0x25d   : > { %5389 = vst [vmem:[#allocation4_spill] sm:$0xff] %v5027_v11 }
 0x260   : > { %v2596_v43 = vpop.f32.mrf.mxu2  ;;  %v2570_v40 = vpop.f32.mrf.mxu0 }
 0x261   : > { %v2584_v44 = vpop.f32.mrf.mxu1 }
 0x262   : > { %v2610_v3 = vpop.f32.mrf.mxu3  ;;  %v2803_v30 = vadd.f32 %v2584_v44, %v4924_v53 }
 0x268   : > { %v5030_v27 = vpop.f32.mrf.mxu2  ;;  %v5032_v29 = vpop.f32.mrf.mxu0 }
 0x269   : > { %v2638_v21 = vpop.f32.mrf.mxu1 }
 0x26a   : > { %v5034_v4 = vpop.f32.mrf.mxu3  ;;  %v5037_v10 = vadd.f32 %v2638_v21, %v4936_v59  ;;  %v5084_v21 = vld [vmem:[%s5284_s2] ss:$0 sm:$0xff] }
 0x270   : > { %v5039_v1 = vpop.f32.mrf.mxu2  ;;  %v5041_v15 = vpop.f32.mrf.mxu0 }
 0x271   : > { %v2640_v46 = vpop.f32.mrf.mxu1 }
 0x272   : > { %v5043_v18 = vpop.f32.mrf.mxu3  ;;  %v5046_v62 = vadd.f32 %v2640_v46, %v4960_v7 }
 0x278   : > { %v5048_v53 = vpop.f32.mrf.mxu2  ;;  %v5050_v24 = vpop.f32.mrf.mxu0 }
 0x279   : > { %v2694_v38 = vpop.f32.mrf.mxu1 }
 0x27a   : > { %v5052_v57 = vpop.f32.mrf.mxu3  ;;  %v5054_v54 = vadd.f32 %v2694_v38, %v2540_v49 }
 0x280   : > { %v5056_v59 = vpop.f32.mrf.mxu2  ;;  %v5058_v51 = vpop.f32.mrf.mxu0 }
 0x281   : > { %v2696_v50 = vpop.f32.mrf.mxu1 }
 0x282   : > { %v5060_v34 = vpop.f32.mrf.mxu3  ;;  %v5062_v41 = vadd.f32 %v2696_v50, %v2541_v42  ;;  %v2800_v42 = vadd.f32 %v2568_v58, %v4897_v31 }
 0x288   : > { %v5064_v7 = vpop.f32.mrf.mxu2  ;;  %v5066_v35 = vpop.f32.mrf.mxu0 }
 0x289   : > { %v2750_v25 = vpop.f32.mrf.mxu1 }
 0x28a   : > { %v5068_v36 = vpop.f32.mrf.mxu3  ;;  %v5070_v32 = vadd.f32 %v2750_v25, %v2548_v20  ;;  %v2802_v20 = vadd.f32 %v2582_v61, %v4900_v17  ;;  %v5092_v25 = vld [vmem:[%s5285_s3] ss:$0 sm:$0xff] }
 0x290   : > { %v5072_v49 = vpop.f32.mrf.mxu2  ;;  %v5074_v0 = vpop.f32.mrf.mxu0 }
 0x291   : > { %v2752_v33 = vpop.f32.mrf.mxu1 }
 0x292   : > { %v5076_v48 = vpop.f32.mrf.mxu3  ;;  %v5078_v44 = vadd.f32 %v2752_v33, %v2549_v19 }
 0x293   : > { %5390 = vst [vmem:[#allocation5_spill] sm:$0xff] %v5076_v48 }
 0x294   : > { %5391 = vst [vmem:[#allocation6_spill] sm:$0xff] %v5078_v44 }
 0x298   : > { %v5087_v46 = vpop.f32.mrf.mxu2  ;;  %v2846_v38 = vpop.f32.mrf.mxu0 }
 0x299   : > { %5392 = vst [vmem:[#allocation7_spill] sm:$0xff] %v5087_v46  ;;  %v3067_v50 = vadd.f32 %v2846_v38, %v2800_v42  ;;  %v2860_v19 = vpop.f32.mrf.mxu1  ;;  %v2804_v42 = vadd.f32 %v2596_v43, %v4918_v12 }
 0x29a   : > { %v5094_v33 = vpop.f32.mrf.mxu3  ;;  %v3069_v31 = vadd.f32 %v2860_v19, %v2802_v20  ;;  %v2801_v20 = vadd.f32 %v2570_v40, %v4921_v60 }
 0x29b   : > { %5393 = vst [vmem:[#allocation8_spill] sm:$0xff] %v5094_v33  ;;  %v3103_v58 = vmul.f32 %v5084_v21, %v3067_v50 }
 0x29c   : > { %v3105_v11 = vmul.f32 %v5084_v21, %v3069_v31  ;;  %v2806_v31 = vadd.f32 %v2610_v3, %v4927_v45 }
 0x29d   : > { %v3139_v17 = vadd.f32 %v5092_v25, %v3103_v58 }
 0x29e   : > { %v3141_v61 = vadd.f32 %v5092_v25, %v3105_v11 }
 0x29f   : > { %v3171_v38 = vmax.f32 %v3139_v17, 0.0 }
 0x2a0   : > { %v3173_v19 = vmax.f32 %v3141_v61, 0.0  ;;  %v2874_v50 = vpop.f32.mrf.mxu2  ;;  %v2848_v33 = vpop.f32.mrf.mxu0 }
 0x2a1   : > { %3203 = vst.msk [vmem:[%s5103_s22] sm:$0xff] %vm277_vm2, %v3171_v38  ;;  %v3071_v58 = vadd.f32 %v2874_v50, %v2804_v42  ;;  %v3068_v46 = vadd.f32 %v2848_v33, %v2801_v20  ;;  %v2862_v37 = vpop.f32.mrf.mxu1  ;;  %v2805_v33 = vadd.f32 %v5030_v27, %v4930_v47  ;;  %v2807_v20 = vadd.f32 %v5034_v4, %v4939_v56 }
 0x2a2   : > { %3205 = vst.msk [vmem:[%s5103_s22 + $0x10] sm:$0xff] %vm277_vm2, %v3173_v19  ;;  %v2888_v44 = vpop.f32.mrf.mxu3  ;;  %v3070_v48 = vadd.f32 %v2862_v37, %v2803_v30  ;;  %v2808_v30 = vadd.f32 %v5032_v29, %v4933_v8 }
 0x2a3   : > { %v3107_v11 = vmul.f32 %v5084_v21, %v3071_v58  ;;  %v3073_v12 = vadd.f32 %v2888_v44, %v2806_v31  ;;  %v3104_v60 = vmul.f32 %v5084_v21, %v3068_v46 }
 0x2a4   : > { %v3106_v43 = vmul.f32 %v5084_v21, %v3070_v48 }
 0x2a5   : > { %v3143_v40 = vadd.f32 %v5092_v25, %v3107_v11  ;;  %v3109_v45 = vmul.f32 %v5084_v21, %v3073_v12  ;;  %v3140_v3 = vadd.f32 %v5092_v25, %v3104_v60 }
 0x2a6   : > { %v3142_v37 = vadd.f32 %v5092_v25, %v3106_v43  ;;  %v2809_v43 = vadd.f32 %v5041_v15, %v4957_v5 }
 0x2a7   : > { %v3175_v44 = vmax.f32 %v3143_v40, 0.0  ;;  %v3145_v46 = vadd.f32 %v5092_v25, %v3109_v45  ;;  %v3172_v48 = vmax.f32 %v3140_v3, 0.0 }
 0x2a8   : > { %v3174_v17 = vmax.f32 %v3142_v37, 0.0  ;;  %v2876_v61 = vpop.f32.mrf.mxu2  ;;  %v2902_v42 = vpop.f32.mrf.mxu0 }
 0x2a9   : > { %3207 = vst.msk [vmem:[%s5103_s22 + $0x20] sm:$0xff] %vm277_vm2, %v3175_v44  ;;  %v3177_v47 = vmax.f32 %v3145_v46, 0.0  ;;  %v3072_v27 = vadd.f32 %v2876_v61, %v2805_v33  ;;  %v3075_v38 = vadd.f32 %v2902_v42, %v2808_v30  ;;  %v2916_v19 = vpop.f32.mrf.mxu1  ;;  %v2814_v44 = vadd.f32 %v5043_v18, %v4963_v52 }
 0x2aa   : > { %3204 = vst.msk [vmem:[%s5103_s22 + $0x8] sm:$0xff] %vm277_vm2, %v3172_v48  ;;  %v2890_v8 = vpop.f32.mrf.mxu3  ;;  %v3077_v29 = vadd.f32 %v2916_v19, %v5037_v10  ;;  %v2812_v10 = vadd.f32 %v5039_v1, %v4954_v9 }
 0x2ab   : > { %3209 = vst.msk [vmem:[%s5103_s22 + $0x30] sm:$0xff] %vm277_vm2, %v3177_v47  ;;  %v3108_v50 = vmul.f32 %v5084_v21, %v3072_v27  ;;  %v3074_v31 = vadd.f32 %v2890_v8, %v2807_v20  ;;  %v3111_v58 = vmul.f32 %v5084_v21, %v3075_v38  ;;  %v2816_v38 = vadd.f32 %v5050_v24, %v4969_v63 }
 0x2ac   : > { %3206 = vst.msk [vmem:[%s5103_s22 + $0x18] sm:$0xff] %vm277_vm2, %v3174_v17  ;;  %v3113_v56 = vmul.f32 %v5084_v21, %v3077_v29 }
 0x2ad   : > { %v3144_v4 = vadd.f32 %v5092_v25, %v3108_v50  ;;  %v3110_v11 = vmul.f32 %v5084_v21, %v3074_v31  ;;  %v3147_v12 = vadd.f32 %v5092_v25, %v3111_v58 }
 0x2ae   : > { %v3149_v60 = vadd.f32 %v5092_v25, %v3113_v56  ;;  %v2815_v56 = vadd.f32 %v5052_v57, %v4973_v13 }
 0x2af   : > { %v3176_v40 = vmax.f32 %v3144_v4, 0.0  ;;  %v3146_v45 = vadd.f32 %v5092_v25, %v3110_v11  ;;  %v3179_v3 = vmax.f32 %v3147_v12, 0.0 }
 0x2b0   : > { %v3181_v33 = vmax.f32 %v3149_v60, 0.0  ;;  %v2930_v37 = vpop.f32.mrf.mxu2  ;;  %v2904_v30 = vpop.f32.mrf.mxu0 }
 0x2b1   : > { %3208 = vst.msk [vmem:[%s5103_s22 + $0x28] sm:$0xff] %vm277_vm2, %v3176_v40  ;;  %v3178_v9 = vmax.f32 %v3146_v45, 0.0  ;;  %v3079_v1 = vadd.f32 %v2930_v37, %v2812_v10  ;;  %v3076_v46 = vadd.f32 %v2904_v30, %v2809_v43  ;;  %v2918_v48 = vpop.f32.mrf.mxu1 }
 0x2b2   : > { %3211 = vst.msk [vmem:[%s5103_s22 + $0x40] sm:$0xff] %vm277_vm2, %v3179_v3  ;;  %v2944_v5 = vpop.f32.mrf.mxu3  ;;  %v3078_v15 = vadd.f32 %v2918_v48, %v5046_v62  ;;  %v2813_v62 = vadd.f32 %v5048_v53, %v4966_v28  ;;  %v2817_v3 = vadd.f32 %v5058_v51, %v4987_v22 }
 0x2b3   : > { %3210 = vst.msk [vmem:[%s5103_s22 + $0x38] sm:$0xff] %vm277_vm2, %v3178_v9  ;;  %v3115_v17 = vmul.f32 %v5084_v21, %v3079_v1  ;;  %v3081_v61 = vadd.f32 %v2944_v5, %v2814_v44  ;;  %v3112_v42 = vmul.f32 %v5084_v21, %v3076_v46  ;;  %v2822_v46 = vadd.f32 %v5060_v34, %v4991_v23 }
 0x2b4   : > { %3213 = vst.msk [vmem:[%s5103_s22 + $0x50] sm:$0xff] %vm277_vm2, %v3181_v33  ;;  %v3114_v52 = vmul.f32 %v5084_v21, %v3078_v15 }
 0x2b5   : > { %v3151_v18 = vadd.f32 %v5092_v25, %v3115_v17  ;;  %v3117_v20 = vmul.f32 %v5084_v21, %v3081_v61  ;;  %v3148_v47 = vadd.f32 %v5092_v25, %v3112_v42 }
 0x2b6   : > { %v3150_v27 = vadd.f32 %v5092_v25, %v3114_v52 }
 0x2b7   : > { %v3183_v19 = vmax.f32 %v3151_v18, 0.0  ;;  %v3153_v8 = vadd.f32 %v5092_v25, %v3117_v20  ;;  %v3180_v29 = vmax.f32 %v3148_v47, 0.0  ;;  %v2824_v20 = vadd.f32 %v5066_v35, %v4999_v16 }
 0x2b8   : > { %v3182_v50 = vmax.f32 %v3150_v27, 0.0  ;;  %v2932_v31 = vpop.f32.mrf.mxu2  ;;  %v2958_v58 = vpop.f32.mrf.mxu0 }
 0x2b9   : > { %3215 = vst.msk [vmem:[%s5103_s22 + $0x60] sm:$0xff] %vm277_vm2, %v3183_v19  ;;  %v3185_v28 = vmax.f32 %v3153_v8, 0.0  ;;  %v3080_v53 = vadd.f32 %v2932_v31, %v2813_v62  ;;  %v3083_v4 = vadd.f32 %v2958_v58, %v2816_v38  ;;  %v2972_v11 = vpop.f32.mrf.mxu1 }
 0x2ba   : > { %3212 = vst.msk [vmem:[%s5103_s22 + $0x48] sm:$0xff] %vm277_vm2, %v3180_v29  ;;  %v2946_v63 = vpop.f32.mrf.mxu3  ;;  %v3085_v24 = vadd.f32 %v2972_v11, %v5054_v54  ;;  %v2820_v54 = vadd.f32 %v5056_v59, %v4984_v26  ;;  %v2823_v29 = vadd.f32 %v5068_v36, %v5003_v2 }
 0x2bb   : > { %3217 = vst.msk [vmem:[%s5103_s22 + $0x70] sm:$0xff] %vm277_vm2, %v3185_v28  ;;  %v3116_v12 = vmul.f32 %v5084_v21, %v3080_v53  ;;  %v3082_v10 = vadd.f32 %v2946_v63, %v2815_v56  ;;  %v3119_v60 = vmul.f32 %v5084_v21, %v3083_v4  ;;  %v2825_v63 = vadd.f32 %v5074_v0, %v5017_v6  ;;  %v5395_v0 = vld [vmem:[#allocation6_spill] sm:$0xff] }
 0x2bc   : > { %3214 = vst.msk [vmem:[%s5103_s22 + $0x58] sm:$0xff] %vm277_vm2, %v3182_v50  ;;  %v3121_v13 = vmul.f32 %v5084_v21, %v3085_v24 }
 0x2bd   : > { %v3152_v57 = vadd.f32 %v5092_v25, %v3116_v12  ;;  %v3118_v43 = vmul.f32 %v5084_v21, %v3082_v10  ;;  %v3155_v40 = vadd.f32 %v5092_v25, %v3119_v60 }
 0x2be   : > { %v3157_v45 = vadd.f32 %v5092_v25, %v3121_v13 }
 0x2bf   : > { %v3184_v33 = vmax.f32 %v3152_v57, 0.0  ;;  %v3154_v37 = vadd.f32 %v5092_v25, %v3118_v43  ;;  %v3187_v30 = vmax.f32 %v3155_v40, 0.0  ;;  %v5394_v43 = vld [vmem:[#allocation5_spill] sm:$0xff] }
 0x2c0   : > { %v3189_v44 = vmax.f32 %v3157_v45, 0.0  ;;  %v2986_v9 = vpop.f32.mrf.mxu2  ;;  %v2960_v1 = vpop.f32.mrf.mxu0  ;;  %v2830_v40 = vadd.f32 %v5394_v43, %v5021_v55 }
 0x2c1   : > { %3216 = vst.msk [vmem:[%s5103_s22 + $0x68] sm:$0xff] %vm277_vm2, %v3184_v33  ;;  %v3186_v26 = vmax.f32 %v3154_v37, 0.0  ;;  %v3087_v59 = vadd.f32 %v2986_v9, %v2820_v54  ;;  %v3084_v48 = vadd.f32 %v2960_v1, %v2817_v3  ;;  %v2974_v5 = vpop.f32.mrf.mxu1 }
 0x2c2   : > { %3219 = vst.msk [vmem:[%s5103_s22 + $0x80] sm:$0xff] %vm277_vm2, %v3187_v30  ;;  %v3000_v22 = vpop.f32.mrf.mxu3  ;;  %v3086_v51 = vadd.f32 %v2974_v5, %v5062_v41  ;;  %v2821_v41 = vadd.f32 %v5064_v7, %v4996_v14 }
 0x2c3   : > { %3218 = vst.msk [vmem:[%s5103_s22 + $0x78] sm:$0xff] %vm277_vm2, %v3186_v26  ;;  %v3123_v15 = vmul.f32 %v5084_v21, %v3087_v59  ;;  %v3089_v17 = vadd.f32 %v3000_v22, %v2822_v46  ;;  %v3120_v61 = vmul.f32 %v5084_v21, %v3084_v48  ;;  %v5396_v26 = vld [vmem:[#allocation3_spill] sm:$0xff] }
 0x2c4   : > { %3221 = vst.msk [vmem:[%s5103_s22 + $0x90] sm:$0xff] %vm277_vm2, %v3189_v44  ;;  %v3122_v23 = vmul.f32 %v5084_v21, %v3086_v51  ;;  %v5397_v59 = vld [vmem:[#allocation7_spill] sm:$0xff] }
 0x2c5   : > { %v3159_v34 = vadd.f32 %v5092_v25, %v3123_v15  ;;  %v3125_v42 = vmul.f32 %v5084_v21, %v3089_v17  ;;  %v3156_v52 = vadd.f32 %v5092_v25, %v3120_v61  ;;  %v2829_v48 = vadd.f32 %v5397_v59, %v5396_v26  ;;  %v5398_v61 = vld [vmem:[#allocation4_spill] sm:$0xff] }
 0x2c6   : > { %v3158_v18 = vadd.f32 %v5092_v25, %v3122_v23  ;;  %v5399_v23 = vld [vmem:[#allocation8_spill] sm:$0xff] }
 0x2c7   : > { %v3191_v47 = vmax.f32 %v3159_v34, 0.0  ;;  %v3161_v62 = vadd.f32 %v5092_v25, %v3125_v42  ;;  %v3188_v27 = vmax.f32 %v3156_v52, 0.0  ;;  %v2831_v34 = vadd.f32 %v5399_v23, %v5398_v61 }
 0x2c8   : > { %v3190_v38 = vmax.f32 %v3158_v18, 0.0  ;;  %v2988_v19 = vpop.f32.mrf.mxu2  ;;  %v3014_v8 = vpop.f32.mrf.mxu0 }
 0x2c9   : > { %3223 = vst.msk [vmem:[%s5103_s22 + $0xa0] sm:$0xff] %vm277_vm2, %v3191_v47  ;;  %v3193_v14 = vmax.f32 %v3161_v62, 0.0  ;;  %v3088_v7 = vadd.f32 %v2988_v19, %v2821_v41  ;;  %v3091_v50 = vadd.f32 %v3014_v8, %v2824_v20  ;;  %v3028_v31 = vpop.f32.mrf.mxu1 }
 0x2ca   : > { %3220 = vst.msk [vmem:[%s5103_s22 + $0x88] sm:$0xff] %vm277_vm2, %v3188_v27  ;;  %v3002_v16 = vpop.f32.mrf.mxu3  ;;  %v3093_v35 = vadd.f32 %v3028_v31, %v5070_v32  ;;  %v2828_v32 = vadd.f32 %v5072_v49, %v5014_v39 }
 0x2cb   : > { %3225 = vst.msk [vmem:[%s5103_s22 + $0xb0] sm:$0xff] %vm277_vm2, %v3193_v14  ;;  %v3124_v58 = vmul.f32 %v5084_v21, %v3088_v7  ;;  %v3090_v56 = vadd.f32 %v3002_v16, %v2823_v29  ;;  %v3127_v28 = vmul.f32 %v5084_v21, %v3091_v50 }
 0x2cc   : > { %3222 = vst.msk [vmem:[%s5103_s22 + $0x98] sm:$0xff] %vm277_vm2, %v3190_v38  ;;  %v3129_v2 = vmul.f32 %v5084_v21, %v3093_v35 }
 0x2cd   : > { %v3160_v36 = vadd.f32 %v5092_v25, %v3124_v58  ;;  %v3126_v53 = vmul.f32 %v5084_v21, %v3090_v56  ;;  %v3163_v4 = vadd.f32 %v5092_v25, %v3127_v28 }
 0x2ce   : > { %v3165_v11 = vadd.f32 %v5092_v25, %v3129_v2 }
 0x2cf   : > { %v3192_v24 = vmax.f32 %v3160_v36, 0.0  ;;  %v3162_v12 = vadd.f32 %v5092_v25, %v3126_v53  ;;  %v3195_v10 = vmax.f32 %v3163_v4, 0.0 }
 0x2d0   : > { %v3197_v60 = vmax.f32 %v3165_v11, 0.0  ;;  %v3042_v13 = vpop.f32.mrf.mxu2  ;;  %v3016_v57 = vpop.f32.mrf.mxu0 }
 0x2d1   : > { %3224 = vst.msk [vmem:[%s5103_s22 + $0xa8] sm:$0xff] %vm277_vm2, %v3192_v24  ;;  %v3194_v39 = vmax.f32 %v3162_v12, 0.0  ;;  %v3095_v49 = vadd.f32 %v3042_v13, %v2828_v32  ;;  %v3092_v54 = vadd.f32 %v3016_v57, %v2825_v63  ;;  %v3030_v45 = vpop.f32.mrf.mxu1 }
 0x2d2   : > { %3227 = vst.msk [vmem:[%s5103_s22 + $0xc0] sm:$0xff] %vm277_vm2, %v3195_v10  ;;  %v3062_v6 = vpop.f32.mrf.mxu3  ;;  %v3094_v3 = vadd.f32 %v3030_v45, %v5395_v0 }
 0x2d3   : > { %3226 = vst.msk [vmem:[%s5103_s22 + $0xb8] sm:$0xff] %vm277_vm2, %v3194_v39  ;;  %v3131_v33 = vmul.f32 %v5084_v21, %v3095_v49  ;;  %v3097_v37 = vadd.f32 %v3062_v6, %v2830_v40  ;;  %v3128_v30 = vmul.f32 %v5084_v21, %v3092_v54 }
 0x2d4   : > { %3229 = vst.msk [vmem:[%s5103_s22 + $0xd0] sm:$0xff] %vm277_vm2, %v3197_v60  ;;  %v3130_v55 = vmul.f32 %v5084_v21, %v3094_v3 }
 0x2d5   : > { %v3167_v44 = vadd.f32 %v5092_v25, %v3131_v33  ;;  %v3133_v9 = vmul.f32 %v5084_v21, %v3097_v37  ;;  %v3164_v1 = vadd.f32 %v5092_v25, %v3128_v30 }
 0x2d6   : > { %v3166_v46 = vadd.f32 %v5092_v25, %v3130_v55 }
 0x2d7   : > { %v3199_v5 = vmax.f32 %v3167_v44, 0.0  ;;  %v3169_v22 = vadd.f32 %v5092_v25, %v3133_v9  ;;  %v3196_v51 = vmax.f32 %v3164_v1, 0.0 }
 0x2d8   : > { %v3198_v15 = vmax.f32 %v3166_v46, 0.0  ;;  %v3044_v17 = vpop.f32.mrf.mxu2 }
 0x2d9   : > { %3231 = vst.msk [vmem:[%s5103_s22 + $0xe0] sm:$0xff] %vm277_vm2, %v3199_v5  ;;  %v3201_v42 = vmax.f32 %v3169_v22, 0.0  ;;  %v3096_v52 = vadd.f32 %v3044_v17, %v2829_v48 }
 0x2da   : > { %3228 = vst.msk [vmem:[%s5103_s22 + $0xc8] sm:$0xff] %vm277_vm2, %v3196_v51  ;;  %v3064_v41 = vpop.f32.mrf.mxu3 }
 0x2db   : > { %3233 = vst.msk [vmem:[%s5103_s22 + $0xf0] sm:$0xff] %vm277_vm2, %v3201_v42  ;;  %v3132_v18 = vmul.f32 %v5084_v21, %v3096_v52  ;;  %v3098_v20 = vadd.f32 %v3064_v41, %v2831_v34 }
 0x2dc   : > { %3230 = vst.msk [vmem:[%s5103_s22 + $0xd8] sm:$0xff] %vm277_vm2, %v3198_v15 }
 0x2dd   : > { %v3168_v47 = vadd.f32 %v5092_v25, %v3132_v18  ;;  %v3134_v62 = vmul.f32 %v5084_v21, %v3098_v20 }
 0x2df   : > { %v3200_v27 = vmax.f32 %v3168_v47, 0.0  ;;  %v3170_v38 = vadd.f32 %v5092_v25, %v3134_v62 }
 0x2e1   : > { %3232 = vst.msk [vmem:[%s5103_s22 + $0xe8] sm:$0xff] %vm277_vm2, %v3200_v27  ;;  %v3202_v19 = vmax.f32 %v3170_v38, 0.0 }
 0x2e3   : > { %3234 = vst.msk [vmem:[%s5103_s22 + $0xf8] sm:$0xff] %vm277_vm2, %v3202_v19 }
 0x2e4 PF: > { %s14_s15 = sadd.s32 1, %s3574_s15  }
 0x2e5   : > { %p11_p4 = scmp.ge.s32.totalorder %s14_s15, 4  }
 0x2e7   :  { %13 = sbr.rel (!%p11_p4) target bundleno = 1 (0x1), region = 74 }

// kernel: basic_block_forward.3
= control target key start
LH: loop header
LB: loop body
LE: loop exit
PB: predicated region body
PF: predicated region fallthrough
CT: control target
= control target key end

     0   :  { %s3732_s18 = smov 0   ;;  %s5453_s0 = inlined_call_operand.vmem [shape: bf16[2,18,18,4], index: 0, kind: input, shape index: {}]   ;;  %s5454_s1 = inlined_call_operand.vmem [shape: bf16[3,3,4,4], index: 1, kind: input, shape index: {}]   ;;  %s5455_s2 = inlined_call_operand.vmem [shape: f32[1,1,4], index: 2, kind: input, shape index: {}]   ;;  %s5456_s3 = inlined_call_operand.vmem [shape: f32[1,1,4], index: 3, kind: input, shape index: {}]   ;;  %s5457_s4 = inlined_call_operand.vmem [shape: f32[2,16,16,4], index: 4, kind: input, shape index: {}]   ;;  %s5458_s5 = inlined_call_operand.vmem [shape: f32[2,16,16,4], index: 5, kind: output, shape index: {}]  }
   0x1 LB: > { %s3413_s19 = sadd.s32 4294967295, %s3700_s18   ;;  %p3417_p0 = scmp.ge.s32.totalorder %s3700_s18, 1  ;;  %s3700_s18 = sphi %s3732_s18, %s15_s18  }
   0x2   : > { %p197_p1 = scmp.lt.s32.totalorder %s3700_s18, 3 }
   0x4   : > { %p198_p2 = pnand %p3417_p0, %p197_p1 }
   0x6   : > { %201 = sbr.rel (%p198_p2) target bundleno = 742 (0x2e6), region = 40 }
   0xb   : > { %v3423_v0 = vld [vmem:[%s5454_s1 + $0x2] sm:$0x3]  ;;  %vm328_vm0 = vcmask 1041408   ;;  %p230_p3 = scmp.lt.s32.totalorder %s3413_s19, 1  ;;  %vm311_vm1 = vsmask.f32 7424 }
   0xc   : > { %v3744_v1 = vsel %vm328_vm0, %v3423_v0, 0  ;;  %vm324_vm2 = vcmask 31744   ;;  %vm1162_vm3 = vcmask 1046528  }
   0xd   : > { %339 = vmatpush.bf16.msra.mxu0 %v3744_v1  ;;  %376 = vmatpush.bf16.msra.mxu1 %v3744_v1  ;;  %s5569_s19 = smov (!%p230_p3, %s3413_s19), 1 }
   0xe   : > { %413 = vmatpush.bf16.msra.mxu2 %v3744_v1  ;;  %450 = vmatpush.bf16.msra.mxu3 %v3744_v1  ;;  %s3669_s22 = smul.u32 216, %s5569_s19  ;;  %s3649_s17 = sshll.u32 %s5569_s19, 8 }
   0xf   : > { %s5226_s24 = scalar_lea.vmem %s5457_s4, %s3649_s17  ;;  %s5246_s28 = scalar_lea.vmem %s5458_s5, %s3649_s17 }
  0x10   : > { %s3760_s25 = scalar_lea.vmem %s5453_s0, %s3669_s22 }
  0x11   : > { %487 = vmatpush.bf16.msrb.mxu0 %v3744_v1  ;;  %524 = vmatpush.bf16.msrb.mxu1 %v3744_v1  ;;  %v3763_v2 = vld [vmem:[%s3760_s25] sm:$0xff]  ;;  %v248_v3 = vld [vmem:[%s3760_s25 + $0x8] sm:$0x1]  ;;  %v3767_v4 = vld [vmem:[%s3760_s25 + $0xc] sm:$0xff] }
  0x12   : > { %561 = vmatpush.bf16.msrb.mxu2 %v3744_v1  ;;  %598 = vmatpush.bf16.msrb.mxu3 %v3744_v1  ;;  %v308_v5 = vunpack.c.l.b16 %v248_v3  ;;  %v251_v6 = vld [vmem:[%s3760_s25 + $0x14] sm:$0x1]  ;;  %v3771_v7 = vld [vmem:[%s3760_s25 + $0x18] sm:$0xff]  ;;  %v254_v8 = vld [vmem:[%s3760_s25 + $0x20] sm:$0x1]  ;;  %v313_v9 = vshrl.u32 %v3763_v2, 16 }
  0x13   : > { %v315_v10 = vshll.u32 %v3763_v2, 16  ;;  %v351_v11 = vunpack.c.l.b16 %v251_v6  ;;  %v355_v12 = vshrl.u32 %v3767_v4, 16  ;;  %v257_v13 = vld [vmem:[%s3760_s25 + $0x2c] sm:$0x1]  ;;  %v357_v15 = vshll.u32 %v3767_v4, 16  ;;  %v3783_v18 = vld [vmem:[%s3760_s25 + $0x24] sm:$0xff] }
  0x14   : > { %v3778_v14 = vpack.c.b16 %v308_v5, %v308_v5  ;;  %v388_v16 = vunpack.c.l.b16 %v254_v8  ;;  %v392_v17 = vshrl.u32 %v3771_v7, 16  ;;  %v394_v21 = vshll.u32 %v3771_v7, 16  ;;  %v260_v27 = vld [vmem:[%s3760_s25 + $0x38] sm:$0x1]  ;;  %v3797_v32 = vld [vmem:[%s3760_s25 + $0x30] sm:$0xff]  ;;  %v3803_v41 = vld [vmem:[%s3760_s25 + $0x3c] sm:$0xff] }
  0x15   : > { %v317_v19 = vrot.slane %v315_v10, 1  ;;  %v3785_v20 = vpack.c.b16 %v351_v11, %v351_v11  ;;  %v425_v22 = vunpack.c.l.b16 %v257_v13  ;;  %v359_v24 = vrot.slane %v357_v15, 1  ;;  %v263_v42 = vld [vmem:[%s3760_s25 + $0x44] sm:$0x1]  ;;  %v3808_v46 = vld [vmem:[%s3760_s25 + $0x48] sm:$0xff]  ;;  %v3828_v57 = vld [vmem:[%s3760_s25 + $0x54] sm:$0xff] }
  0x16   : > { %v320_v23 = vshll.u32 %v3778_v14, 16  ;;  %v3789_v25 = vpack.c.b16 %v388_v16, %v388_v16  ;;  %v429_v26 = vshrl.u32 %v3783_v18, 16  ;;  %v396_v30 = vrot.slane %v394_v21, 1  ;;  %v266_v47 = vld [vmem:[%s3760_s25 + $0x50] sm:$0x1] }
  0x17   : > { %v318_v28 = vor.u32 %v317_v19, %v313_v9  ;;  %v362_v29 = vshll.u32 %v3785_v20, 16  ;;  %v3794_v31 = vpack.c.b16 %v425_v22, %v425_v22  ;;  %v360_v34 = vor.u32 %v359_v24, %v355_v12  ;;  %v269_v58 = vld [vmem:[%s3760_s25 + $0x5c] sm:$0x1] }
  0x18   : > { %v322_v33 = vrot.slane %v320_v23, 1  ;;  %v399_v35 = vshll.u32 %v3789_v25, 16  ;;  %v431_v36 = vshll.u32 %v3783_v18, 16  ;;  %v397_v38 = vor.u32 %v396_v30, %v392_v17  ;;  %v3858_v30 = vld [vmem:[%s3760_s25 + $0x60] sm:$0xff] }
  0x19   : > { %v364_v37 = vrot.slane %v362_v29, 1  ;;  %v436_v39 = vshll.u32 %v3794_v31, 16  ;;  %v462_v40 = vunpack.c.l.b16 %v260_v27  ;;  %v468_v50 = vshll.u32 %v3797_v32, 16  ;;  %v275_v29 = vld [vmem:[%s3760_s25 + $0x74] sm:$0x1] }
  0x1a   : > { %v323_v43 = vsel %vm311_vm1, %v318_v28, %v322_v33  ;;  %v401_v44 = vrot.slane %v399_v35, 1  ;;  %v433_v45 = vrot.slane %v431_v36, 1  ;;  %v499_v54 = vunpack.c.l.b16 %v263_v42  ;;  %v278_v33 = vld [vmem:[%s3760_s25 + $0x80] sm:$0x1]  ;;  %v281_v42 = vld [vmem:[%s3760_s25 + $0x8c] sm:$0x1] }
  0x1b   : > { %3428 = vmatmul.msk.bf16.vlgmr.msra.gmra.mxu0 %vm324_vm2, %v323_v43  ;;  %v3813_v48 = vsel %vm311_vm1, %v360_v34, %v364_v37  ;;  %v438_v49 = vrot.slane %v436_v39, 1  ;;  %v3821_v53 = vpack.c.b16 %v462_v40, %v462_v40  ;;  %v505_v55 = vshll.u32 %v3803_v41, 16  ;;  %v3868_v39 = vld [vmem:[%s3760_s25 + $0x6c] sm:$0xff] }
  0x1c   : > { %3433 = vmatmul.msk.bf16.vlgmr.msra.gmra.mxu1 %vm324_vm2, %v3813_v48  ;;  %v3819_v51 = vsel %vm311_vm1, %v397_v38, %v401_v44  ;;  %v434_v52 = vor.u32 %v433_v45, %v429_v26  ;;  %635 = vmatpush.bf16.msra.mxu0 %v3744_v1  ;;  %v536_v56 = vunpack.c.l.b16 %v266_v47  ;;  %v3835_v60 = vpack.c.b16 %v499_v54, %v499_v54  ;;  %v272_v26 = vld [vmem:[%s3760_s25 + $0x68] sm:$0x1]  ;;  %v3875_v44 = vld [vmem:[%s3760_s25 + $0x78] sm:$0xff] }
  0x1d   : > { %3438 = vmatmul.msk.bf16.vlgmr.msra.gmra.mxu2 %vm324_vm2, %v3819_v51  ;;  %672 = vmatpush.bf16.msra.mxu1 %v3744_v1  ;;  %v542_v61 = vshll.u32 %v3808_v46, 16  ;;  %v466_v62 = vshrl.u32 %v3797_v32, 16  ;;  %v470_v63 = vrot.slane %v468_v50, 1  ;;  %v473_v3 = vshll.u32 %v3821_v53, 16 }
  0x1e   : > { %v3833_v59 = vsel %vm311_vm1, %v434_v52, %v438_v49  ;;  %709 = vmatpush.bf16.msra.mxu2 %v3744_v1  ;;  %v3842_v0 = vpack.c.b16 %v536_v56, %v536_v56  ;;  %v573_v5 = vunpack.c.l.b16 %v269_v58  ;;  %v503_v6 = vshrl.u32 %v3803_v41, 16  ;;  %v3888_v52 = vld [vmem:[%s3760_s25 + $0x84] sm:$0xff] }
  0x1f   : > { %3443 = vmatmul.msk.bf16.vlgmr.msra.gmra.mxu3 %vm324_vm2, %v3833_v59  ;;  %v507_v8 = vrot.slane %v505_v55, 1  ;;  %v510_v9 = vshll.u32 %v3835_v60, 16  ;;  %v579_v10 = vshll.u32 %v3828_v57, 16  ;;  %v540_v11 = vshrl.u32 %v3808_v46, 16 }
  0x20   : > { %746 = vmatpush.bf16.msra.mxu3 %v3744_v1  ;;  %v544_v12 = vrot.slane %v542_v61, 1  ;;  %v547_v13 = vshll.u32 %v3842_v0, 16  ;;  %v3851_v15 = vpack.c.b16 %v573_v5, %v573_v5  ;;  %v471_v16 = vor.u32 %v470_v63, %v466_v62 }
  0x21   : > { %v475_v17 = vrot.slane %v473_v3, 1  ;;  %v577_v19 = vshrl.u32 %v3828_v57, 16  ;;  %v581_v21 = vrot.slane %v579_v10, 1  ;;  %v508_v23 = vor.u32 %v507_v8, %v503_v6 }
  0x22   : > { %v584_v22 = vshll.u32 %v3851_v15, 16  ;;  %v512_v24 = vrot.slane %v510_v9, 1  ;;  %v545_v27 = vor.u32 %v544_v12, %v540_v11  ;;  %v549_v28 = vrot.slane %v547_v13, 1 }
  0x23   : > { %v3862_v34 = vsel %vm311_vm1, %v471_v16, %v475_v17  ;;  %v582_v35 = vor.u32 %v581_v21, %v577_v19  ;;  %v610_v37 = vunpack.c.l.b16 %v272_v26  ;;  %v647_v40 = vunpack.c.l.b16 %v275_v29  ;;  %v300_v29 = vld [vmem:[%s5454_s1] sm:$0x3] }
  0x24   : > { %v586_v36 = vrot.slane %v584_v22, 1  ;;  %v3865_v38 = vsel %vm311_vm1, %v508_v23, %v512_v24  ;;  %v3872_v43 = vsel %vm311_vm1, %v545_v27, %v549_v28  ;;  %v684_v45 = vunpack.c.l.b16 %v278_v33  ;;  %v284_v24 = vld [vmem:[%s3760_s25 + $0x98] sm:$0x1]  ;;  %v287_v28 = vld [vmem:[%s3760_s25 + $0xa4] sm:$0x1]  ;;  %v3921_v33 = vld [vmem:[%s3760_s25 + $0x90] sm:$0xff] }
  0x25   : > { %v616_v47 = vshll.u32 %v3858_v30, 16  ;;  %v3885_v50 = vpack.c.b16 %v610_v37, %v610_v37  ;;  %v721_v54 = vunpack.c.l.b16 %v281_v42  ;;  %v3893_v55 = vpack.c.b16 %v647_v40, %v647_v40 }
  0x26   : > { %v3883_v49 = vsel %vm311_vm1, %v582_v35, %v586_v36  ;;  %v653_v56 = vshll.u32 %v3868_v39, 16  ;;  %v3897_v58 = vpack.c.b16 %v684_v45, %v684_v45  ;;  %v690_v61 = vshll.u32 %v3875_v44, 16  ;;  %v290_v35 = vld [vmem:[%s3760_s25 + $0xb0] sm:$0x1] }
  0x27   : > { %v614_v62 = vshrl.u32 %v3858_v30, 16  ;;  %v618_v63 = vrot.slane %v616_v47, 1  ;;  %v621_v3 = vshll.u32 %v3885_v50, 16  ;;  %v3905_v5 = vpack.c.b16 %v721_v54, %v721_v54  ;;  %v3931_v47 = vld [vmem:[%s3760_s25 + $0x9c] sm:$0xff] }
  0x28   : > { %v727_v6 = vshll.u32 %v3888_v52, 16  ;;  %v651_v8 = vshrl.u32 %v3868_v39, 16  ;;  %v655_v9 = vrot.slane %v653_v56, 1  ;;  %v658_v10 = vshll.u32 %v3893_v55, 16  ;;  %v293_v56 = vld [vmem:[%s3760_s25 + $0xbc] sm:$0x1] }
  0x29   : > { %v688_v11 = vshrl.u32 %v3875_v44, 16  ;;  %v692_v12 = vrot.slane %v690_v61, 1  ;;  %v695_v13 = vshll.u32 %v3897_v58, 16  ;;  %v619_v16 = vor.u32 %v618_v63, %v614_v62  ;;  %v3941_v63 = vld [vmem:[%s3760_s25 + $0xa8] sm:$0xff] }
  0x2a   : > { %v623_v17 = vrot.slane %v621_v3, 1  ;;  %v725_v19 = vshrl.u32 %v3888_v52, 16  ;;  %v729_v21 = vrot.slane %v727_v6, 1  ;;  %v656_v22 = vor.u32 %v655_v9, %v651_v8 }
  0x2b   : > { %3448 = vmatmul.msk.bf16.vlgmr.msrb.gmra.mxu0 %vm324_vm2, %v3862_v34  ;;  %v660_v23 = vrot.slane %v658_v10, 1  ;;  %v693_v26 = vor.u32 %v692_v12, %v688_v11  ;;  %v697_v27 = vrot.slane %v695_v13, 1  ;;  %v758_v42 = vunpack.c.l.b16 %v284_v24  ;;  %v3954_v10 = vld [vmem:[%s3760_s25 + $0xb4] sm:$0xff] }
  0x2c   : > { %3453 = vmatmul.msk.bf16.vlgmr.msrb.gmra.mxu1 %vm324_vm2, %v3865_v38  ;;  %783 = vmatpush.bf16.msrb.mxu0 %v3744_v1  ;;  %v3925_v36 = vsel %vm311_vm1, %v619_v16, %v623_v17  ;;  %v730_v37 = vor.u32 %v729_v21, %v725_v19  ;;  %v795_v54 = vunpack.c.l.b16 %v287_v28  ;;  %v3935_v61 = vsel %vm328_vm0, %v300_v29, 0 }
  0x2d   : > { %3458 = vmatmul.msk.bf16.vlgmr.msrb.gmra.mxu2 %vm324_vm2, %v3872_v43  ;;  %820 = vmatpush.bf16.msrb.mxu1 %v3744_v1  ;;  %v3928_v45 = vsel %vm311_vm1, %v656_v22, %v660_v23  ;;  %v3938_v62 = vsel %vm311_vm1, %v693_v26, %v697_v27  ;;  %v832_v3 = vunpack.c.l.b16 %v290_v35  ;;  %v764_v6 = vshll.u32 %v3921_v33, 16 }
  0x2e   : > { %857 = vmatpush.bf16.msrb.mxu2 %v3744_v1  ;;  %5503 = vst [vmem:[#allocation2_spill] sm:$0xff] %v3928_v45  ;;  %v3951_v9 = vpack.c.b16 %v758_v42, %v758_v42  ;;  %v869_v11 = vunpack.c.l.b16 %v293_v56  ;;  %v3959_v12 = vpack.c.b16 %v795_v54, %v795_v54  ;;  %v801_v13 = vshll.u32 %v3931_v47, 16 }
  0x2f   : > { %3463 = vmatmul.msk.bf16.vlgmr.msrb.gmra.mxu3 %vm324_vm2, %v3883_v49  ;;  %5504 = vst [vmem:[#allocation3_spill] sm:$0xff] %v3938_v62  ;;  %v3963_v16 = vpack.c.b16 %v832_v3, %v832_v3  ;;  %v838_v17 = vshll.u32 %v3941_v63, 16  ;;  %v762_v19 = vshrl.u32 %v3921_v33, 16  ;;  %v766_v21 = vrot.slane %v764_v6, 1 }
  0x30   : > { %894 = vmatpush.bf16.msrb.mxu3 %v3744_v1  ;;  %v732_v1 = vshll.u32 %v3905_v5, 16  ;;  %v3971_v22 = vpack.c.b16 %v869_v11, %v869_v11  ;;  %v875_v23 = vshll.u32 %v3954_v10, 16  ;;  %v799_v24 = vshrl.u32 %v3931_v47, 16 }
  0x31   : > { %v803_v26 = vrot.slane %v801_v13, 1  ;;  %v806_v27 = vshll.u32 %v3959_v12, 16  ;;  %v836_v28 = vshrl.u32 %v3941_v63, 16  ;;  %v840_v29 = vrot.slane %v838_v17, 1 }
  0x32   : > { %v734_v40 = vrot.slane %v732_v1, 1  ;;  %v769_v1 = vshll.u32 %v3951_v9, 16  ;;  %v843_v35 = vshll.u32 %v3963_v16, 16  ;;  %v873_v42 = vshrl.u32 %v3954_v10, 16 }
  0x33   : > { %v877_v54 = vrot.slane %v875_v23, 1  ;;  %v880_v56 = vshll.u32 %v3971_v22, 16  ;;  %v804_v3 = vor.u32 %v803_v26, %v799_v24  ;;  %v808_v6 = vrot.slane %v806_v27, 1 }
  0x34   : > { %v3949_v8 = vsel %vm311_vm1, %v730_v37, %v734_v40  ;;  %v767_v37 = vor.u32 %v766_v21, %v762_v19  ;;  %v771_v40 = vrot.slane %v769_v1, 1  ;;  %v841_v11 = vor.u32 %v840_v29, %v836_v28 }
  0x35   : > { %5505 = vst [vmem:[#allocation4_spill] sm:$0xff] %v3949_v8  ;;  %v3985_v17 = vsel %vm311_vm1, %v804_v3, %v808_v6  ;;  %v1186_v1 = vrot.slane %v3767_v4, 1  ;;  %v1187_v23 = vrot.slane %v3785_v20, 1  ;;  %v1206_v24 = vrot.slane %v3771_v7, 1 }
  0x36   : > { %v3982_v13 = vsel %vm311_vm1, %v767_v37, %v771_v40  ;;  %5507 = vst [vmem:[#allocation6_spill] sm:$0xff] %v3985_v17  ;;  %v1207_v26 = vrot.slane %v3789_v25, 1  ;;  %v1226_v29 = vrot.slane %v3783_v18, 1  ;;  %v1266_v3 = vrot.slane %v3803_v41, 1 }
  0x37   : > { %5506 = vst [vmem:[#allocation5_spill] sm:$0xff] %v3982_v13  ;;  %v1267_v6 = vrot.slane %v3835_v60, 1 }
  0x38   : > { %v4076_v37 = vsel %vm1162_vm3, %v1206_v24, %v1207_v26  ;;  %v1307_v24 = vrot.slane %v3851_v15, 1 }
  0x39   : > { %5511 = vst [vmem:[#allocation10_spill] sm:$0xff] %v4076_v37  ;;  %v4118_v26 = vsel %vm1162_vm3, %v1266_v3, %v1267_v6  ;;  %v1327_v3 = vrot.slane %v3885_v50, 1  ;;  %v1346_v6 = vrot.slane %v3868_v39, 1  ;;  %v1386_v50 = vrot.slane %v3888_v52, 1 }
  0x3a   : > { %5514 = vst [vmem:[#allocation13_spill] sm:$0xff] %v4118_v26 }
  0x3b   : > { %3468 = vmatmul.msk.bf16.vlgmr.msra.gmra.mxu0 %vm324_vm2, %v3925_v36 }
  0x3c   : > { %3473 = vmatmul.msk.bf16.vlgmr.msra.gmra.mxu1 %vm324_vm2, %v3928_v45  ;;  %913 = vmatpush.bf16.msra.mxu0 %v3935_v61  ;;  %v882_v45 = vrot.slane %v880_v56, 1  ;;  %v1247_v56 = vrot.slane %v3821_v53, 1 }
  0x3d   : > { %3478 = vmatmul.msk.bf16.vlgmr.msra.gmra.mxu2 %vm324_vm2, %v3938_v62  ;;  %929 = vmatpush.bf16.msra.mxu1 %v3935_v61  ;;  %v878_v62 = vor.u32 %v877_v54, %v873_v42  ;;  %v1246_v54 = vrot.slane %v3797_v32, 1 }
  0x3e   : > { %945 = vmatpush.bf16.msra.mxu2 %v3935_v61 }
  0x3f   : > { %3483 = vmatmul.msk.bf16.vlgmr.msra.gmra.mxu3 %vm324_vm2, %v3949_v8  ;;  %v845_v8 = vrot.slane %v843_v35, 1  ;;  %v3995_v21 = vsel %vm311_vm1, %v878_v62, %v882_v45  ;;  %v3520_v45 = vld [vmem:[%s5454_s1 + $0x4] sm:$0x3]  ;;  %v1227_v35 = vrot.slane %v3794_v31, 1 }
  0x40   : > { %961 = vmatpush.bf16.msra.mxu3 %v3935_v61  ;;  %5509 = vst [vmem:[#allocation8_spill] sm:$0xff] %v3995_v21  ;;  %v4033_v62 = vsel %vm328_vm0, %v3520_v45, 0  ;;  %v1287_v45 = vrot.slane %v3842_v0, 1 }
  0x41   : > { %v3988_v19 = vsel %vm311_vm1, %v841_v11, %v845_v8  ;;  %v1164_v8 = vrot.slane %v3778_v14, 1  ;;  %v4073_v14 = vsel %vm1162_vm3, %v1186_v1, %v1187_v23  ;;  %v4082_v20 = vsel %vm1162_vm3, %v1226_v29, %v1227_v35 }
  0x42   : > { %5508 = vst [vmem:[#allocation7_spill] sm:$0xff] %v3988_v19  ;;  %v1286_v11 = vrot.slane %v3808_v46, 1  ;;  %v4111_v1 = vsel %vm1162_vm3, %v1246_v54, %v1247_v56  ;;  %v1306_v23 = vrot.slane %v3828_v57, 1  ;;  %v1326_v56 = vrot.slane %v3858_v30, 1 }
  0x43   : > { %5510 = vst [vmem:[#allocation9_spill] sm:$0xff] %v4073_v14 }
  0x44   : > { %5512 = vst [vmem:[#allocation11_spill] sm:$0xff] %v4082_v20  ;;  %v4123_v0 = vsel %vm1162_vm3, %v1286_v11, %v1287_v45  ;;  %v1347_v11 = vrot.slane %v3893_v55, 1  ;;  %v1366_v45 = vrot.slane %v3875_v44, 1 }
  0x45   : > { %5513 = vst [vmem:[#allocation12_spill] sm:$0xff] %v4111_v1 }
  0x46   : > { %5515 = vst [vmem:[#allocation14_spill] sm:$0xff] %v4123_v0 }
  0x4b   : > { %3488 = vmatmul.msk.bf16.vlgmr.msrb.gmra.mxu0 %vm324_vm2, %v3982_v13 }
  0x4c   : > { %3493 = vmatmul.msk.bf16.vlgmr.msrb.gmra.mxu1 %vm324_vm2, %v3985_v17  ;;  %977 = vmatpush.bf16.msrb.mxu0 %v3935_v61 }
  0x4d   : > { %3498 = vmatmul.msk.bf16.vlgmr.msrb.gmra.mxu2 %vm324_vm2, %v3988_v19  ;;  %993 = vmatpush.bf16.msrb.mxu1 %v3935_v61 }
  0x4e   : > { %1009 = vmatpush.bf16.msrb.mxu2 %v3935_v61 }
  0x4f   : > { %3503 = vmatmul.msk.bf16.vlgmr.msrb.gmra.mxu3 %vm324_vm2, %v3995_v21  ;;  %v1467_v21 = vrot.slane %v3971_v22, 1 }
  0x50   : > { %1025 = vmatpush.bf16.msrb.mxu3 %v3935_v61 }
  0x5b   : > { %3504 = vmatmul.msk.bf16.vlgmr.msra.gmra.mxu0 %vm324_vm2, %v3763_v2 }
  0x5c   : > { %3505 = vmatmul.msk.bf16.vlgmr.msra.gmra.mxu1 %vm324_vm2, %v3767_v4  ;;  %1041 = vmatpush.bf16.msra.mxu0 %v3935_v61 }
  0x5d   : > { %3506 = vmatmul.msk.bf16.vlgmr.msra.gmra.mxu2 %vm324_vm2, %v3771_v7  ;;  %1057 = vmatpush.bf16.msra.mxu1 %v3935_v61 }
  0x5e   : > { %1073 = vmatpush.bf16.msra.mxu2 %v3935_v61 }
  0x5f   : > { %3507 = vmatmul.msk.bf16.vlgmr.msra.gmra.mxu3 %vm324_vm2, %v3783_v18 }
  0x60   : > { %1089 = vmatpush.bf16.msra.mxu3 %v3935_v61 }
  0x6b   : > { %3508 = vmatmul.msk.bf16.vlgmr.msrb.gmra.mxu0 %vm324_vm2, %v3797_v32 }
  0x6c   : > { %3509 = vmatmul.msk.bf16.vlgmr.msrb.gmra.mxu1 %vm324_vm2, %v3803_v41  ;;  %1105 = vmatpush.bf16.msrb.mxu0 %v3935_v61 }
  0x6d   : > { %3510 = vmatmul.msk.bf16.vlgmr.msrb.gmra.mxu2 %vm324_vm2, %v3808_v46  ;;  %1121 = vmatpush.bf16.msrb.mxu1 %v3935_v61 }
  0x6e   : > { %1137 = vmatpush.bf16.msrb.mxu2 %v3935_v61 }
  0x6f   : > { %3511 = vmatmul.msk.bf16.vlgmr.msrb.gmra.mxu3 %vm324_vm2, %v3828_v57 }
  0x70   : > { %1153 = vmatpush.bf16.msrb.mxu3 %v3935_v61  ;;  %v1163_v61 = vrot.slane %v3763_v2, 1 }
  0x72   : > { %v1165_v28 = vsel %vm1162_vm3, %v1163_v61, %v1164_v8 }
  0x7b   : > { %3512 = vmatmul.msk.bf16.vlgmr.msra.gmra.mxu0 %vm324_vm2, %v3858_v30 }
  0x7c   : > { %3513 = vmatmul.msk.bf16.vlgmr.msra.gmra.mxu1 %vm324_vm2, %v3868_v39  ;;  %1179 = vmatpush.bf16.msra.mxu0 %v4033_v62 }
  0x7d   : > { %3514 = vmatmul.msk.bf16.vlgmr.msra.gmra.mxu2 %vm324_vm2, %v3875_v44  ;;  %1199 = vmatpush.bf16.msra.mxu1 %v4033_v62 }
  0x7e   : > { %1219 = vmatpush.bf16.msra.mxu2 %v4033_v62 }
  0x7f   : > { %3515 = vmatmul.msk.bf16.vlgmr.msra.gmra.mxu3 %vm324_vm2, %v3888_v52 }
  0x80   : > { %1239 = vmatpush.bf16.msra.mxu3 %v4033_v62 }
  0x8b   : > { %3516 = vmatmul.msk.bf16.vlgmr.msrb.gmra.mxu0 %vm324_vm2, %v3921_v33 }
  0x8c   : > { %3517 = vmatmul.msk.bf16.vlgmr.msrb.gmra.mxu1 %vm324_vm2, %v3931_v47  ;;  %1259 = vmatpush.bf16.msrb.mxu0 %v4033_v62 }
  0x8d   : > { %3518 = vmatmul.msk.bf16.vlgmr.msrb.gmra.mxu2 %vm324_vm2, %v3941_v63  ;;  %1279 = vmatpush.bf16.msrb.mxu1 %v4033_v62 }
  0x8e   : > { %1299 = vmatpush.bf16.msrb.mxu2 %v4033_v62 }
  0x8f   : > { %3519 = vmatmul.msk.bf16.vlgmr.msrb.gmra.mxu3 %vm324_vm2, %v3954_v10 }
  0x90   : > { %1319 = vmatpush.bf16.msrb.mxu3 %v4033_v62 }
  0x98   : > { %v4065_v27 = vpop.f32.mrf.mxu0 }
  0x99   : > { %v4070_v2 = vpop.f32.mrf.mxu1 }
  0x9b   : > { %3521 = vmatmul.msk.bf16.vlgmr.msra.gmra.mxu0 %vm324_vm2, %v1165_v28  ;;  %v4130_v28 = vsel %vm1162_vm3, %v1306_v23, %v1307_v24  ;;  %v1367_v23 = vrot.slane %v3897_v58, 1 }
  0x9c   : > { %3522 = vmatmul.msk.bf16.vlgmr.msra.gmra.mxu1 %vm324_vm2, %v4073_v14  ;;  %1339 = vmatpush.bf16.msra.mxu0 %v4033_v62  ;;  %5516 = vst [vmem:[#allocation15_spill] sm:$0xff] %v4130_v28  ;;  %v1466_v14 = vrot.slane %v3954_v10, 1 }
  0x9d   : > { %3523 = vmatmul.msk.bf16.vlgmr.msra.gmra.mxu2 %vm324_vm2, %v4076_v37  ;;  %1359 = vmatpush.bf16.msra.mxu1 %v4033_v62  ;;  %v4177_v37 = vsel %vm1162_vm3, %v1366_v45, %v1367_v23  ;;  %v1407_v45 = vrot.slane %v3951_v9, 1  ;;  %v1426_v23 = vrot.slane %v3931_v47, 1 }
  0x9e   : > { %1379 = vmatpush.bf16.msra.mxu2 %v4033_v62  ;;  %5519 = vst [vmem:[#allocation18_spill] sm:$0xff] %v4177_v37 }
  0x9f   : > { %3524 = vmatmul.msk.bf16.vlgmr.msra.gmra.mxu3 %vm324_vm2, %v4082_v20 }
  0xa0   : > { %v4091_v25 = vpop.f32.mrf.mxu2  ;;  %v4093_v31 = vpop.f32.mrf.mxu0  ;;  %1399 = vmatpush.bf16.msra.mxu3 %v4033_v62 }
  0xa1   : > { %v4096_v40 = vpop.f32.mrf.mxu1 }
  0xa2   : > { %v4098_v42 = vpop.f32.mrf.mxu3 }
  0xa8   : > { %v4106_v61 = vpop.f32.mrf.mxu2  ;;  %v4108_v8 = vpop.f32.mrf.mxu0 }
  0xa9   : > { %v4115_v53 = vpop.f32.mrf.mxu1 }
  0xaa   : > { %v4120_v60 = vpop.f32.mrf.mxu3 }
  0xab   : > { %3525 = vmatmul.msk.bf16.vlgmr.msrb.gmra.mxu0 %vm324_vm2, %v4111_v1  ;;  %v4169_v1 = vsel %vm1162_vm3, %v1346_v6, %v1347_v11  ;;  %v1406_v11 = vrot.slane %v3921_v33, 1 }
  0xac   : > { %3526 = vmatmul.msk.bf16.vlgmr.msrb.gmra.mxu1 %vm324_vm2, %v4118_v26  ;;  %1419 = vmatpush.bf16.msrb.mxu0 %v4033_v62  ;;  %v1387_v26 = vrot.slane %v3905_v5, 1  ;;  %5518 = vst [vmem:[#allocation17_spill] sm:$0xff] %v4169_v1 }
  0xad   : > { %3527 = vmatmul.msk.bf16.vlgmr.msrb.gmra.mxu2 %vm324_vm2, %v4123_v0  ;;  %1439 = vmatpush.bf16.msrb.mxu1 %v4033_v62  ;;  %v4162_v0 = vsel %vm1162_vm3, %v1326_v56, %v1327_v3 }
  0xae   : > { %1459 = vmatpush.bf16.msrb.mxu2 %v4033_v62  ;;  %5517 = vst [vmem:[#allocation16_spill] sm:$0xff] %v4162_v0  ;;  %v4184_v5 = vsel %vm1162_vm3, %v1386_v50, %v1387_v26  ;;  %v1446_v50 = vrot.slane %v3941_v63, 1 }
  0xaf   : > { %3528 = vmatmul.msk.bf16.vlgmr.msrb.gmra.mxu3 %vm324_vm2, %v4130_v28  ;;  %5520 = vst [vmem:[#allocation19_spill] sm:$0xff] %v4184_v5 }
  0xb0   : > { %v4139_v15 = vpop.f32.mrf.mxu2  ;;  %v4141_v29 = vpop.f32.mrf.mxu0  ;;  %1479 = vmatpush.bf16.msrb.mxu3 %v4033_v62  ;;  %v3537_v62 = vld [vmem:[%s5454_s1 + $0x6] sm:$0x3] }
  0xb1   : > { %v4144_v35 = vpop.f32.mrf.mxu1  ;;  %v4172_v58 = vsel %vm328_vm0, %v3537_v62, 0  ;;  %v1427_v62 = vrot.slane %v3959_v12, 1 }
  0xb2   : > { %v4146_v54 = vpop.f32.mrf.mxu3 }
  0xb3   : > { %v4220_v19 = vsel %vm1162_vm3, %v1426_v23, %v1427_v62 }
  0xb4   : > { %5522 = vst [vmem:[#allocation21_spill] sm:$0xff] %v4220_v19 }
  0xb8   : > { %v4157_v24 = vpop.f32.mrf.mxu2  ;;  %v4159_v28 = vpop.f32.mrf.mxu0 }
  0xb9   : > { %v4166_v55 = vpop.f32.mrf.mxu1 }
  0xba   : > { %v4174_v20 = vpop.f32.mrf.mxu3 }
  0xbb   : > { %3529 = vmatmul.msk.bf16.vlgmr.msra.gmra.mxu0 %vm324_vm2, %v4162_v0  ;;  %v4213_v0 = vsel %vm1162_vm3, %v1406_v11, %v1407_v45  ;;  %v4232_v11 = vsel %vm1162_vm3, %v1466_v14, %v1467_v21 }
  0xbc   : > { %3530 = vmatmul.msk.bf16.vlgmr.msra.gmra.mxu1 %vm324_vm2, %v4169_v1  ;;  %1530 = vmatpush.bf16.msra.mxu0 %v4172_v58  ;;  %5521 = vst [vmem:[#allocation20_spill] sm:$0xff] %v4213_v0 }
  0xbd   : > { %3531 = vmatmul.msk.bf16.vlgmr.msra.gmra.mxu2 %vm324_vm2, %v4177_v37  ;;  %1544 = vmatpush.bf16.msra.mxu1 %v4172_v58  ;;  %5524 = vst [vmem:[#allocation23_spill] sm:$0xff] %v4232_v11 }
  0xbe   : > { %1558 = vmatpush.bf16.msra.mxu2 %v4172_v58 }
  0xbf   : > { %3532 = vmatmul.msk.bf16.vlgmr.msra.gmra.mxu3 %vm324_vm2, %v4184_v5  ;;  %v1447_v5 = vrot.slane %v3963_v16, 1 }
  0xc0   : > { %v4193_v56 = vpop.f32.mrf.mxu2  ;;  %v4195_v3 = vpop.f32.mrf.mxu0  ;;  %1572 = vmatpush.bf16.msra.mxu3 %v4172_v58 }
  0xc1   : > { %v4198_v26 = vpop.f32.mrf.mxu1  ;;  %v4225_v16 = vsel %vm1162_vm3, %v1446_v50, %v1447_v5 }
  0xc2   : > { %v4200_v6 = vpop.f32.mrf.mxu3  ;;  %5523 = vst [vmem:[#allocation22_spill] sm:$0xff] %v4225_v16 }
  0xc8   : > { %v4208_v37 = vpop.f32.mrf.mxu2  ;;  %v4210_v1 = vpop.f32.mrf.mxu0 }
  0xc9   : > { %v4217_v9 = vpop.f32.mrf.mxu1 }
  0xca   : > { %v4222_v12 = vpop.f32.mrf.mxu3 }
  0xcb   : > { %3533 = vmatmul.msk.bf16.vlgmr.msrb.gmra.mxu0 %vm324_vm2, %v4213_v0 }
  0xcc   : > { %3534 = vmatmul.msk.bf16.vlgmr.msrb.gmra.mxu1 %vm324_vm2, %v4220_v19  ;;  %1586 = vmatpush.bf16.msrb.mxu0 %v4172_v58 }
  0xcd   : > { %3535 = vmatmul.msk.bf16.vlgmr.msrb.gmra.mxu2 %vm324_vm2, %v4225_v16  ;;  %1600 = vmatpush.bf16.msrb.mxu1 %v4172_v58 }
  0xce   : > { %1614 = vmatpush.bf16.msrb.mxu2 %v4172_v58 }
  0xcf   : > { %3536 = vmatmul.msk.bf16.vlgmr.msrb.gmra.mxu3 %vm324_vm2, %v4232_v11 }
  0xd0   : > { %v4241_v22 = vpop.f32.mrf.mxu2  ;;  %v4243_v5 = vpop.f32.mrf.mxu0  ;;  %1628 = vmatpush.bf16.msrb.mxu3 %v4172_v58 }
  0xd1   : > { %v4246_v21 = vpop.f32.mrf.mxu1 }
  0xd2   : > { %v4248_v14 = vpop.f32.mrf.mxu3 }
  0xd8   : > { %v4250_v45 = vpop.f32.mrf.mxu2  ;;  %v915_v23 = vpop.f32.mrf.mxu0 }
  0xd9   : > { %v4253_v62 = vadd.f32 %v915_v23, %v4065_v27  ;;  %v931_v50 = vpop.f32.mrf.mxu1 }
  0xda   : > { %v4255_v16 = vpop.f32.mrf.mxu3  ;;  %v4258_v11 = vadd.f32 %v931_v50, %v4070_v2 }
  0xdb   : > { %3538 = vmatmul.msk.bf16.vlgmr.msra.gmra.mxu0 %vm324_vm2, %v3767_v4 }
  0xdc   : > { %3539 = vmatmul.msk.bf16.vlgmr.msra.gmra.mxu1 %vm324_vm2, %v3771_v7  ;;  %1642 = vmatpush.bf16.msra.mxu0 %v4172_v58 }
  0xdd   : > { %3540 = vmatmul.msk.bf16.vlgmr.msra.gmra.mxu2 %vm324_vm2, %v3783_v18  ;;  %1656 = vmatpush.bf16.msra.mxu1 %v4172_v58 }
  0xde   : > { %1670 = vmatpush.bf16.msra.mxu2 %v4172_v58 }
  0xdf   : > { %3541 = vmatmul.msk.bf16.vlgmr.msra.gmra.mxu3 %vm324_vm2, %v3797_v32 }
  0xe0   : > { %v947_v27 = vpop.f32.mrf.mxu2  ;;  %v917_v2 = vpop.f32.mrf.mxu0  ;;  %1684 = vmatpush.bf16.msra.mxu3 %v4172_v58 }
  0xe1   : > { %v4273_v4 = vadd.f32 %v947_v27, %v4091_v25  ;;  %v4276_v7 = vadd.f32 %v917_v2, %v4093_v31  ;;  %v933_v23 = vpop.f32.mrf.mxu1 }
  0xe2   : > { %v963_v50 = vpop.f32.mrf.mxu3  ;;  %v4279_v18 = vadd.f32 %v933_v23, %v4096_v40 }
  0xe3   : > { %v4282_v19 = vadd.f32 %v963_v50, %v4098_v42 }
  0xe8   : > { %v949_v0 = vpop.f32.mrf.mxu2  ;;  %v979_v32 = vpop.f32.mrf.mxu0 }
  0xe9   : > { %v4285_v17 = vadd.f32 %v949_v0, %v4106_v61  ;;  %v4288_v13 = vadd.f32 %v979_v32, %v4108_v8  ;;  %v995_v25 = vpop.f32.mrf.mxu1 }
  0xea   : > { %v965_v27 = vpop.f32.mrf.mxu3  ;;  %v4291_v31 = vadd.f32 %v995_v25, %v4115_v53 }
  0xeb   : > { %v4294_v2 = vadd.f32 %v965_v27, %v4120_v60  ;;  %3542 = vmatmul.msk.bf16.vlgmr.msrb.gmra.mxu0 %vm324_vm2, %v3803_v41 }
  0xec   : > { %3543 = vmatmul.msk.bf16.vlgmr.msrb.gmra.mxu1 %vm324_vm2, %v3808_v46  ;;  %1698 = vmatpush.bf16.msrb.mxu0 %v4172_v58 }
  0xed   : > { %3544 = vmatmul.msk.bf16.vlgmr.msrb.gmra.mxu2 %vm324_vm2, %v3828_v57  ;;  %1712 = vmatpush.bf16.msrb.mxu1 %v4172_v58 }
  0xee   : > { %1726 = vmatpush.bf16.msrb.mxu2 %v4172_v58 }
  0xef   : > { %3545 = vmatmul.msk.bf16.vlgmr.msrb.gmra.mxu3 %vm324_vm2, %v3858_v30  ;;  %v3558_v30 = vld [vmem:[%s5454_s1 + $0x8] sm:$0x3] }
  0xf0   : > { %v1011_v40 = vpop.f32.mrf.mxu2  ;;  %v981_v42 = vpop.f32.mrf.mxu0  ;;  %1748 = vmatpush.bf16.msrb.mxu3 %v4172_v58  ;;  %v4330_v23 = vsel %vm328_vm0, %v3558_v30, 0 }
  0xf1   : > { %v4309_v41 = vadd.f32 %v1011_v40, %v4139_v15  ;;  %v4312_v46 = vadd.f32 %v981_v42, %v4141_v29  ;;  %v997_v61 = vpop.f32.mrf.mxu1 }
  0xf2   : > { %v1027_v8 = vpop.f32.mrf.mxu3  ;;  %v4315_v57 = vadd.f32 %v997_v61, %v4144_v35 }
  0xf3   : > { %v4318_v53 = vadd.f32 %v1027_v8, %v4146_v54 }
  0xf8   : > { %v1013_v60 = vpop.f32.mrf.mxu2  ;;  %v1043_v0 = vpop.f32.mrf.mxu0 }
  0xf9   : > { %v4324_v15 = vadd.f32 %v1013_v60, %v4157_v24  ;;  %v4327_v29 = vadd.f32 %v1043_v0, %v4159_v28  ;;  %v1059_v58 = vpop.f32.mrf.mxu1 }
  0xfa   : > { %v1029_v35 = vpop.f32.mrf.mxu3  ;;  %v4333_v54 = vadd.f32 %v1059_v58, %v4166_v55 }
  0xfb   : > { %v4336_v50 = vadd.f32 %v1029_v35, %v4174_v20  ;;  %3546 = vmatmul.msk.bf16.vlgmr.msra.gmra.mxu0 %vm324_vm2, %v3868_v39 }
  0xfc   : > { %3547 = vmatmul.msk.bf16.vlgmr.msra.gmra.mxu1 %vm324_vm2, %v3875_v44  ;;  %1799 = vmatpush.bf16.msra.mxu0 %v4330_v23 }
  0xfd   : > { %3548 = vmatmul.msk.bf16.vlgmr.msra.gmra.mxu2 %vm324_vm2, %v3888_v52  ;;  %1813 = vmatpush.bf16.msra.mxu1 %v4330_v23 }
  0xfe   : > { %1827 = vmatpush.bf16.msra.mxu2 %v4330_v23 }
  0xff   : > { %3549 = vmatmul.msk.bf16.vlgmr.msra.gmra.mxu3 %vm324_vm2, %v3921_v33 }
 0x100   : > { %v1075_v20 = vpop.f32.mrf.mxu2  ;;  %v1045_v28 = vpop.f32.mrf.mxu0  ;;  %1841 = vmatpush.bf16.msra.mxu3 %v4330_v23 }
 0x101   : > { %v4351_v39 = vadd.f32 %v1075_v20, %v4193_v56  ;;  %v4354_v44 = vadd.f32 %v1045_v28, %v4195_v3  ;;  %v1061_v24 = vpop.f32.mrf.mxu1 }
 0x102   : > { %v1091_v52 = vpop.f32.mrf.mxu3  ;;  %v4357_v55 = vadd.f32 %v1061_v24, %v4198_v26  ;;  %v4377_v26 = vld [vmem:[%s3760_s25 + $0xc0] sm:$0xff] }
 0x103   : > { %v4360_v32 = vadd.f32 %v1091_v52, %v4200_v6 }
 0x108   : > { %v1077_v33 = vpop.f32.mrf.mxu2  ;;  %v1107_v25 = vpop.f32.mrf.mxu0 }
 0x109   : > { %v4363_v27 = vadd.f32 %v1077_v33, %v4208_v37  ;;  %v4366_v40 = vadd.f32 %v1107_v25, %v4210_v1  ;;  %v1123_v56 = vpop.f32.mrf.mxu1 }
 0x10a   : > { %v1093_v42 = vpop.f32.mrf.mxu3  ;;  %v4369_v3 = vadd.f32 %v1123_v56, %v4217_v9 }
 0x10b   : > { %v4372_v61 = vadd.f32 %v1093_v42, %v4222_v12  ;;  %3550 = vmatmul.msk.bf16.vlgmr.msrb.gmra.mxu0 %vm324_vm2, %v3931_v47 }
 0x10c   : > { %3551 = vmatmul.msk.bf16.vlgmr.msrb.gmra.mxu1 %vm324_vm2, %v3941_v63  ;;  %1855 = vmatpush.bf16.msrb.mxu0 %v4330_v23 }
 0x10d   : > { %3552 = vmatmul.msk.bf16.vlgmr.msrb.gmra.mxu2 %vm324_vm2, %v3954_v10  ;;  %1869 = vmatpush.bf16.msrb.mxu1 %v4330_v23 }
 0x10e   : > { %1883 = vmatpush.bf16.msrb.mxu2 %v4330_v23 }
 0x10f   : > { %3557 = vmatmul.msk.bf16.vlgmr.msrb.gmra.mxu3 %vm324_vm2, %v4377_v26 }
 0x110   : > { %v1139_v37 = vpop.f32.mrf.mxu2  ;;  %v1109_v1 = vpop.f32.mrf.mxu0  ;;  %1897 = vmatpush.bf16.msrb.mxu3 %v4330_v23 }
 0x111   : > { %v4390_v47 = vadd.f32 %v1139_v37, %v4241_v22  ;;  %v4393_v63 = vadd.f32 %v1109_v1, %v4243_v5  ;;  %v1125_v6 = vpop.f32.mrf.mxu1  ;;  %v3575_v1 = vld [vmem:[%s5454_s1 + $0xa] sm:$0x3] }
 0x112   : > { %v1155_v9 = vpop.f32.mrf.mxu3  ;;  %v4396_v10 = vadd.f32 %v1125_v6, %v4246_v21 }
 0x113   : > { %v4399_v12 = vadd.f32 %v1155_v9, %v4248_v14 }
 0x118   : > { %v1141_v8 = vpop.f32.mrf.mxu2  ;;  %v1181_v30 = vpop.f32.mrf.mxu0 }
 0x119   : > { %v4402_v60 = vadd.f32 %v1141_v8, %v4250_v45  ;;  %v4405_v0 = vadd.f32 %v1181_v30, %v4253_v62  ;;  %v1201_v22 = vpop.f32.mrf.mxu1  ;;  %v296_v8 = vld [vmem:[%s3760_s25 + $0xc8] sm:$0x1] }
 0x11a   : > { %v1157_v58 = vpop.f32.mrf.mxu3  ;;  %v4408_v5 = vadd.f32 %v1201_v22, %v4258_v11 }
 0x11b   : > { %v4411_v35 = vadd.f32 %v1157_v58, %v4255_v16  ;;  %3559 = vmatmul.msk.bf16.vlgmr.msra.gmra.mxu0 %vm324_vm2, %v3813_v48  ;;  %v5525_v58 = vld [vmem:[#allocation2_spill] sm:$0xff] }
 0x11c   : > { %3560 = vmatmul.msk.bf16.vlgmr.msra.gmra.mxu1 %vm324_vm2, %v3819_v51  ;;  %1911 = vmatpush.bf16.msra.mxu0 %v4330_v23 }
 0x11d   : > { %3561 = vmatmul.msk.bf16.vlgmr.msra.gmra.mxu2 %vm324_vm2, %v3833_v59  ;;  %1925 = vmatpush.bf16.msra.mxu1 %v4330_v23 }
 0x11e   : > { %1939 = vmatpush.bf16.msra.mxu2 %v4330_v23 }
 0x11f   : > { %3562 = vmatmul.msk.bf16.vlgmr.msra.gmra.mxu3 %vm324_vm2, %v3862_v34 }
 0x120   : > { %v1221_v16 = vpop.f32.mrf.mxu2  ;;  %v1183_v11 = vpop.f32.mrf.mxu0  ;;  %1953 = vmatpush.bf16.msra.mxu3 %v4330_v23 }
 0x121   : > { %v4426_v48 = vadd.f32 %v1221_v16, %v4273_v4  ;;  %v4429_v21 = vadd.f32 %v1183_v11, %v4276_v7  ;;  %v1203_v14 = vpop.f32.mrf.mxu1  ;;  %v5527_v16 = vld [vmem:[#allocation4_spill] sm:$0xff] }
 0x122   : > { %v1241_v45 = vpop.f32.mrf.mxu3  ;;  %v4432_v62 = vadd.f32 %v1203_v14, %v4279_v18 }
 0x123   : > { %v4435_v20 = vadd.f32 %v1241_v45, %v4282_v19  ;;  %v2007_v45 = vshll.u32 %v4377_v26, 16 }
 0x128   : > { %v1223_v28 = vpop.f32.mrf.mxu2  ;;  %v1261_v24 = vpop.f32.mrf.mxu0 }
 0x129   : > { %v4438_v52 = vadd.f32 %v1223_v28, %v4285_v17  ;;  %v4441_v33 = vadd.f32 %v1261_v24, %v4288_v13  ;;  %v1281_v4 = vpop.f32.mrf.mxu1 }
 0x12a   : > { %v1243_v25 = vpop.f32.mrf.mxu3  ;;  %v4444_v7 = vadd.f32 %v1281_v4, %v4291_v31 }
 0x12b   : > { %v4447_v56 = vadd.f32 %v1243_v25, %v4294_v2  ;;  %3563 = vmatmul.msk.bf16.vlgmr.msrb.gmra.mxu0 %vm324_vm2, %v3865_v38 }
 0x12c   : > { %3564 = vmatmul.msk.bf16.vlgmr.msrb.gmra.mxu1 %vm324_vm2, %v3872_v43  ;;  %1967 = vmatpush.bf16.msrb.mxu0 %v4330_v23 }
 0x12d   : > { %3565 = vmatmul.msk.bf16.vlgmr.msrb.gmra.mxu2 %vm324_vm2, %v3883_v49  ;;  %1981 = vmatpush.bf16.msrb.mxu1 %v4330_v23 }
 0x12e   : > { %1995 = vmatpush.bf16.msrb.mxu2 %v4330_v23 }
 0x12f   : > { %3566 = vmatmul.msk.bf16.vlgmr.msrb.gmra.mxu3 %vm324_vm2, %v3925_v36 }
 0x130   : > { %v1301_v13 = vpop.f32.mrf.mxu2  ;;  %v1263_v17 = vpop.f32.mrf.mxu0  ;;  %2026 = vmatpush.bf16.msrb.mxu3 %v4330_v23 }
 0x131   : > { %v4462_v19 = vadd.f32 %v1301_v13, %v4309_v41  ;;  %v4465_v18 = vadd.f32 %v1263_v17, %v4312_v46  ;;  %v1283_v31 = vpop.f32.mrf.mxu1 }
 0x132   : > { %v1321_v2 = vpop.f32.mrf.mxu3  ;;  %v4468_v42 = vadd.f32 %v1283_v31, %v4315_v57  ;;  %v4484_v57 = vsel %vm328_vm0, %v3575_v1, 0  ;;  %v2005_v31 = vshrl.u32 %v4377_v26, 16 }
 0x133   : > { %v4471_v37 = vadd.f32 %v1321_v2, %v4318_v53  ;;  %v2009_v2 = vrot.slane %v2007_v45, 1 }
 0x138   : > { %v1303_v6 = vpop.f32.mrf.mxu2  ;;  %v1341_v23 = vpop.f32.mrf.mxu0 }
 0x139   : > { %v4477_v41 = vadd.f32 %v1303_v6, %v4324_v15  ;;  %v4480_v46 = vadd.f32 %v1341_v23, %v4327_v29  ;;  %v1361_v9 = vpop.f32.mrf.mxu1  ;;  %v5526_v15 = vld [vmem:[#allocation3_spill] sm:$0xff]  ;;  %v2003_v29 = vunpack.c.l.b16 %v296_v8 }
 0x13a   : > { %v1323_v30 = vpop.f32.mrf.mxu3  ;;  %v4487_v53 = vadd.f32 %v1361_v9, %v4333_v54  ;;  %v5528_v54 = vld [vmem:[#allocation5_spill] sm:$0xff] }
 0x13b   : > { %v4490_v22 = vadd.f32 %v1323_v30, %v4336_v50  ;;  %3567 = vmatmul.msk.bf16.vlgmr.msra.gmra.mxu0 %vm324_vm2, %v5525_v58  ;;  %v4503_v14 = vpack.c.b16 %v2003_v29, %v2003_v29 }
 0x13c   : > { %3568 = vmatmul.msk.bf16.vlgmr.msra.gmra.mxu1 %vm324_vm2, %v5526_v15  ;;  %2077 = vmatpush.bf16.msra.mxu0 %v4484_v57 }
 0x13d   : > { %3569 = vmatmul.msk.bf16.vlgmr.msra.gmra.mxu2 %vm324_vm2, %v5527_v16  ;;  %2091 = vmatpush.bf16.msra.mxu1 %v4484_v57  ;;  %v2012_v1 = vshll.u32 %v4503_v14, 16 }
 0x13e   : > { %2105 = vmatpush.bf16.msra.mxu2 %v4484_v57 }
 0x13f   : > { %3570 = vmatmul.msk.bf16.vlgmr.msra.gmra.mxu3 %vm324_vm2, %v5528_v54  ;;  %v2014_v9 = vrot.slane %v2012_v1, 1 }
 0x140   : > { %v1381_v50 = vpop.f32.mrf.mxu2  ;;  %v1343_v11 = vpop.f32.mrf.mxu0  ;;  %2119 = vmatpush.bf16.msra.mxu3 %v4484_v57 }
 0x141   : > { %v4508_v28 = vadd.f32 %v1381_v50, %v4351_v39  ;;  %v4511_v24 = vadd.f32 %v1343_v11, %v4354_v44  ;;  %v1363_v4 = vpop.f32.mrf.mxu1  ;;  %v2010_v39 = vor.u32 %v2009_v2, %v2005_v31  ;;  %v5529_v50 = vld [vmem:[#allocation6_spill] sm:$0xff]  ;;  %v5530_v11 = vld [vmem:[#allocation7_spill] sm:$0xff] }
 0x142   : > { %v1401_v25 = vpop.f32.mrf.mxu3  ;;  %v4514_v13 = vadd.f32 %v1363_v4, %v4357_v55 }
 0x143   : > { %v4517_v17 = vadd.f32 %v1401_v25, %v4360_v32 }
 0x148   : > { %v1383_v6 = vpop.f32.mrf.mxu2  ;;  %v1421_v23 = vpop.f32.mrf.mxu0 }
 0x149   : > { %v4522_v44 = vadd.f32 %v1383_v6, %v4363_v27  ;;  %v4525_v8 = vadd.f32 %v1421_v23, %v4366_v40  ;;  %v1441_v55 = vpop.f32.mrf.mxu1  ;;  %v4538_v27 = vsel %vm311_vm1, %v2010_v39, %v2014_v9  ;;  %v5531_v40 = vld [vmem:[#allocation8_spill] sm:$0xff] }
 0x14a   : > { %v1403_v30 = vpop.f32.mrf.mxu3  ;;  %v4528_v32 = vadd.f32 %v1441_v55, %v4369_v3 }
 0x14b   : > { %v4531_v29 = vadd.f32 %v1403_v30, %v4372_v61  ;;  %3571 = vmatmul.msk.bf16.vlgmr.msrb.gmra.mxu0 %vm324_vm2, %v5529_v50 }
 0x14c   : > { %3572 = vmatmul.msk.bf16.vlgmr.msrb.gmra.mxu1 %vm324_vm2, %v5530_v11  ;;  %2133 = vmatpush.bf16.msrb.mxu0 %v4484_v57 }
 0x14d   : > { %3573 = vmatmul.msk.bf16.vlgmr.msrb.gmra.mxu2 %vm324_vm2, %v5531_v40  ;;  %2147 = vmatpush.bf16.msrb.mxu1 %v4484_v57 }
 0x14e   : > { %2161 = vmatpush.bf16.msrb.mxu2 %v4484_v57 }
 0x14f   : > { %3574 = vmatmul.msk.bf16.vlgmr.msrb.gmra.mxu3 %vm324_vm2, %v4538_v27 }
 0x150   : > { %v1461_v3 = vpop.f32.mrf.mxu2  ;;  %v1423_v61 = vpop.f32.mrf.mxu0  ;;  %2175 = vmatpush.bf16.msrb.mxu3 %v4484_v57 }
 0x151   : > { %v4549_v45 = vadd.f32 %v1461_v3, %v4390_v47  ;;  %v4552_v4 = vadd.f32 %v1423_v61, %v4393_v63  ;;  %v1443_v25 = vpop.f32.mrf.mxu1 }
 0x152   : > { %v1481_v31 = vpop.f32.mrf.mxu3  ;;  %v4555_v2 = vadd.f32 %v1443_v25, %v4396_v10  ;;  %v5532_v10 = vld [vmem:[#allocation9_spill] sm:$0xff] }
 0x153   : > { %v4558_v1 = vadd.f32 %v1481_v31, %v4399_v12  ;;  %v5533_v12 = vld [vmem:[#allocation10_spill] sm:$0xff] }
 0x158   : > { %v1463_v6 = vpop.f32.mrf.mxu2  ;;  %v1532_v23 = vpop.f32.mrf.mxu0 }
 0x159   : > { %v4561_v39 = vadd.f32 %v1463_v6, %v4402_v60  ;;  %v4564_v9 = vadd.f32 %v1532_v23, %v4405_v0  ;;  %v1546_v47 = vpop.f32.mrf.mxu1  ;;  %v5534_v60 = vld [vmem:[#allocation11_spill] sm:$0xff]  ;;  %v5535_v0 = vld [vmem:[#allocation12_spill] sm:$0xff] }
 0x15a   : > { %v1483_v55 = vpop.f32.mrf.mxu3  ;;  %v4567_v63 = vadd.f32 %v1546_v47, %v4408_v5 }
 0x15b   : > { %v4570_v30 = vadd.f32 %v1483_v55, %v4411_v35  ;;  %3576 = vmatmul.msk.bf16.vlgmr.msra.gmra.mxu0 %vm324_vm2, %v5532_v10 }
 0x15c   : > { %3577 = vmatmul.msk.bf16.vlgmr.msra.gmra.mxu1 %vm324_vm2, %v5533_v12  ;;  %2189 = vmatpush.bf16.msra.mxu0 %v4484_v57 }
 0x15d   : > { %3578 = vmatmul.msk.bf16.vlgmr.msra.gmra.mxu2 %vm324_vm2, %v5534_v60  ;;  %2203 = vmatpush.bf16.msra.mxu1 %v4484_v57 }
 0x15e   : > { %2217 = vmatpush.bf16.msra.mxu2 %v4484_v57 }
 0x15f   : > { %3579 = vmatmul.msk.bf16.vlgmr.msra.gmra.mxu3 %vm324_vm2, %v5535_v0 }
 0x160   : > { %v1560_v5 = vpop.f32.mrf.mxu2  ;;  %v1534_v35 = vpop.f32.mrf.mxu0  ;;  %2231 = vmatpush.bf16.msra.mxu3 %v4484_v57 }
 0x161   : > { %v4585_v3 = vadd.f32 %v1560_v5, %v4426_v48  ;;  %v4588_v61 = vadd.f32 %v1534_v35, %v4429_v21  ;;  %v1548_v25 = vpop.f32.mrf.mxu1 }
 0x162   : > { %v1574_v31 = vpop.f32.mrf.mxu3  ;;  %v4591_v6 = vadd.f32 %v1548_v25, %v4432_v62  ;;  %v5536_v62 = vld [vmem:[#allocation13_spill] sm:$0xff] }
 0x163   : > { %v4594_v23 = vadd.f32 %v1574_v31, %v4435_v20  ;;  %v5537_v20 = vld [vmem:[#allocation14_spill] sm:$0xff] }
 0x168   : > { %v1562_v47 = vpop.f32.mrf.mxu2  ;;  %v1588_v55 = vpop.f32.mrf.mxu0 }
 0x169   : > { %v4597_v10 = vadd.f32 %v1562_v47, %v4438_v52  ;;  %v4600_v0 = vadd.f32 %v1588_v55, %v4441_v33  ;;  %v1602_v48 = vpop.f32.mrf.mxu1  ;;  %v5538_v52 = vld [vmem:[#allocation15_spill] sm:$0xff]  ;;  %v5539_v33 = vld [vmem:[#allocation16_spill] sm:$0xff] }
 0x16a   : > { %v1576_v5 = vpop.f32.mrf.mxu3  ;;  %v4603_v21 = vadd.f32 %v1602_v48, %v4444_v7 }
 0x16b   : > { %v4606_v35 = vadd.f32 %v1576_v5, %v4447_v56  ;;  %3580 = vmatmul.msk.bf16.vlgmr.msrb.gmra.mxu0 %vm324_vm2, %v5536_v62  ;;  %v2281_v62 = vrot.slane %v4503_v14, 1 }
 0x16c   : > { %3581 = vmatmul.msk.bf16.vlgmr.msrb.gmra.mxu1 %vm324_vm2, %v5537_v20  ;;  %2245 = vmatpush.bf16.msrb.mxu0 %v4484_v57  ;;  %v5541_v20 = vld [vmem:[#allocation18_spill] sm:$0xff] }
 0x16d   : > { %3582 = vmatmul.msk.bf16.vlgmr.msrb.gmra.mxu2 %vm324_vm2, %v5538_v52  ;;  %2259 = vmatpush.bf16.msrb.mxu1 %v4484_v57 }
 0x16e   : > { %2273 = vmatpush.bf16.msrb.mxu2 %v4484_v57 }
 0x16f   : > { %3583 = vmatmul.msk.bf16.vlgmr.msrb.gmra.mxu3 %vm324_vm2, %v5539_v33  ;;  %v3592_v33 = vld [vmem:[%s5454_s1 + $0xc] sm:$0x3] }
 0x170   : > { %v1616_v7 = vpop.f32.mrf.mxu2  ;;  %v1590_v56 = vpop.f32.mrf.mxu0  ;;  %2293 = vmatpush.bf16.msrb.mxu3 %v4484_v57 }
 0x171   : > { %v4621_v25 = vadd.f32 %v1616_v7, %v4462_v19  ;;  %v4624_v31 = vadd.f32 %v1590_v56, %v4465_v18  ;;  %v1604_v47 = vpop.f32.mrf.mxu1  ;;  %v4642_v56 = vsel %vm328_vm0, %v3592_v33, 0 }
 0x172   : > { %v1630_v55 = vpop.f32.mrf.mxu3  ;;  %v4627_v48 = vadd.f32 %v1604_v47, %v4468_v42 }
 0x173   : > { %v4630_v5 = vadd.f32 %v1630_v55, %v4471_v37  ;;  %v5540_v55 = vld [vmem:[#allocation17_spill] sm:$0xff] }
 0x178   : > { %v1618_v52 = vpop.f32.mrf.mxu2  ;;  %v1644_v57 = vpop.f32.mrf.mxu0 }
 0x179   : > { %v4636_v19 = vadd.f32 %v1618_v52, %v4477_v41  ;;  %v4639_v18 = vadd.f32 %v1644_v57, %v4480_v46  ;;  %v1658_v7 = vpop.f32.mrf.mxu1  ;;  %v5542_v41 = vld [vmem:[#allocation19_spill] sm:$0xff]  ;;  %v5543_v46 = vld [vmem:[#allocation20_spill] sm:$0xff] }
 0x17a   : > { %v1632_v42 = vpop.f32.mrf.mxu3  ;;  %v4645_v37 = vadd.f32 %v1658_v7, %v4487_v53 }
 0x17b   : > { %v4648_v47 = vadd.f32 %v1632_v42, %v4490_v22  ;;  %3584 = vmatmul.msk.bf16.vlgmr.msra.gmra.mxu0 %vm324_vm2, %v5540_v55  ;;  %v2280_v55 = vrot.slane %v4377_v26, 1 }
 0x17c   : > { %3585 = vmatmul.msk.bf16.vlgmr.msra.gmra.mxu1 %vm324_vm2, %v5541_v20  ;;  %2344 = vmatpush.bf16.msra.mxu0 %v4642_v56 }
 0x17d   : > { %3586 = vmatmul.msk.bf16.vlgmr.msra.gmra.mxu2 %vm324_vm2, %v5542_v41  ;;  %2358 = vmatpush.bf16.msra.mxu1 %v4642_v56  ;;  %v4693_v14 = vsel %vm1162_vm3, %v2280_v55, %v2281_v62 }
 0x17e   : > { %2372 = vmatpush.bf16.msra.mxu2 %v4642_v56  ;;  %5546 = vst [vmem:[#allocation2_spill] sm:$0xff] %v4693_v14 }
 0x17f   : > { %3587 = vmatmul.msk.bf16.vlgmr.msra.gmra.mxu3 %vm324_vm2, %v5543_v46 }
 0x180   : > { %v1672_v53 = vpop.f32.mrf.mxu2  ;;  %v1646_v22 = vpop.f32.mrf.mxu0  ;;  %2386 = vmatpush.bf16.msra.mxu3 %v4642_v56 }
 0x181   : > { %v4663_v52 = vadd.f32 %v1672_v53, %v4508_v28  ;;  %v4666_v33 = vadd.f32 %v1646_v22, %v4511_v24  ;;  %v1660_v57 = vpop.f32.mrf.mxu1 }
 0x182   : > { %v1686_v7 = vpop.f32.mrf.mxu3  ;;  %v4669_v42 = vadd.f32 %v1660_v57, %v4514_v13  ;;  %v5544_v57 = vld [vmem:[#allocation21_spill] sm:$0xff] }
 0x183   : > { %v4672_v41 = vadd.f32 %v1686_v7, %v4517_v17  ;;  %v5545_v7 = vld [vmem:[#allocation22_spill] sm:$0xff] }
 0x188   : > { %v1674_v20 = vpop.f32.mrf.mxu2  ;;  %v1700_v46 = vpop.f32.mrf.mxu0 }
 0x189   : > { %v4677_v28 = vadd.f32 %v1674_v20, %v4522_v44  ;;  %v4680_v24 = vadd.f32 %v1700_v46, %v4525_v8  ;;  %v1714_v53 = vpop.f32.mrf.mxu1  ;;  %v5547_v44 = vld [vmem:[#allocation23_spill] sm:$0xff] }
 0x18a   : > { %v1688_v22 = vpop.f32.mrf.mxu3  ;;  %v4683_v13 = vadd.f32 %v1714_v53, %v4528_v32 }
 0x18b   : > { %v4686_v17 = vadd.f32 %v1688_v22, %v4531_v29  ;;  %3588 = vmatmul.msk.bf16.vlgmr.msrb.gmra.mxu0 %vm324_vm2, %v5544_v57 }
 0x18c   : > { %3589 = vmatmul.msk.bf16.vlgmr.msrb.gmra.mxu1 %vm324_vm2, %v5545_v7  ;;  %2400 = vmatpush.bf16.msrb.mxu0 %v4642_v56 }
 0x18d   : > { %3590 = vmatmul.msk.bf16.vlgmr.msrb.gmra.mxu2 %vm324_vm2, %v5547_v44  ;;  %2414 = vmatpush.bf16.msrb.mxu1 %v4642_v56 }
 0x18e   : > { %2428 = vmatpush.bf16.msrb.mxu2 %v4642_v56 }
 0x18f   : > { %3591 = vmatmul.msk.bf16.vlgmr.msrb.gmra.mxu3 %vm324_vm2, %v4693_v14 }
 0x190   : > { %v1728_v8 = vpop.f32.mrf.mxu2  ;;  %v1702_v32 = vpop.f32.mrf.mxu0  ;;  %2442 = vmatpush.bf16.msrb.mxu3 %v4642_v56 }
 0x191   : > { %v4704_v29 = vadd.f32 %v1728_v8, %v4549_v45  ;;  %v4707_v62 = vadd.f32 %v1702_v32, %v4552_v4  ;;  %v1716_v20 = vpop.f32.mrf.mxu1 }
 0x192   : > { %v1750_v55 = vpop.f32.mrf.mxu3  ;;  %v4710_v46 = vadd.f32 %v1716_v20, %v4555_v2  ;;  %v3680_v20 = vld [vmem:[%s3760_s25 + $0x18] sm:$0xff] }
 0x193   : > { %v4713_v53 = vadd.f32 %v1750_v55, %v4558_v1  ;;  %v3681_v1 = vld [vmem:[%s3760_s25 + $0x24] sm:$0xff] }
 0x198   : > { %v1730_v22 = vpop.f32.mrf.mxu2  ;;  %v1801_v14 = vpop.f32.mrf.mxu0 }
 0x199   : > { %v4716_v44 = vadd.f32 %v1730_v22, %v4561_v39  ;;  %v4719_v45 = vadd.f32 %v1801_v14, %v4564_v9  ;;  %v1815_v4 = vpop.f32.mrf.mxu1  ;;  %v3682_v39 = vld [vmem:[%s3760_s25 + $0x30] sm:$0xff]  ;;  %v3683_v9 = vld [vmem:[%s3760_s25 + $0x3c] sm:$0xff] }
 0x19a   : > { %v1752_v8 = vpop.f32.mrf.mxu3  ;;  %v4722_v32 = vadd.f32 %v1815_v4, %v4567_v63 }
 0x19b   : > { %v4725_v2 = vadd.f32 %v1752_v8, %v4570_v30  ;;  %3593 = vmatmul.msk.bf16.vlgmr.msra.gmra.mxu0 %vm324_vm2, %v3680_v20 }
 0x19c   : > { %3594 = vmatmul.msk.bf16.vlgmr.msra.gmra.mxu1 %vm324_vm2, %v3681_v1  ;;  %2456 = vmatpush.bf16.msra.mxu0 %v4642_v56 }
 0x19d   : > { %3595 = vmatmul.msk.bf16.vlgmr.msra.gmra.mxu2 %vm324_vm2, %v3682_v39  ;;  %2470 = vmatpush.bf16.msra.mxu1 %v4642_v56 }
 0x19e   : > { %2484 = vmatpush.bf16.msra.mxu2 %v4642_v56 }
 0x19f   : > { %3596 = vmatmul.msk.bf16.vlgmr.msra.gmra.mxu3 %vm324_vm2, %v3683_v9 }
 0x1a0   : > { %v1829_v63 = vpop.f32.mrf.mxu2  ;;  %v1803_v30 = vpop.f32.mrf.mxu0  ;;  %2498 = vmatpush.bf16.msra.mxu3 %v4642_v56 }
 0x1a1   : > { %v4740_v14 = vadd.f32 %v1829_v63, %v4585_v3  ;;  %v4743_v55 = vadd.f32 %v1803_v30, %v4588_v61  ;;  %v1817_v22 = vpop.f32.mrf.mxu1 }
 0x1a2   : > { %v1843_v4 = vpop.f32.mrf.mxu3  ;;  %v4746_v8 = vadd.f32 %v1817_v22, %v4591_v6  ;;  %v3684_v22 = vld [vmem:[%s3760_s25 + $0x48] sm:$0xff] }
 0x1a3   : > { %v4749_v20 = vadd.f32 %v1843_v4, %v4594_v23  ;;  %v3685_v23 = vld [vmem:[%s3760_s25 + $0x54] sm:$0xff] }
 0x1a8   : > { %v1831_v1 = vpop.f32.mrf.mxu2  ;;  %v1857_v39 = vpop.f32.mrf.mxu0 }
 0x1a9   : > { %v4752_v9 = vadd.f32 %v1831_v1, %v4597_v10  ;;  %v4755_v3 = vadd.f32 %v1857_v39, %v4600_v0  ;;  %v1871_v61 = vpop.f32.mrf.mxu1  ;;  %v3686_v10 = vld [vmem:[%s3760_s25 + $0x60] sm:$0xff]  ;;  %v3687_v0 = vld [vmem:[%s3760_s25 + $0x6c] sm:$0xff] }
 0x1aa   : > { %v1845_v63 = vpop.f32.mrf.mxu3  ;;  %v4758_v30 = vadd.f32 %v1871_v61, %v4603_v21 }
 0x1ab   : > { %v4761_v6 = vadd.f32 %v1845_v63, %v4606_v35  ;;  %3597 = vmatmul.msk.bf16.vlgmr.msrb.gmra.mxu0 %vm324_vm2, %v3684_v22 }
 0x1ac   : > { %3598 = vmatmul.msk.bf16.vlgmr.msrb.gmra.mxu1 %vm324_vm2, %v3685_v23  ;;  %2512 = vmatpush.bf16.msrb.mxu0 %v4642_v56 }
 0x1ad   : > { %3599 = vmatmul.msk.bf16.vlgmr.msrb.gmra.mxu2 %vm324_vm2, %v3686_v10  ;;  %2526 = vmatpush.bf16.msrb.mxu1 %v4642_v56 }
 0x1ae   : > { %2540 = vmatpush.bf16.msrb.mxu2 %v4642_v56 }
 0x1af   : > { %3600 = vmatmul.msk.bf16.vlgmr.msrb.gmra.mxu3 %vm324_vm2, %v3687_v0 }
 0x1b0   : > { %v1885_v21 = vpop.f32.mrf.mxu2  ;;  %v1859_v35 = vpop.f32.mrf.mxu0  ;;  %2562 = vmatpush.bf16.msrb.mxu3 %v4642_v56  ;;  %v3613_v56 = vld [vmem:[%s5454_s1 + $0xe] sm:$0x3] }
 0x1b1   : > { %v4776_v4 = vadd.f32 %v1885_v21, %v4621_v25  ;;  %v4779_v1 = vadd.f32 %v1859_v35, %v4624_v31  ;;  %v1873_v39 = vpop.f32.mrf.mxu1 }
 0x1b2   : > { %v1899_v61 = vpop.f32.mrf.mxu3  ;;  %v4782_v63 = vadd.f32 %v1873_v39, %v4627_v48  ;;  %v4797_v48 = vsel %vm328_vm0, %v3613_v56, 0  ;;  %v3688_v39 = vld [vmem:[%s3760_s25 + $0x78] sm:$0xff] }
 0x1b3   : > { %v4785_v22 = vadd.f32 %v1899_v61, %v4630_v5 }
 0x1b8   : > { %v1887_v25 = vpop.f32.mrf.mxu2  ;;  %v1913_v23 = vpop.f32.mrf.mxu0 }
 0x1b9   : > { %v4791_v10 = vadd.f32 %v1887_v25, %v4636_v19  ;;  %v4794_v31 = vadd.f32 %v1913_v23, %v4639_v18  ;;  %v1927_v0 = vpop.f32.mrf.mxu1  ;;  %v3689_v19 = vld [vmem:[%s3760_s25 + $0x84] sm:$0xff]  ;;  %v3690_v18 = vld [vmem:[%s3760_s25 + $0x90] sm:$0xff] }
 0x1ba   : > { %v1901_v5 = vpop.f32.mrf.mxu3  ;;  %v4800_v21 = vadd.f32 %v1927_v0, %v4645_v37  ;;  %v3691_v37 = vld [vmem:[%s3760_s25 + $0x9c] sm:$0xff] }
 0x1bb   : > { %v4803_v35 = vadd.f32 %v1901_v5, %v4648_v47  ;;  %3601 = vmatmul.msk.bf16.vlgmr.msra.gmra.mxu0 %vm324_vm2, %v3688_v39 }
 0x1bc   : > { %3602 = vmatmul.msk.bf16.vlgmr.msra.gmra.mxu1 %vm324_vm2, %v3689_v19  ;;  %2613 = vmatpush.bf16.msra.mxu0 %v4797_v48 }
 0x1bd   : > { %3603 = vmatmul.msk.bf16.vlgmr.msra.gmra.mxu2 %vm324_vm2, %v3690_v18  ;;  %2627 = vmatpush.bf16.msra.mxu1 %v4797_v48 }
 0x1be   : > { %2641 = vmatpush.bf16.msra.mxu2 %v4797_v48 }
 0x1bf   : > { %3604 = vmatmul.msk.bf16.vlgmr.msra.gmra.mxu3 %vm324_vm2, %v3691_v37 }
 0x1c0   : > { %v1941_v47 = vpop.f32.mrf.mxu2  ;;  %v1915_v61 = vpop.f32.mrf.mxu0  ;;  %2655 = vmatpush.bf16.msra.mxu3 %v4797_v48 }
 0x1c1   : > { %v4818_v56 = vadd.f32 %v1941_v47, %v4663_v52  ;;  %v4821_v25 = vadd.f32 %v1915_v61, %v4666_v33  ;;  %v1929_v23 = vpop.f32.mrf.mxu1 }
 0x1c2   : > { %v1955_v0 = vpop.f32.mrf.mxu3  ;;  %v4824_v5 = vadd.f32 %v1929_v23, %v4669_v42  ;;  %v3692_v42 = vld [vmem:[%s3760_s25 + $0xa8] sm:$0xff]  ;;  %v3693_v23 = vld [vmem:[%s3760_s25 + $0xb4] sm:$0xff] }
 0x1c3   : > { %v4827_v39 = vadd.f32 %v1955_v0, %v4672_v41  ;;  %v4844_v41 = vld [vmem:[%s3760_s25 + $0xcc] sm:$0xff] }
 0x1c8   : > { %v1943_v19 = vpop.f32.mrf.mxu2  ;;  %v1969_v18 = vpop.f32.mrf.mxu0 }
 0x1c9   : > { %v4830_v37 = vadd.f32 %v1943_v19, %v4677_v28  ;;  %v4833_v52 = vadd.f32 %v1969_v18, %v4680_v24  ;;  %v1983_v47 = vpop.f32.mrf.mxu1 }
 0x1ca   : > { %v1957_v33 = vpop.f32.mrf.mxu3  ;;  %v4836_v61 = vadd.f32 %v1983_v47, %v4683_v13 }
 0x1cb   : > { %v4839_v7 = vadd.f32 %v1957_v33, %v4686_v17  ;;  %3605 = vmatmul.msk.bf16.vlgmr.msrb.gmra.mxu0 %vm324_vm2, %v3692_v42 }
 0x1cc   : > { %3606 = vmatmul.msk.bf16.vlgmr.msrb.gmra.mxu1 %vm324_vm2, %v3693_v23  ;;  %2669 = vmatpush.bf16.msrb.mxu0 %v4797_v48 }
 0x1cd   : > { %3607 = vmatmul.msk.bf16.vlgmr.msrb.gmra.mxu2 %vm324_vm2, %v4377_v26  ;;  %2683 = vmatpush.bf16.msrb.mxu1 %v4797_v48 }
 0x1ce   : > { %2697 = vmatpush.bf16.msrb.mxu2 %v4797_v48 }
 0x1cf   : > { %3612 = vmatmul.msk.bf16.vlgmr.msrb.gmra.mxu3 %vm324_vm2, %v4844_v41 }
 0x1d0   : > { %v1997_v28 = vpop.f32.mrf.mxu2  ;;  %v1971_v24 = vpop.f32.mrf.mxu0  ;;  %2711 = vmatpush.bf16.msrb.mxu3 %v4797_v48 }
 0x1d1   : > { %v4857_v13 = vadd.f32 %v1997_v28, %v4704_v29  ;;  %v4860_v17 = vadd.f32 %v1971_v24, %v4707_v62  ;;  %v1985_v0 = vpop.f32.mrf.mxu1 }
 0x1d2   : > { %v2028_v19 = vpop.f32.mrf.mxu3  ;;  %v4863_v26 = vadd.f32 %v1985_v0, %v4710_v46 }
 0x1d3   : > { %v4866_v18 = vadd.f32 %v2028_v19, %v4713_v53 }
 0x1d8   : > { %v1999_v47 = vpop.f32.mrf.mxu2  ;;  %v2079_v33 = vpop.f32.mrf.mxu0 }
 0x1d9   : > { %v4869_v42 = vadd.f32 %v1999_v47, %v4716_v44  ;;  %v4872_v23 = vadd.f32 %v2079_v33, %v4719_v45  ;;  %v2093_v29 = vpop.f32.mrf.mxu1 }
 0x1da   : > { %v2030_v28 = vpop.f32.mrf.mxu3  ;;  %v4875_v62 = vadd.f32 %v2093_v29, %v4722_v32 }
 0x1db   : > { %v4878_v24 = vadd.f32 %v2030_v28, %v4725_v2  ;;  %3614 = vmatmul.msk.bf16.vlgmr.msra.gmra.mxu0 %vm324_vm2, %v3819_v51  ;;  %v299_v28 = vld [vmem:[%s3760_s25 + $0xd4] sm:$0x1] }
 0x1dc   : > { %3615 = vmatmul.msk.bf16.vlgmr.msra.gmra.mxu1 %vm324_vm2, %v3833_v59  ;;  %2725 = vmatpush.bf16.msra.mxu0 %v4797_v48 }
 0x1dd   : > { %3616 = vmatmul.msk.bf16.vlgmr.msra.gmra.mxu2 %vm324_vm2, %v3862_v34  ;;  %2739 = vmatpush.bf16.msra.mxu1 %v4797_v48 }
 0x1de   : > { %2753 = vmatpush.bf16.msra.mxu2 %v4797_v48 }
 0x1df   : > { %3617 = vmatmul.msk.bf16.vlgmr.msra.gmra.mxu3 %vm324_vm2, %v3865_v38 }
 0x1e0   : > { %v2107_v44 = vpop.f32.mrf.mxu2  ;;  %v2081_v46 = vpop.f32.mrf.mxu0  ;;  %2767 = vmatpush.bf16.msra.mxu3 %v4797_v48 }
 0x1e1   : > { %v4893_v51 = vadd.f32 %v2107_v44, %v4740_v14  ;;  %v4896_v59 = vadd.f32 %v2081_v46, %v4743_v55  ;;  %v2095_v53 = vpop.f32.mrf.mxu1 }
 0x1e2   : > { %v2121_v45 = vpop.f32.mrf.mxu3  ;;  %v4899_v34 = vadd.f32 %v2095_v53, %v4746_v8 }
 0x1e3   : > { %v4902_v32 = vadd.f32 %v2121_v45, %v4749_v20 }
 0x1e8   : > { %v2109_v2 = vpop.f32.mrf.mxu2  ;;  %v2135_v38 = vpop.f32.mrf.mxu0 }
 0x1e9   : > { %v4905_v0 = vadd.f32 %v2109_v2, %v4752_v9  ;;  %v4908_v19 = vadd.f32 %v2135_v38, %v4755_v3  ;;  %v2149_v14 = vpop.f32.mrf.mxu1  ;;  %v2819_v38 = vshrl.u32 %v4844_v41, 16 }
 0x1ea   : > { %v2123_v47 = vpop.f32.mrf.mxu3  ;;  %v4911_v55 = vadd.f32 %v2149_v14, %v4758_v30 }
 0x1eb   : > { %v4914_v33 = vadd.f32 %v2123_v47, %v4761_v6  ;;  %3618 = vmatmul.msk.bf16.vlgmr.msrb.gmra.mxu0 %vm324_vm2, %v3872_v43 }
 0x1ec   : > { %3619 = vmatmul.msk.bf16.vlgmr.msrb.gmra.mxu1 %vm324_vm2, %v3883_v49  ;;  %2781 = vmatpush.bf16.msrb.mxu0 %v4797_v48 }
 0x1ed   : > { %3620 = vmatmul.msk.bf16.vlgmr.msrb.gmra.mxu2 %vm324_vm2, %v3925_v36  ;;  %2795 = vmatpush.bf16.msrb.mxu1 %v4797_v48 }
 0x1ee   : > { %2809 = vmatpush.bf16.msrb.mxu2 %v4797_v48 }
 0x1ef   : > { %3621 = vmatmul.msk.bf16.vlgmr.msrb.gmra.mxu3 %vm324_vm2, %v5525_v58  ;;  %v3630_v58 = vld [vmem:[%s5454_s1 + $0x10] sm:$0x3] }
 0x1f0   : > { %v2163_v8 = vpop.f32.mrf.mxu2  ;;  %v2137_v20 = vpop.f32.mrf.mxu0  ;;  %2840 = vmatpush.bf16.msrb.mxu3 %v4797_v48 }
 0x1f1   : > { %v4929_v43 = vadd.f32 %v2163_v8, %v4776_v4  ;;  %v4932_v49 = vadd.f32 %v2137_v20, %v4779_v1  ;;  %v2151_v9 = vpop.f32.mrf.mxu1 }
 0x1f2   : > { %v2177_v36 = vpop.f32.mrf.mxu3  ;;  %v4935_v3 = vadd.f32 %v2151_v9, %v4782_v63  ;;  %v4951_v63 = vsel %vm328_vm0, %v3630_v58, 0 }
 0x1f3   : > { %v4938_v30 = vadd.f32 %v2177_v36, %v4785_v22 }
 0x1f8   : > { %v2165_v6 = vpop.f32.mrf.mxu2  ;;  %v2191_v48 = vpop.f32.mrf.mxu0 }
 0x1f9   : > { %v4944_v4 = vadd.f32 %v2165_v6, %v4791_v10  ;;  %v4947_v1 = vadd.f32 %v2191_v48, %v4794_v31  ;;  %v2205_v29 = vpop.f32.mrf.mxu1  ;;  %v2817_v10 = vunpack.c.l.b16 %v299_v28 }
 0x1fa   : > { %v2179_v44 = vpop.f32.mrf.mxu3  ;;  %v4954_v22 = vadd.f32 %v2205_v29, %v4800_v21 }
 0x1fb   : > { %v4957_v46 = vadd.f32 %v2179_v44, %v4803_v35  ;;  %3622 = vmatmul.msk.bf16.vlgmr.msra.gmra.mxu0 %vm324_vm2, %v5526_v15  ;;  %v4970_v35 = vpack.c.b16 %v2817_v10, %v2817_v10  ;;  %v2821_v15 = vshll.u32 %v4844_v41, 16 }
 0x1fc   : > { %3623 = vmatmul.msk.bf16.vlgmr.msra.gmra.mxu1 %vm324_vm2, %v5527_v16  ;;  %2891 = vmatpush.bf16.msra.mxu0 %v4951_v63 }
 0x1fd   : > { %3624 = vmatmul.msk.bf16.vlgmr.msra.gmra.mxu2 %vm324_vm2, %v5528_v54  ;;  %2905 = vmatpush.bf16.msra.mxu1 %v4951_v63  ;;  %v2823_v14 = vrot.slane %v2821_v15, 1  ;;  %v2826_v47 = vshll.u32 %v4970_v35, 16 }
 0x1fe   : > { %2919 = vmatpush.bf16.msra.mxu2 %v4951_v63 }
 0x1ff   : > { %3625 = vmatmul.msk.bf16.vlgmr.msra.gmra.mxu3 %vm324_vm2, %v5529_v50  ;;  %v2828_v9 = vrot.slane %v2826_v47, 1 }
 0x200   : > { %v2219_v31 = vpop.f32.mrf.mxu2  ;;  %v2193_v21 = vpop.f32.mrf.mxu0  ;;  %2933 = vmatpush.bf16.msra.mxu3 %v4951_v63 }
 0x201   : > { %v4975_v16 = vadd.f32 %v2219_v31, %v4818_v56  ;;  %v4978_v54 = vadd.f32 %v2193_v21, %v4821_v25  ;;  %v2207_v53 = vpop.f32.mrf.mxu1  ;;  %v2824_v56 = vor.u32 %v2823_v14, %v2819_v38 }
 0x202   : > { %v2233_v45 = vpop.f32.mrf.mxu3  ;;  %v4981_v2 = vadd.f32 %v2207_v53, %v4824_v5 }
 0x203   : > { %v4984_v50 = vadd.f32 %v2233_v45, %v4827_v39 }
 0x208   : > { %v2221_v8 = vpop.f32.mrf.mxu2  ;;  %v2247_v20 = vpop.f32.mrf.mxu0 }
 0x209   : > { %v4989_v25 = vadd.f32 %v2221_v8, %v4830_v37  ;;  %v4992_v36 = vadd.f32 %v2247_v20, %v4833_v52  ;;  %v2261_v5 = vpop.f32.mrf.mxu1  ;;  %v2829_v37 = vsel %vm311_vm1, %v2824_v56, %v2828_v9 }
 0x20a   : > { %v2235_v58 = vpop.f32.mrf.mxu3  ;;  %v4995_v39 = vadd.f32 %v2261_v5, %v4836_v61 }
 0x20b   : > { %v4998_v6 = vadd.f32 %v2235_v58, %v4839_v7  ;;  %3626 = vmatmul.msk.bf16.vlgmr.msrb.gmra.mxu0 %vm324_vm2, %v5530_v11 }
 0x20c   : > { %3627 = vmatmul.msk.bf16.vlgmr.msrb.gmra.mxu1 %vm324_vm2, %v5531_v40  ;;  %2947 = vmatpush.bf16.msrb.mxu0 %v4951_v63 }
 0x20d   : > { %3628 = vmatmul.msk.bf16.vlgmr.msrb.gmra.mxu2 %vm324_vm2, %v4538_v27  ;;  %2961 = vmatpush.bf16.msrb.mxu1 %v4951_v63 }
 0x20e   : > { %2975 = vmatpush.bf16.msrb.mxu2 %v4951_v63 }
 0x20f   : > { %3629 = vmatmul.msk.bf16.vlgmr.msrb.gmra.mxu3 %vm324_vm2, %v2829_v37 }
 0x210   : > { %v2275_v7 = vpop.f32.mrf.mxu2  ;;  %v2249_v52 = vpop.f32.mrf.mxu0  ;;  %2989 = vmatpush.bf16.msrb.mxu3 %v4951_v63 }
 0x211   : > { %v5013_v11 = vadd.f32 %v2275_v7, %v4857_v13  ;;  %v5016_v40 = vadd.f32 %v2249_v52, %v4860_v17  ;;  %v2263_v61 = vpop.f32.mrf.mxu1 }
 0x212   : > { %v2295_v48 = vpop.f32.mrf.mxu3  ;;  %v5019_v27 = vadd.f32 %v2263_v61, %v4863_v26  ;;  %v5548_v26 = vld [vmem:[#allocation12_spill] sm:$0xff] }
 0x213   : > { %v5022_v29 = vadd.f32 %v2295_v48, %v4866_v18  ;;  %v5549_v18 = vld [vmem:[#allocation13_spill] sm:$0xff] }
 0x218   : > { %v2277_v28 = vpop.f32.mrf.mxu2  ;;  %v2346_v44 = vpop.f32.mrf.mxu0 }
 0x219   : > { %v5025_v10 = vadd.f32 %v2277_v28, %v4869_v42  ;;  %v5028_v31 = vadd.f32 %v2346_v44, %v4872_v23  ;;  %v2360_v13 = vpop.f32.mrf.mxu1 }
 0x21a   : > { %v2297_v21 = vpop.f32.mrf.mxu3  ;;  %v5031_v17 = vadd.f32 %v2360_v13, %v4875_v62 }
 0x21b   : > { %v5034_v15 = vadd.f32 %v2297_v21, %v4878_v24  ;;  %3631 = vmatmul.msk.bf16.vlgmr.msra.gmra.mxu0 %vm324_vm2, %v5533_v12  ;;  %v5556_v21 = vld [vmem:[#allocation20_spill] sm:$0xff] }
 0x21c   : > { %3632 = vmatmul.msk.bf16.vlgmr.msra.gmra.mxu1 %vm324_vm2, %v5534_v60  ;;  %3003 = vmatpush.bf16.msra.mxu0 %v4951_v63 }
 0x21d   : > { %3633 = vmatmul.msk.bf16.vlgmr.msra.gmra.mxu2 %vm324_vm2, %v5548_v26  ;;  %3017 = vmatpush.bf16.msra.mxu1 %v4951_v63 }
 0x21e   : > { %3031 = vmatpush.bf16.msra.mxu2 %v4951_v63 }
 0x21f   : > { %3634 = vmatmul.msk.bf16.vlgmr.msra.gmra.mxu3 %vm324_vm2, %v5549_v18 }
 0x220   : > { %v2374_v42 = vpop.f32.mrf.mxu2  ;;  %v2348_v23 = vpop.f32.mrf.mxu0  ;;  %3045 = vmatpush.bf16.msra.mxu3 %v4951_v63 }
 0x221   : > { %v5049_v12 = vadd.f32 %v2374_v42, %v4893_v51  ;;  %v5052_v60 = vadd.f32 %v2348_v23, %v4896_v59  ;;  %v2362_v62 = vpop.f32.mrf.mxu1 }
 0x222   : > { %v2388_v24 = vpop.f32.mrf.mxu3  ;;  %v5055_v53 = vadd.f32 %v2362_v62, %v4899_v34  ;;  %v5550_v34 = vld [vmem:[#allocation14_spill] sm:$0xff] }
 0x223   : > { %v5058_v45 = vadd.f32 %v2388_v24, %v4902_v32  ;;  %v5551_v32 = vld [vmem:[#allocation15_spill] sm:$0xff] }
 0x228   : > { %v2376_v38 = vpop.f32.mrf.mxu2  ;;  %v2402_v14 = vpop.f32.mrf.mxu0 }
 0x229   : > { %v5061_v47 = vadd.f32 %v2376_v38, %v4905_v0  ;;  %v5064_v8 = vadd.f32 %v2402_v14, %v4908_v19  ;;  %v2416_v51 = vpop.f32.mrf.mxu1  ;;  %v5552_v0 = vld [vmem:[#allocation16_spill] sm:$0xff]  ;;  %v5553_v19 = vld [vmem:[#allocation17_spill] sm:$0xff]  ;;  %v3094_v38 = vrot.slane %v4844_v41, 1 }
 0x22a   : > { %v2390_v20 = vpop.f32.mrf.mxu3  ;;  %v5067_v59 = vadd.f32 %v2416_v51, %v4911_v55 }
 0x22b   : > { %v5070_v56 = vadd.f32 %v2390_v20, %v4914_v33  ;;  %3635 = vmatmul.msk.bf16.vlgmr.msrb.gmra.mxu0 %vm324_vm2, %v5550_v34  ;;  %v5558_v34 = vld [vmem:[#allocation23_spill] sm:$0xff] }
 0x22c   : > { %3636 = vmatmul.msk.bf16.vlgmr.msrb.gmra.mxu1 %vm324_vm2, %v5551_v32  ;;  %3059 = vmatpush.bf16.msrb.mxu0 %v4951_v63 }
 0x22d   : > { %3637 = vmatmul.msk.bf16.vlgmr.msrb.gmra.mxu2 %vm324_vm2, %v5552_v0  ;;  %3073 = vmatpush.bf16.msrb.mxu1 %v4951_v63 }
 0x22e   : > { %3087 = vmatpush.bf16.msrb.mxu2 %v4951_v63 }
 0x22f   : > { %3638 = vmatmul.msk.bf16.vlgmr.msrb.gmra.mxu3 %vm324_vm2, %v5553_v19 }
 0x230   : > { %v2430_v55 = vpop.f32.mrf.mxu2  ;;  %v2404_v33 = vpop.f32.mrf.mxu0  ;;  %3107 = vmatpush.bf16.msrb.mxu3 %v4951_v63 }
 0x231   : > { %v5085_v9 = vadd.f32 %v2430_v55, %v4929_v43  ;;  %v5088_v5 = vadd.f32 %v2404_v33, %v4932_v49  ;;  %v2418_v58 = vpop.f32.mrf.mxu1 }
 0x232   : > { %v2444_v37 = vpop.f32.mrf.mxu3  ;;  %v5091_v7 = vadd.f32 %v2418_v58, %v4935_v3  ;;  %v5554_v3 = vld [vmem:[#allocation18_spill] sm:$0xff] }
 0x233   : > { %v5094_v52 = vadd.f32 %v2444_v37, %v4938_v30  ;;  %v5555_v30 = vld [vmem:[#allocation19_spill] sm:$0xff] }
 0x238   : > { %v2432_v61 = vpop.f32.mrf.mxu2  ;;  %v2458_v48 = vpop.f32.mrf.mxu0 }
 0x239   : > { %v5097_v28 = vadd.f32 %v2432_v61, %v4944_v4  ;;  %v5100_v63 = vadd.f32 %v2458_v48, %v4947_v1  ;;  %v2472_v43 = vpop.f32.mrf.mxu1 }
 0x23a   : > { %v2446_v44 = vpop.f32.mrf.mxu3  ;;  %v2587_v49 = vadd.f32 %v2472_v43, %v4954_v22 }
 0x23b   : > { %v5104_v13 = vadd.f32 %v2446_v44, %v4957_v46  ;;  %3639 = vmatmul.msk.bf16.vlgmr.msra.gmra.mxu0 %vm324_vm2, %v5554_v3 }
 0x23c   : > { %3640 = vmatmul.msk.bf16.vlgmr.msra.gmra.mxu1 %vm324_vm2, %v5555_v30 }
 0x23d   : > { %3641 = vmatmul.msk.bf16.vlgmr.msra.gmra.mxu2 %vm324_vm2, %v5556_v21 }
 0x23f   : > { %3642 = vmatmul.msk.bf16.vlgmr.msra.gmra.mxu3 %vm324_vm2, %v5544_v57  ;;  %v3095_v57 = vrot.slane %v4970_v35, 1  ;;  %v5559_v35 = vld [vmem:[#allocation2_spill] sm:$0xff] }
 0x240   : > { %v2486_v4 = vpop.f32.mrf.mxu2  ;;  %v2460_v1 = vpop.f32.mrf.mxu0 }
 0x241   : > { %v5115_v26 = vadd.f32 %v2486_v4, %v4975_v16  ;;  %v5118_v22 = vadd.f32 %v2460_v1, %v4978_v54  ;;  %v2474_v46 = vpop.f32.mrf.mxu1  ;;  %v3096_v41 = vsel %vm1162_vm3, %v3094_v38, %v3095_v57 }
 0x242   : > { %v2500_v18 = vpop.f32.mrf.mxu3  ;;  %v2588_v42 = vadd.f32 %v2474_v46, %v4981_v2 }
 0x243   : > { %v5122_v23 = vadd.f32 %v2500_v18, %v4984_v50  ;;  %v5557_v50 = vld [vmem:[#allocation22_spill] sm:$0xff] }
 0x248   : > { %v2488_v62 = vpop.f32.mrf.mxu2  ;;  %v2514_v24 = vpop.f32.mrf.mxu0 }
 0x249   : > { %v5127_v14 = vadd.f32 %v2488_v62, %v4989_v25  ;;  %v5130_v16 = vadd.f32 %v2514_v24, %v4992_v36  ;;  %v2528_v54 = vpop.f32.mrf.mxu1 }
 0x24a   : > { %v2502_v51 = vpop.f32.mrf.mxu3  ;;  %v2595_v20 = vadd.f32 %v2528_v54, %v4995_v39 }
 0x24b   : > { %v5134_v2 = vadd.f32 %v2502_v51, %v4998_v6  ;;  %3643 = vmatmul.msk.bf16.vlgmr.msrb.gmra.mxu0 %vm324_vm2, %v5557_v50 }
 0x24c   : > { %3644 = vmatmul.msk.bf16.vlgmr.msrb.gmra.mxu1 %vm324_vm2, %v5558_v34 }
 0x24d   : > { %3645 = vmatmul.msk.bf16.vlgmr.msrb.gmra.mxu2 %vm324_vm2, %v5559_v35 }
 0x24f   : > { %3646 = vmatmul.msk.bf16.vlgmr.msrb.gmra.mxu3 %vm324_vm2, %v3096_v41 }
 0x250   : > { %v2542_v25 = vpop.f32.mrf.mxu2  ;;  %v2516_v36 = vpop.f32.mrf.mxu0 }
 0x251   : > { %v5145_v39 = vadd.f32 %v2542_v25, %v5013_v11  ;;  %v5148_v6 = vadd.f32 %v2516_v36, %v5016_v40  ;;  %v2530_v32 = vpop.f32.mrf.mxu1 }
 0x252   : > { %v2564_v0 = vpop.f32.mrf.mxu3  ;;  %v2596_v19 = vadd.f32 %v2530_v32, %v5019_v27 }
 0x253   : > { %v5152_v55 = vadd.f32 %v2564_v0, %v5022_v29 }
 0x258   : > { %v2544_v33 = vpop.f32.mrf.mxu2  ;;  %v2615_v58 = vpop.f32.mrf.mxu0 }
 0x259   : > { %v5155_v37 = vadd.f32 %v2544_v33, %v5025_v10  ;;  %v2629_v61 = vpop.f32.mrf.mxu1 }
 0x25a   : > { %v2566_v48 = vpop.f32.mrf.mxu3 }
 0x25b   : > { %5560 = vst [vmem:[#allocation3_spill] sm:$0xff] %v5155_v37  ;;  %v5158_v11 = vadd.f32 %v2566_v48, %v5034_v15 }
 0x25d   : > { %5561 = vst [vmem:[#allocation4_spill] sm:$0xff] %v5158_v11 }
 0x260   : > { %v2643_v43 = vpop.f32.mrf.mxu2  ;;  %v2617_v40 = vpop.f32.mrf.mxu0 }
 0x261   : > { %v2631_v44 = vpop.f32.mrf.mxu1 }
 0x262   : > { %v2657_v3 = vpop.f32.mrf.mxu3  ;;  %v5161_v30 = vadd.f32 %v2631_v44, %v5055_v53 }
 0x268   : > { %v5163_v27 = vpop.f32.mrf.mxu2  ;;  %v5165_v29 = vpop.f32.mrf.mxu0 }
 0x269   : > { %v2685_v21 = vpop.f32.mrf.mxu1 }
 0x26a   : > { %v5167_v4 = vpop.f32.mrf.mxu3  ;;  %v5170_v10 = vadd.f32 %v2685_v21, %v5067_v59  ;;  %v5218_v21 = vld [vmem:[%s5455_s2] ss:$0 sm:$0xff] }
 0x270   : > { %v5172_v1 = vpop.f32.mrf.mxu2  ;;  %v5174_v15 = vpop.f32.mrf.mxu0 }
 0x271   : > { %v2687_v46 = vpop.f32.mrf.mxu1 }
 0x272   : > { %v5176_v18 = vpop.f32.mrf.mxu3  ;;  %v5179_v53 = vadd.f32 %v2687_v46, %v5091_v7 }
 0x278   : > { %v5181_v62 = vpop.f32.mrf.mxu2  ;;  %v5183_v24 = vpop.f32.mrf.mxu0 }
 0x279   : > { %v2741_v38 = vpop.f32.mrf.mxu1 }
 0x27a   : > { %v5185_v57 = vpop.f32.mrf.mxu3  ;;  %v5187_v54 = vadd.f32 %v2741_v38, %v2587_v49 }
 0x280   : > { %v5189_v59 = vpop.f32.mrf.mxu2  ;;  %v5191_v51 = vpop.f32.mrf.mxu0 }
 0x281   : > { %v2743_v50 = vpop.f32.mrf.mxu1 }
 0x282   : > { %v5193_v34 = vpop.f32.mrf.mxu3  ;;  %v5195_v41 = vadd.f32 %v2743_v50, %v2588_v42  ;;  %v2847_v42 = vadd.f32 %v2615_v58, %v5028_v31  ;;  %v5231_v31 = vld [vmem:[%s5456_s3] ss:$0 sm:$0xff] }
 0x288   : > { %v5197_v7 = vpop.f32.mrf.mxu2  ;;  %v5199_v35 = vpop.f32.mrf.mxu0 }
 0x289   : > { %v2797_v25 = vpop.f32.mrf.mxu1 }
 0x28a   : > { %v5201_v36 = vpop.f32.mrf.mxu3  ;;  %v5203_v32 = vadd.f32 %v2797_v25, %v2595_v20  ;;  %v2849_v20 = vadd.f32 %v2629_v61, %v5031_v17  ;;  %v3218_v25 = vld [vmem:[%s5226_s24] sm:$0xff] }
 0x290   : > { %v5205_v49 = vpop.f32.mrf.mxu2  ;;  %v5207_v0 = vpop.f32.mrf.mxu0 }
 0x291   : > { %v2799_v33 = vpop.f32.mrf.mxu1 }
 0x292   : > { %v5209_v48 = vpop.f32.mrf.mxu3  ;;  %v5211_v44 = vadd.f32 %v2799_v33, %v2596_v19 }
 0x294   : > { %5562 = vst [vmem:[#allocation5_spill] sm:$0xff] %v5211_v44 }
 0x298   : > { %v5221_v46 = vpop.f32.mrf.mxu2  ;;  %v2893_v38 = vpop.f32.mrf.mxu0 }
 0x299   : > { %5563 = vst [vmem:[#allocation6_spill] sm:$0xff] %v5221_v46  ;;  %v3114_v19 = vadd.f32 %v2893_v38, %v2847_v42  ;;  %v2907_v58 = vpop.f32.mrf.mxu1  ;;  %v3220_v46 = vld [vmem:[%s5226_s24 + $0x10] sm:$0xff]  ;;  %v2851_v42 = vadd.f32 %v2643_v43, %v5049_v12  ;;  %v2848_v38 = vadd.f32 %v2617_v40, %v5052_v60 }
 0x29a   : > { %v5233_v50 = vpop.f32.mrf.mxu3  ;;  %v3116_v17 = vadd.f32 %v2907_v58, %v2849_v20 }
 0x29b   : > { %v3150_v61 = vmul.f32 %v5218_v21, %v3114_v19 }
 0x29c   : > { %v3152_v33 = vmul.f32 %v5218_v21, %v3116_v17  ;;  %v2853_v17 = vadd.f32 %v2657_v3, %v5058_v45  ;;  %v3222_v45 = vld [vmem:[%s5226_s24 + $0x20] sm:$0xff]  ;;  %v3219_v3 = vld [vmem:[%s5226_s24 + $0x8] sm:$0xff] }
 0x29d   : > { %v3186_v11 = vadd.f32 %v5231_v31, %v3150_v61 }
 0x29e   : > { %v3188_v37 = vadd.f32 %v5231_v31, %v3152_v33 }
 0x29f   : > { %v3250_v44 = vadd.f32 %v3218_v25, %v3186_v11 }
 0x2a0   : > { %v3252_v20 = vadd.f32 %v3220_v46, %v3188_v37  ;;  %v2921_v19 = vpop.f32.mrf.mxu2  ;;  %v2895_v58 = vpop.f32.mrf.mxu0 }
 0x2a1   : > { %v3282_v61 = vmax.f32 %v3250_v44, 0.0  ;;  %v3118_v33 = vadd.f32 %v2921_v19, %v2851_v42  ;;  %v3115_v12 = vadd.f32 %v2895_v58, %v2848_v38  ;;  %v2909_v60 = vpop.f32.mrf.mxu1  ;;  %v3224_v19 = vld [vmem:[%s5226_s24 + $0x30] sm:$0xff] }
 0x2a2   : > { %v3284_v11 = vmax.f32 %v3252_v20, 0.0  ;;  %v2935_v43 = vpop.f32.mrf.mxu3  ;;  %v3117_v40 = vadd.f32 %v2909_v60, %v5161_v30  ;;  %v3221_v30 = vld [vmem:[%s5226_s24 + $0x18] sm:$0xff]  ;;  %v2854_v60 = vadd.f32 %v5167_v4, %v5070_v56 }
 0x2a3   : > { %3314 = vst.msk [vmem:[%s5246_s28] sm:$0xff] %vm324_vm2, %v3282_v61  ;;  %v3154_v37 = vmul.f32 %v5218_v21, %v3118_v33  ;;  %v3120_v46 = vadd.f32 %v2935_v43, %v2853_v17  ;;  %v3151_v25 = vmul.f32 %v5218_v21, %v3115_v12  ;;  %v2852_v17 = vadd.f32 %v5163_v27, %v5061_v47 }
 0x2a4   : > { %3316 = vst.msk [vmem:[%s5246_s28 + $0x10] sm:$0xff] %vm324_vm2, %v3284_v11  ;;  %v3153_v44 = vmul.f32 %v5218_v21, %v3117_v40  ;;  %v2855_v11 = vadd.f32 %v5165_v29, %v5064_v8 }
 0x2a5   : > { %v3190_v42 = vadd.f32 %v5231_v31, %v3154_v37  ;;  %v3156_v38 = vmul.f32 %v5218_v21, %v3120_v46  ;;  %v3187_v20 = vadd.f32 %v5231_v31, %v3151_v25 }
 0x2a6   : > { %v3189_v58 = vadd.f32 %v5231_v31, %v3153_v44 }
 0x2a7   : > { %v3254_v61 = vadd.f32 %v3222_v45, %v3190_v42  ;;  %v3192_v33 = vadd.f32 %v5231_v31, %v3156_v38  ;;  %v3251_v12 = vadd.f32 %v3219_v3, %v3187_v20  ;;  %v3223_v38 = vld [vmem:[%s5226_s24 + $0x28] sm:$0xff] }
 0x2a8   : > { %v3253_v43 = vadd.f32 %v3221_v30, %v3189_v58  ;;  %v2923_v40 = vpop.f32.mrf.mxu2  ;;  %v2949_v37 = vpop.f32.mrf.mxu0 }
 0x2a9   : > { %v3286_v46 = vmax.f32 %v3254_v61, 0.0  ;;  %v3256_v25 = vadd.f32 %v3224_v19, %v3192_v33  ;;  %v3283_v47 = vmax.f32 %v3251_v12, 0.0  ;;  %v3119_v27 = vadd.f32 %v2923_v40, %v2852_v17  ;;  %v2963_v45 = vpop.f32.mrf.mxu1  ;;  %v3228_v17 = vld [vmem:[%s5226_s24 + $0x50] sm:$0xff]  ;;  %v3225_v61 = vld [vmem:[%s5226_s24 + $0x38] sm:$0xff] }
 0x2aa   : > { %v3285_v44 = vmax.f32 %v3253_v43, 0.0  ;;  %v2937_v3 = vpop.f32.mrf.mxu3  ;;  %v3122_v56 = vadd.f32 %v2949_v37, %v2855_v11  ;;  %v3124_v8 = vadd.f32 %v2963_v45, %v5170_v10  ;;  %v3226_v10 = vld [vmem:[%s5226_s24 + $0x40] sm:$0xff]  ;;  %v2856_v11 = vadd.f32 %v5174_v15, %v5088_v5 }
 0x2ab   : > { %3318 = vst.msk [vmem:[%s5246_s28 + $0x20] sm:$0xff] %vm324_vm2, %v3286_v46  ;;  %v3288_v29 = vmax.f32 %v3256_v25, 0.0  ;;  %v3155_v4 = vmul.f32 %v5218_v21, %v3119_v27  ;;  %v3121_v42 = vadd.f32 %v2937_v3, %v2854_v60  ;;  %v2859_v60 = vadd.f32 %v5172_v1, %v5085_v9 }
 0x2ac   : > { %3315 = vst.msk [vmem:[%s5246_s28 + $0x8] sm:$0xff] %vm324_vm2, %v3283_v47  ;;  %v3158_v20 = vmul.f32 %v5218_v21, %v3122_v56  ;;  %v3160_v30 = vmul.f32 %v5218_v21, %v3124_v8  ;;  %v2861_v37 = vadd.f32 %v5176_v18, %v5094_v52 }
 0x2ad   : > { %3320 = vst.msk [vmem:[%s5246_s28 + $0x30] sm:$0xff] %vm324_vm2, %v3288_v29  ;;  %v3191_v19 = vadd.f32 %v5231_v31, %v3155_v4  ;;  %v3157_v58 = vmul.f32 %v5218_v21, %v3121_v42  ;;  %v3230_v42 = vld [vmem:[%s5226_s24 + $0x60] sm:$0xff] }
 0x2ae   : > { %3317 = vst.msk [vmem:[%s5246_s28 + $0x18] sm:$0xff] %vm324_vm2, %v3285_v44  ;;  %v3194_v33 = vadd.f32 %v5231_v31, %v3158_v20  ;;  %v3196_v12 = vadd.f32 %v5231_v31, %v3160_v30 }
 0x2af   : > { %v3255_v43 = vadd.f32 %v3223_v38, %v3191_v19  ;;  %v3193_v40 = vadd.f32 %v5231_v31, %v3157_v58  ;;  %v3227_v38 = vld [vmem:[%s5226_s24 + $0x48] sm:$0xff]  ;;  %v3229_v58 = vld [vmem:[%s5226_s24 + $0x58] sm:$0xff] }
 0x2b0   : > { %v3258_v46 = vadd.f32 %v3226_v10, %v3194_v33  ;;  %v3260_v25 = vadd.f32 %v3228_v17, %v3196_v12  ;;  %v2977_v47 = vpop.f32.mrf.mxu2  ;;  %v2951_v27 = vpop.f32.mrf.mxu0  ;;  %v3232_v10 = vld [vmem:[%s5226_s24 + $0x70] sm:$0xff] }
 0x2b1   : > { %v3287_v45 = vmax.f32 %v3255_v43, 0.0  ;;  %v3257_v44 = vadd.f32 %v3225_v61, %v3193_v40  ;;  %v3126_v9 = vadd.f32 %v2977_v47, %v2859_v60  ;;  %v3123_v1 = vadd.f32 %v2951_v27, %v2856_v11  ;;  %v2965_v5 = vpop.f32.mrf.mxu1 }
 0x2b2   : > { %v3290_v15 = vmax.f32 %v3258_v46, 0.0  ;;  %v3292_v3 = vmax.f32 %v3260_v25, 0.0  ;;  %v2991_v56 = vpop.f32.mrf.mxu3  ;;  %v3125_v52 = vadd.f32 %v2965_v5, %v5179_v53  ;;  %v2860_v61 = vadd.f32 %v5181_v62, %v5097_v28 }
 0x2b3   : > { %3319 = vst.msk [vmem:[%s5246_s28 + $0x28] sm:$0xff] %vm324_vm2, %v3287_v45  ;;  %v3289_v18 = vmax.f32 %v3257_v44, 0.0  ;;  %v3162_v8 = vmul.f32 %v5218_v21, %v3126_v9  ;;  %v3128_v29 = vadd.f32 %v2991_v56, %v2861_v37  ;;  %v3159_v4 = vmul.f32 %v5218_v21, %v3123_v1  ;;  %v3231_v1 = vld [vmem:[%s5226_s24 + $0x68] sm:$0xff] }
 0x2b4   : > { %3322 = vst.msk [vmem:[%s5246_s28 + $0x40] sm:$0xff] %vm324_vm2, %v3290_v15  ;;  %v3161_v20 = vmul.f32 %v5218_v21, %v3125_v52  ;;  %v2862_v11 = vadd.f32 %v5185_v57, %v5104_v13  ;;  %v2863_v43 = vadd.f32 %v5183_v24, %v5100_v63  ;;  %v3236_v52 = vld [vmem:[%s5226_s24 + $0x90] sm:$0xff] }
 0x2b5   : > { %3321 = vst.msk [vmem:[%s5246_s28 + $0x38] sm:$0xff] %vm324_vm2, %v3289_v18  ;;  %v3198_v30 = vadd.f32 %v5231_v31, %v3162_v8  ;;  %v3164_v53 = vmul.f32 %v5218_v21, %v3128_v29  ;;  %v3195_v19 = vadd.f32 %v5231_v31, %v3159_v4  ;;  %v3233_v18 = vld [vmem:[%s5226_s24 + $0x78] sm:$0xff]  ;;  %v2867_v4 = vadd.f32 %v5189_v59, %v5115_v26 }
 0x2b6   : > { %3324 = vst.msk [vmem:[%s5246_s28 + $0x50] sm:$0xff] %vm324_vm2, %v3292_v3  ;;  %v3197_v17 = vadd.f32 %v5231_v31, %v3161_v20 }
 0x2b7   : > { %v3262_v33 = vadd.f32 %v3230_v42, %v3198_v30  ;;  %v3200_v12 = vadd.f32 %v5231_v31, %v3164_v53  ;;  %v3259_v60 = vadd.f32 %v3227_v38, %v3195_v19  ;;  %v2864_v42 = vadd.f32 %v5191_v51, %v5118_v22 }
 0x2b8   : > { %v3261_v40 = vadd.f32 %v3229_v58, %v3197_v17  ;;  %v2979_v37 = vpop.f32.mrf.mxu2  ;;  %v3005_v46 = vpop.f32.mrf.mxu0  ;;  %v2869_v30 = vadd.f32 %v5193_v34, %v5122_v23 }
 0x2b9   : > { %v3294_v25 = vmax.f32 %v3262_v33, 0.0  ;;  %v3264_v47 = vadd.f32 %v3232_v10, %v3200_v12  ;;  %v3291_v28 = vmax.f32 %v3259_v60, 0.0  ;;  %v3127_v62 = vadd.f32 %v2979_v37, %v2860_v61  ;;  %v3019_v27 = vpop.f32.mrf.mxu1  ;;  %v3235_v37 = vld [vmem:[%s5226_s24 + $0x88] sm:$0xff] }
 0x2ba   : > { %v3293_v45 = vmax.f32 %v3261_v40, 0.0  ;;  %v2993_v44 = vpop.f32.mrf.mxu3  ;;  %v3130_v13 = vadd.f32 %v3005_v46, %v2863_v43  ;;  %v3132_v63 = vadd.f32 %v3019_v27, %v5187_v54  ;;  %v3234_v54 = vld [vmem:[%s5226_s24 + $0x80] sm:$0xff] }
 0x2bb   : > { %3326 = vst.msk [vmem:[%s5246_s28 + $0x60] sm:$0xff] %vm324_vm2, %v3294_v25  ;;  %v3296_v24 = vmax.f32 %v3264_v47, 0.0  ;;  %v3163_v57 = vmul.f32 %v5218_v21, %v3127_v62  ;;  %v3129_v9 = vadd.f32 %v2993_v44, %v2862_v11  ;;  %v3238_v40 = vld [vmem:[%s5226_s24 + $0xa0] sm:$0xff]  ;;  %v3240_v62 = vld [vmem:[%s5226_s24 + $0xb0] sm:$0xff] }
 0x2bc   : > { %3323 = vst.msk [vmem:[%s5246_s28 + $0x48] sm:$0xff] %vm324_vm2, %v3291_v28  ;;  %v3166_v5 = vmul.f32 %v5218_v21, %v3130_v13  ;;  %v3168_v15 = vmul.f32 %v5218_v21, %v3132_v63  ;;  %v3237_v28 = vld [vmem:[%s5226_s24 + $0x98] sm:$0xff] }
 0x2bd   : > { %3328 = vst.msk [vmem:[%s5246_s28 + $0x70] sm:$0xff] %vm324_vm2, %v3296_v24  ;;  %v3199_v3 = vadd.f32 %v5231_v31, %v3163_v57  ;;  %v3165_v56 = vmul.f32 %v5218_v21, %v3129_v9  ;;  %v2870_v24 = vadd.f32 %v5201_v36, %v5134_v2  ;;  %v2871_v57 = vadd.f32 %v5199_v35, %v5130_v16 }
 0x2be   : > { %3325 = vst.msk [vmem:[%s5246_s28 + $0x58] sm:$0xff] %vm324_vm2, %v3293_v45  ;;  %v3202_v8 = vadd.f32 %v5231_v31, %v3166_v5  ;;  %v3204_v29 = vadd.f32 %v5231_v31, %v3168_v15  ;;  %v2868_v45 = vadd.f32 %v5197_v7, %v5127_v14 }
 0x2bf   : > { %v3263_v38 = vadd.f32 %v3231_v1, %v3199_v3  ;;  %v3201_v20 = vadd.f32 %v5231_v31, %v3165_v56 }
 0x2c0   : > { %v3266_v53 = vadd.f32 %v3234_v54, %v3202_v8  ;;  %v3268_v19 = vadd.f32 %v3236_v52, %v3204_v29  ;;  %v3033_v58 = vpop.f32.mrf.mxu2  ;;  %v3007_v10 = vpop.f32.mrf.mxu0  ;;  %v3239_v8 = vld [vmem:[%s5226_s24 + $0xa8] sm:$0xff] }
 0x2c1   : > { %v3295_v17 = vmax.f32 %v3263_v38, 0.0  ;;  %v3265_v61 = vadd.f32 %v3233_v18, %v3201_v20  ;;  %v3134_v26 = vadd.f32 %v3033_v58, %v2867_v4  ;;  %v3131_v59 = vadd.f32 %v3007_v10, %v2864_v42  ;;  %v3021_v22 = vpop.f32.mrf.mxu1  ;;  %v3244_v20 = vld [vmem:[%s5226_s24 + $0xd0] sm:$0xff] }
 0x2c2   : > { %v3298_v51 = vmax.f32 %v3266_v53, 0.0  ;;  %v3300_v33 = vmax.f32 %v3268_v19, 0.0  ;;  %v3047_v12 = vpop.f32.mrf.mxu3  ;;  %v3133_v23 = vadd.f32 %v3021_v22, %v5195_v41  ;;  %v2875_v58 = vadd.f32 %v5205_v49, %v5145_v39 }
 0x2c3   : > { %3327 = vst.msk [vmem:[%s5246_s28 + $0x68] sm:$0xff] %vm324_vm2, %v3295_v17  ;;  %v3297_v34 = vmax.f32 %v3265_v61, 0.0  ;;  %v3170_v60 = vmul.f32 %v5218_v21, %v3134_v26  ;;  %v3136_v11 = vadd.f32 %v3047_v12, %v2869_v30  ;;  %v3167_v43 = vmul.f32 %v5218_v21, %v3131_v59  ;;  %v3241_v30 = vld [vmem:[%s5226_s24 + $0xb8] sm:$0xff] }
 0x2c4   : > { %3330 = vst.msk [vmem:[%s5246_s28 + $0x80] sm:$0xff] %vm324_vm2, %v3298_v51  ;;  %v3169_v46 = vmul.f32 %v5218_v21, %v3133_v23  ;;  %v2872_v10 = vadd.f32 %v5207_v0, %v5148_v6  ;;  %v2877_v26 = vadd.f32 %v5209_v48, %v5152_v55 }
 0x2c5   : > { %3329 = vst.msk [vmem:[%s5246_s28 + $0x78] sm:$0xff] %vm324_vm2, %v3297_v34  ;;  %v3206_v25 = vadd.f32 %v5231_v31, %v3170_v60  ;;  %v3172_v41 = vmul.f32 %v5218_v21, %v3136_v11  ;;  %v3203_v47 = vadd.f32 %v5231_v31, %v3167_v43  ;;  %v5564_v11 = vld [vmem:[#allocation5_spill] sm:$0xff] }
 0x2c6   : > { %3332 = vst.msk [vmem:[%s5246_s28 + $0x90] sm:$0xff] %vm324_vm2, %v3300_v33  ;;  %v3205_v27 = vadd.f32 %v5231_v31, %v3169_v46  ;;  %v3246_v46 = vld [vmem:[%s5226_s24 + $0xe0] sm:$0xff] }
 0x2c7   : > { %v3270_v44 = vadd.f32 %v3238_v40, %v3206_v25  ;;  %v3208_v13 = vadd.f32 %v5231_v31, %v3172_v41  ;;  %v3267_v63 = vadd.f32 %v3235_v37, %v3203_v47  ;;  %v3243_v25 = vld [vmem:[%s5226_s24 + $0xc8] sm:$0xff] }
 0x2c8   : > { %v3269_v9 = vadd.f32 %v3237_v28, %v3205_v27  ;;  %v3035_v1 = vpop.f32.mrf.mxu2  ;;  %v3061_v5 = vpop.f32.mrf.mxu0  ;;  %v3245_v27 = vld [vmem:[%s5226_s24 + $0xd8] sm:$0xff] }
 0x2c9   : > { %v3302_v15 = vmax.f32 %v3270_v44, 0.0  ;;  %v3272_v3 = vadd.f32 %v3240_v62, %v3208_v13  ;;  %v3299_v14 = vmax.f32 %v3267_v63, 0.0  ;;  %v3135_v7 = vadd.f32 %v3035_v1, %v2868_v45  ;;  %v3075_v56 = vpop.f32.mrf.mxu1  ;;  %v3248_v45 = vld [vmem:[%s5226_s24 + $0xf0] sm:$0xff]  ;;  %v5565_v13 = vld [vmem:[#allocation3_spill] sm:$0xff]  ;;  %v5566_v63 = vld [vmem:[#allocation6_spill] sm:$0xff] }
 0x2ca   : > { %v3301_v54 = vmax.f32 %v3269_v9, 0.0  ;;  %v3049_v52 = vpop.f32.mrf.mxu3  ;;  %v3138_v2 = vadd.f32 %v3061_v5, %v2871_v57  ;;  %v3140_v16 = vadd.f32 %v3075_v56, %v5203_v32  ;;  %v3242_v32 = vld [vmem:[%s5226_s24 + $0xc0] sm:$0xff]  ;;  %v5567_v5 = vld [vmem:[#allocation4_spill] sm:$0xff] }
 0x2cb   : > { %3334 = vst.msk [vmem:[%s5246_s28 + $0xa0] sm:$0xff] %vm324_vm2, %v3302_v15  ;;  %v3304_v35 = vmax.f32 %v3272_v3, 0.0  ;;  %v3171_v36 = vmul.f32 %v5218_v21, %v3135_v7  ;;  %v3137_v18 = vadd.f32 %v3049_v52, %v2870_v24  ;;  %v2876_v24 = vadd.f32 %v5566_v63, %v5565_v13 }
 0x2cc   : > { %3331 = vst.msk [vmem:[%s5246_s28 + $0x88] sm:$0xff] %vm324_vm2, %v3299_v14  ;;  %v3174_v29 = vmul.f32 %v5218_v21, %v3138_v2  ;;  %v3176_v4 = vmul.f32 %v5218_v21, %v3140_v16  ;;  %v2878_v15 = vadd.f32 %v5233_v50, %v5567_v5  ;;  %v3247_v50 = vld [vmem:[%s5226_s24 + $0xe8] sm:$0xff] }
 0x2cd   : > { %3336 = vst.msk [vmem:[%s5246_s28 + $0xb0] sm:$0xff] %vm324_vm2, %v3304_v35  ;;  %v3207_v42 = vadd.f32 %v5231_v31, %v3171_v36  ;;  %v3173_v38 = vmul.f32 %v5218_v21, %v3137_v18 }
 0x2ce   : > { %3333 = vst.msk [vmem:[%s5246_s28 + $0x98] sm:$0xff] %vm324_vm2, %v3301_v54  ;;  %v3210_v53 = vadd.f32 %v5231_v31, %v3174_v29  ;;  %v3212_v19 = vadd.f32 %v5231_v31, %v3176_v4  ;;  %v3249_v4 = vld [vmem:[%s5226_s24 + $0xf8] sm:$0xff] }
 0x2cf   : > { %v3271_v17 = vadd.f32 %v3239_v8, %v3207_v42  ;;  %v3209_v61 = vadd.f32 %v5231_v31, %v3173_v38 }
 0x2d0   : > { %v3274_v59 = vadd.f32 %v3242_v32, %v3210_v53  ;;  %v3276_v22 = vadd.f32 %v3244_v20, %v3212_v19  ;;  %v3089_v51 = vpop.f32.mrf.mxu2  ;;  %v3063_v33 = vpop.f32.mrf.mxu0 }
 0x2d1   : > { %v3303_v12 = vmax.f32 %v3271_v17, 0.0  ;;  %v3273_v23 = vadd.f32 %v3241_v30, %v3209_v61  ;;  %v3142_v39 = vadd.f32 %v3089_v51, %v2875_v58  ;;  %v3139_v49 = vadd.f32 %v3063_v33, %v2872_v10  ;;  %v3077_v6 = vpop.f32.mrf.mxu1 }
 0x2d2   : > { %v3306_v0 = vmax.f32 %v3274_v59, 0.0  ;;  %v3308_v34 = vmax.f32 %v3276_v22, 0.0  ;;  %v3109_v60 = vpop.f32.mrf.mxu3  ;;  %v3141_v55 = vadd.f32 %v3077_v6, %v5564_v11 }
 0x2d3   : > { %3335 = vst.msk [vmem:[%s5246_s28 + $0xa8] sm:$0xff] %vm324_vm2, %v3303_v12  ;;  %v3305_v48 = vmax.f32 %v3273_v23, 0.0  ;;  %v3178_v43 = vmul.f32 %v5218_v21, %v3142_v39  ;;  %v3144_v40 = vadd.f32 %v3109_v60, %v2877_v26  ;;  %v3175_v37 = vmul.f32 %v5218_v21, %v3139_v49 }
 0x2d4   : > { %3338 = vst.msk [vmem:[%s5246_s28 + $0xc0] sm:$0xff] %vm324_vm2, %v3306_v0  ;;  %v3177_v41 = vmul.f32 %v5218_v21, %v3141_v55 }
 0x2d5   : > { %3337 = vst.msk [vmem:[%s5246_s28 + $0xb8] sm:$0xff] %vm324_vm2, %v3305_v48  ;;  %v3214_v47 = vadd.f32 %v5231_v31, %v3178_v43  ;;  %v3180_v28 = vmul.f32 %v5218_v21, %v3144_v40  ;;  %v3211_v62 = vadd.f32 %v5231_v31, %v3175_v37 }
 0x2d6   : > { %3340 = vst.msk [vmem:[%s5246_s28 + $0xd0] sm:$0xff] %vm324_vm2, %v3308_v34  ;;  %v3213_v44 = vadd.f32 %v5231_v31, %v3177_v41 }
 0x2d7   : > { %v3278_v57 = vadd.f32 %v3246_v46, %v3214_v47  ;;  %v3216_v9 = vadd.f32 %v5231_v31, %v3180_v28  ;;  %v3275_v1 = vadd.f32 %v3243_v25, %v3211_v62 }
 0x2d8   : > { %v3277_v3 = vadd.f32 %v3245_v27, %v3213_v44  ;;  %v3091_v14 = vpop.f32.mrf.mxu2 }
 0x2d9   : > { %v3310_v7 = vmax.f32 %v3278_v57, 0.0  ;;  %v3280_v56 = vadd.f32 %v3248_v45, %v3216_v9  ;;  %v3307_v54 = vmax.f32 %v3275_v1, 0.0  ;;  %v3143_v52 = vadd.f32 %v3091_v14, %v2876_v24 }
 0x2da   : > { %v3309_v2 = vmax.f32 %v3277_v3, 0.0  ;;  %v3111_v16 = vpop.f32.mrf.mxu3 }
 0x2db   : > { %3342 = vst.msk [vmem:[%s5246_s28 + $0xe0] sm:$0xff] %vm324_vm2, %v3310_v7  ;;  %v3312_v35 = vmax.f32 %v3280_v56, 0.0  ;;  %v3179_v36 = vmul.f32 %v5218_v21, %v3143_v52  ;;  %v3145_v18 = vadd.f32 %v3111_v16, %v2878_v15 }
 0x2dc   : > { %3339 = vst.msk [vmem:[%s5246_s28 + $0xc8] sm:$0xff] %vm324_vm2, %v3307_v54 }
 0x2dd   : > { %3344 = vst.msk [vmem:[%s5246_s28 + $0xf0] sm:$0xff] %vm324_vm2, %v3312_v35  ;;  %v3215_v8 = vadd.f32 %v5231_v31, %v3179_v36  ;;  %v3181_v29 = vmul.f32 %v5218_v21, %v3145_v18 }
 0x2de   : > { %3341 = vst.msk [vmem:[%s5246_s28 + $0xd8] sm:$0xff] %vm324_vm2, %v3309_v2 }
 0x2df   : > { %v3279_v42 = vadd.f32 %v3247_v50, %v3215_v8  ;;  %v3217_v38 = vadd.f32 %v5231_v31, %v3181_v29 }
 0x2e1   : > { %v3311_v32 = vmax.f32 %v3279_v42, 0.0  ;;  %v3281_v20 = vadd.f32 %v3249_v4, %v3217_v38 }
 0x2e3   : > { %3343 = vst.msk [vmem:[%s5246_s28 + $0xe8] sm:$0xff] %vm324_vm2, %v3311_v32  ;;  %v3313_v30 = vmax.f32 %v3281_v20, 0.0 }
 0x2e5   : > { %3345 = vst.msk [vmem:[%s5246_s28 + $0xf8] sm:$0xff] %vm324_vm2, %v3313_v30 }
 0x2e6 PF: > { %s15_s18 = sadd.s32 1, %s3700_s18  }
 0x2e7   : > { %p12_p4 = scmp.ge.s32.totalorder %s15_s18, 4  }
 0x2e9   :  { %14 = sbr.rel (!%p12_p4) target bundleno = 1 (0x1), region = 81 }

</bundles_post_ra>
